<compile_context>
chip_gen: v7x
topology: tpu7x:2x2x1
jax: 0.10.0
libtpu: 0.0.40
codegen_flags: <defaults>
</compile_context>

<pallas_src>
import jax
import jax.numpy as jnp
from jax.experimental import pallas as pl
from jax.experimental.pallas import tpu as pltpu


# ----------------------------------------------------------------------------
# Kernel
# ----------------------------------------------------------------------------
def fused_head_kernel(xc_ref, xd_ref, w1_ref, b1_ref, w2_ref, b2_ref,
                      w3t_ref, b3_ref, o_ref):
    # Merge the two activation streams into one contiguous [tb, Dc+Dd] block in
    # VMEM/vregs (lane-axis concat), then cast to bf16 in-register.  The row
    # order of w1_ref matches this [cell | drug] column order (packed offline).
    x = jnp.concatenate([xc_ref[...], xd_ref[...]], axis=-1).astype(jnp.bfloat16)

    # ---- Layer 1: single K=(Dc+Dd) bf16 MXU pass, f32 accumulation.
    h1 = jnp.dot(x, w1_ref[...], preferred_element_type=jnp.float32)
    h1 = jnp.maximum(h1 + b1_ref[...], 0.0)          # f32 bias + ReLU on the VPU
    # (Dropout: identity at inference)

    # ---- Layer 2: bf16 MXU, f32 accumulation.
    h2 = jnp.dot(h1.astype(w2_ref.dtype), w2_ref[...],
                 preferred_element_type=jnp.float32)
    h2 = jnp.maximum(h2 + b2_ref[...], 0.0)
    # (Dropout: identity at inference)

    # ---- Layer 3: [tb, H] x [H, O] with f32 weights (tiny -> kept full precision).
    if o_ref.shape[-1] == 1:
        # O == 1: broadcast-multiply + lane reduction on VPU/XLU; an MXU pass
        # would be >99% padding (N=1 against a 128/256-wide array).
        o = jnp.sum(h2 * w3t_ref[...], axis=-1, keepdims=True)
    else:
        o = jax.lax.dot_general(h2, w3t_ref[...],
                                (((1,), (1,)), ((), ())),
                                preferred_element_type=jnp.float32)
    o_ref[...] = (o + b3_ref[...]).astype(o_ref.dtype)


# ----------------------------------------------------------------------------
# Tile selection (generation aware)
# ----------------------------------------------------------------------------
def _round_up(x, m):
    return -(-x // m) * m


def _tpu_generation():
    """Best-effort TPU generation sniff (5 -> v5e, 6 -> v6e, 7 -> v7x, ...)."""
    try:
        kind = jax.devices()[0].device_kind.lower()
    except Exception:
        return 0
    for g in (7, 6, 5, 4, 3, 2):
        if f"v{g}" in kind or f"tpu{g}" in kind:
            return g
    return 0


# Below this batch size a 2-TensorCore split (v7x) just re-DMAs the full
# ~2.3 MiB weight set on the second core for almost no compute benefit.
_MEGACORE_SPLIT_MIN_BATCH = 256


def _select_batch_tile(B, gen, tb_max=None):
    if tb_max is None:
        # v6e/v7x MXU is 2x256x256 -> M=256 tiles; v5e and older are 128x128.
        tb_max = 256 if gen >= 6 else 128
    n_cores = 2 if gen >= 7 else 1        # v7x: 2 TensorCores per chip
    if n_cores > 1 and B > _MEGACORE_SPLIT_MIN_BATCH:
        # Mid/large batch on v7x: size the tile so every TensorCore gets work.
        tb = min(tb_max, _round_up(pl.cdiv(B, n_cores), 8))
    else:
        tb = min(tb_max, _round_up(B, 8))
    return max(tb, 8)


# ----------------------------------------------------------------------------
# Wrapper
# ----------------------------------------------------------------------------
def tcnn_fusion_head_pallas(drug_embed, cell_embed, params, *, tb_max=None):
    """drug_embed, cell_embed: [B, C, L_*] float32.  params: dict (see init_params)."""
    B, C, L_drug = drug_embed.shape
    _, _, L_cell = cell_embed.shape

    # Activations stay f32 in HBM (reshape of a contiguous array is free); the
    # bf16 cast happens inside the kernel after the load.
    xc = cell_embed.reshape(B, C * L_cell)
    xd = drug_embed.reshape(B, C * L_drug)

    w1, b1 = params["w1"], params["b1"]
    w2, b2 = params["w2"], params["b2"]
    w3t, b3 = params["w3t"], params["b3"]

    D, H = w1.shape
    Dc, Dd = xc.shape[1], xd.shape[1]
    assert D == Dc + Dd, (D, Dc, Dd)
    O = w3t.shape[0]

    gen = _tpu_generation()
    tb = _select_batch_tile(B, gen, tb_max)
    n_tiles = pl.cdiv(B, tb)
    # No jnp.pad of the activations: Pallas clips boundary DMAs, so a ragged
    # last tile computes on (and discards) garbage rows instead of paying an
    # extra HBM read+write pass.  Per-row math never mixes rows, so the valid
    # rows are unaffected.

    flops = 2 * B * (D * H + H * H + H * O)
    bytes_accessed = (w1.size * 2 + w2.size * 2 + w3t.size * 4
                      + (b1.size + b2.size + b3.size) * 4
                      + (xc.size + xd.size) * 4        # f32 activation reads
                      + B * O * 4)                     # f32 output writes

    out = pl.pallas_call(
        fused_head_kernel,
        out_shape=jax.ShapeDtypeStruct((B, O), jnp.float32),
        grid=(n_tiles,),
        in_specs=[
            # activations: tiled over the batch grid axis (double-buffered)
            pl.BlockSpec((tb, Dc), lambda i: (i, 0)),
            pl.BlockSpec((tb, Dd), lambda i: (i, 0)),
            # weights/biases: constant block index -> DMA'd once, VMEM-resident
            pl.BlockSpec((D, H), lambda i: (0, 0)),
            pl.BlockSpec((1, H), lambda i: (0, 0)),
            pl.BlockSpec((H, H), lambda i: (0, 0)),
            pl.BlockSpec((1, H), lambda i: (0, 0)),
            pl.BlockSpec((O, H), lambda i: (0, 0)),
            pl.BlockSpec((1, O), lambda i: (0, 0)),
        ],
        out_specs=pl.BlockSpec((tb, O), lambda i: (i, 0)),
        compiler_params=pltpu.CompilerParams(
            # independent batch tiles -> megacore sharding on v7x when
            # n_tiles >= 2; harmless on single-core v5e/v6e.
            dimension_semantics=("parallel",),
        ),
        cost_estimate=pl.CostEstimate(
            flops=flops, transcendentals=0, bytes_accessed=bytes_accessed),
    )(xc, xd, w1, b1, w2, b2, w3t, b3)
    return out


# ----------------------------------------------------------------------------
# Parameters (synthetic, shapes matching the PyTorch module)
# ----------------------------------------------------------------------------
def init_params(key, C, L_cell, L_drug, hidden=1024, out_channels=1):
    """Weights stored transposed vs nn.Linear ([in, out]) so matmuls are x @ W.

    W1 is additionally row-permuted offline (one time) so that the kernel can
    consume [cell_flat | drug_flat] activations while staying exactly
    equivalent to torch.cat((cell, drug), dim=2).view(B, -1) @ W1.
    """
    in_features = C * (L_cell + L_drug)
    k1, k2, k3, k4, k5, k6 = jax.random.split(key, 6)

    def lin(kw, kb, fan_in, fan_out):
        bound = 1.0 / jnp.sqrt(fan_in)
        w = jax.random.uniform(kw, (fan_in, fan_out), jnp.float32, -bound, bound)
        b = jax.random.uniform(kb, (1, fan_out), jnp.float32, -bound, bound)
        return w, b

    w1, b1 = lin(k1, k2, in_features, hidden)
    w2, b2 = lin(k3, k4, hidden, hidden)
    w3, b3 = lin(k5, k6, hidden, out_channels)

    # Absorb the PyTorch concat+view glue: original row index c*(Lc+Ld)+l is a
    # cell feature for l < Lc and a drug feature otherwise.  Gather cell rows
    # then drug rows into a single [Dc+Dd, hidden] matrix (one K=D matmul).
    L = L_cell + L_drug
    w1_3d = w1.reshape(C, L, hidden)
    w1_cell = w1_3d[:, :L_cell, :].reshape(C * L_cell, hidden)
    w1_drug = w1_3d[:, L_cell:, :].reshape(C * L_drug, hidden)
    w1_packed = jnp.concatenate([w1_cell, w1_drug], axis=0)

    return {
        # kernel parameters (big matrices streamed as bf16, head kept f32)
        "w1": w1_packed.astype(jnp.bfloat16),   # [Dc+Dd, hidden]
        "w2": w2.astype(jnp.bfloat16),          # [hidden, hidden]
        "w3t": w3.T,                            # [out_channels, hidden], f32
        "b1": b1, "b2": b2, "b3": b3,           # f32
        # f32 masters, only used by the reference check
        "w1_f32": w1, "w2_f32": w2, "w3_f32": w3,
    }


# ----------------------------------------------------------------------------
# Reference (exact PyTorch glue, same mixed precision as the kernel)
# ----------------------------------------------------------------------------
def reference_forward(drug_embed, cell_embed, params):
    fused = jnp.concatenate([cell_embed, drug_embed], axis=2)
    x = fused.reshape(fused.shape[0], -1)
    w1 = params["w1_f32"].astype(jnp.bfloat16)
    w2 = params["w2_f32"].astype(jnp.bfloat16)
    h1 = jnp.dot(x.astype(jnp.bfloat16), w1, preferred_element_type=jnp.float32)
    h1 = jnp.maximum(h1 + params["b1"], 0.0)
    h2 = jnp.dot(h1.astype(jnp.bfloat16), w2, preferred_element_type=jnp.float32)
    h2 = jnp.maximum(h2 + params["b2"], 0.0)
    return jnp.dot(h2, params["w3_f32"], preferred_element_type=jnp.float32) + params["b3"]


if __name__ == "__main__":
    key = jax.random.PRNGKey(0)
    k_drug, k_cell, k_params = jax.random.split(key, 3)

    # Small shapes consistent with the forward: [B, C, L_*] embeddings.
    B, C, L_drug, L_cell = 2, 4, 16, 16
    drug_embed = jax.random.normal(k_drug, (B, C, L_drug), jnp.float32)
    cell_embed = jax.random.normal(k_cell, (B, C, L_cell), jnp.float32)

    params = init_params(k_params, C, L_cell, L_drug, hidden=1024, out_channels=1)

    out = tcnn_fusion_head_pallas(drug_embed, cell_embed, params)
    out = jax.block_until_ready(out)

    ref = reference_forward(drug_embed, cell_embed, params)
    assert out.shape == (B, 1), out.shape
    assert jnp.allclose(out, ref, atol=5e-3, rtol=5e-3), (out, ref)

    print("KERNEL_OK")
</pallas_src>

<mosaic_0001>
module attributes {stable_mosaic.version = 11 : i64} {
  func.func @fused_head_kernel(%arg0: i32, %arg1: memref<8x64xf32, #tpu.memory_space<vmem>>, %arg2: memref<8x64xf32, #tpu.memory_space<vmem>>, %arg3: memref<128x1024xbf16, #tpu.memory_space<vmem>>, %arg4: memref<1x1024xf32, #tpu.memory_space<vmem>>, %arg5: memref<1024x1024xbf16, #tpu.memory_space<vmem>>, %arg6: memref<1x1024xf32, #tpu.memory_space<vmem>>, %arg7: memref<1x1024xf32, #tpu.memory_space<vmem>>, %arg8: memref<1x1xf32, #tpu.memory_space<vmem>>, %arg9: memref<8x1xf32, #tpu.memory_space<vmem>>) attributes {dimension_semantics = [#tpu.dimension_semantics<parallel>], iteration_bounds = array<i64: 1>, scalar_prefetch = 0 : i64, scratch_operands = 0 : i64, tpu.core_type = #tpu.core_type<tc>, window_params = [{transform_indices = @transform_0, window_bounds = array<i64: 8, 64>}, {transform_indices = @transform_1, window_bounds = array<i64: 8, 64>}, {pipeline_mode = #tpu.pipeline_mode<synchronous>, transform_indices = @transform_2, window_bounds = array<i64: 128, 1024>}, {pipeline_mode = #tpu.pipeline_mode<synchronous>, transform_indices = @transform_3, window_bounds = array<i64: 1, 1024>}, {pipeline_mode = #tpu.pipeline_mode<synchronous>, transform_indices = @transform_4, window_bounds = array<i64: 1024, 1024>}, {pipeline_mode = #tpu.pipeline_mode<synchronous>, transform_indices = @transform_5, window_bounds = array<i64: 1, 1024>}, {pipeline_mode = #tpu.pipeline_mode<synchronous>, transform_indices = @transform_6, window_bounds = array<i64: 1, 1024>}, {pipeline_mode = #tpu.pipeline_mode<synchronous>, transform_indices = @transform_7, window_bounds = array<i64: 1, 1>}, {transform_indices = @transform_8, window_bounds = array<i64: 8, 1>}]} {
    %c0 = arith.constant 0 : index
    %c0_0 = arith.constant 0 : index
    %0 = vector.load %arg1[%c0, %c0_0] : memref<8x64xf32, #tpu.memory_space<vmem>>, vector<8x64xf32>
    %c0_1 = arith.constant 0 : index
    %c0_2 = arith.constant 0 : index
    %1 = vector.load %arg2[%c0_1, %c0_2] : memref<8x64xf32, #tpu.memory_space<vmem>>, vector<8x64xf32>
    %2 = tpu.concatenate %0, %1 in 1 : vector<8x64xf32>, vector<8x64xf32> -> vector<8x128xf32>
    %3 = arith.truncf %2 : vector<8x128xf32> to vector<8x128xbf16>
    %c0_3 = arith.constant 0 : index
    %c0_4 = arith.constant 0 : index
    %4 = vector.load %arg3[%c0_3, %c0_4] : memref<128x1024xbf16, #tpu.memory_space<vmem>>, vector<128x1024xbf16>
    %cst = arith.constant dense<0.000000e+00> : vector<8x1024xf32>
    %5 = tpu.matmul %3, %4, %cst {dimension_numbers = #tpu.dot_dimension_numbers<[1], [0], [0], [1], [0, 0, 1, 1], [], []>} : vector<8x128xbf16>, vector<128x1024xbf16>, vector<8x1024xf32> -> vector<8x1024xf32>
    %c0_5 = arith.constant 0 : index
    %c0_6 = arith.constant 0 : index
    %6 = vector.load %arg4[%c0_5, %c0_6] : memref<1x1024xf32, #tpu.memory_space<vmem>>, vector<1x1024xf32>
    %7 = vector.broadcast %6 : vector<1x1024xf32> to vector<8x1024xf32>
    %8 = arith.addf %5, %7 : vector<8x1024xf32>
    %cst_7 = arith.constant 0.000000e+00 : f32
    %9 = vector.broadcast %cst_7 : f32 to vector<8x1024xf32>
    %10 = arith.maximumf %8, %9 : vector<8x1024xf32>
    %11 = arith.truncf %10 : vector<8x1024xf32> to vector<8x1024xbf16>
    %c0_8 = arith.constant 0 : index
    %c0_9 = arith.constant 0 : index
    %12 = vector.load %arg5[%c0_8, %c0_9] : memref<1024x1024xbf16, #tpu.memory_space<vmem>>, vector<1024x1024xbf16>
    %cst_10 = arith.constant dense<0.000000e+00> : vector<8x1024xf32>
    %13 = tpu.matmul %11, %12, %cst_10 {dimension_numbers = #tpu.dot_dimension_numbers<[1], [0], [0], [1], [0, 0, 1, 1], [], []>} : vector<8x1024xbf16>, vector<1024x1024xbf16>, vector<8x1024xf32> -> vector<8x1024xf32>
    %c0_11 = arith.constant 0 : index
    %c0_12 = arith.constant 0 : index
    %14 = vector.load %arg6[%c0_11, %c0_12] : memref<1x1024xf32, #tpu.memory_space<vmem>>, vector<1x1024xf32>
    %15 = vector.broadcast %14 : vector<1x1024xf32> to vector<8x1024xf32>
    %16 = arith.addf %13, %15 : vector<8x1024xf32>
    %cst_13 = arith.constant 0.000000e+00 : f32
    %17 = vector.broadcast %cst_13 : f32 to vector<8x1024xf32>
    %18 = arith.maximumf %16, %17 : vector<8x1024xf32>
    %c0_14 = arith.constant 0 : index
    %c0_15 = arith.constant 0 : index
    %19 = vector.load %arg7[%c0_14, %c0_15] : memref<1x1024xf32, #tpu.memory_space<vmem>>, vector<1x1024xf32>
    %20 = vector.broadcast %19 : vector<1x1024xf32> to vector<8x1024xf32>
    %21 = arith.mulf %18, %20 : vector<8x1024xf32>
    %cst_16 = arith.constant dense<0.000000e+00> : vector<8xf32>
    %22 = vector.multi_reduction <add>, %21, %cst_16 [1] : vector<8x1024xf32> to vector<8xf32>
    %23 = vector.shape_cast %22 : vector<8xf32> to vector<8x1xf32>
    %c0_17 = arith.constant 0 : index
    %c0_18 = arith.constant 0 : index
    %24 = vector.load %arg8[%c0_17, %c0_18] : memref<1x1xf32, #tpu.memory_space<vmem>>, vector<1x1xf32>
    %25 = vector.broadcast %24 : vector<1x1xf32> to vector<8x1xf32>
    %26 = arith.addf %23, %25 : vector<8x1xf32>
    %c0_19 = arith.constant 0 : index
    %c0_20 = arith.constant 0 : index
    %27 = vector.load %arg9[%c0_19, %c0_20] : memref<8x1xf32, #tpu.memory_space<vmem>>, vector<8x1xf32>
    tpu.vector_store %arg9[%c0_19, %c0_20], %26 {strides = array<i32>} : memref<8x1xf32, #tpu.memory_space<vmem>>, vector<8x1xf32>,
    return
  }
  func.func @transform_0(%arg0: i32) -> (i32, i32) {
    %c0_i32 = arith.constant 0 : i32
    %c0_i32_0 = arith.constant 0 : i32
    return %arg0, %c0_i32 : i32, i32
  }
  func.func @transform_1(%arg0: i32) -> (i32, i32) {
    %c0_i32 = arith.constant 0 : i32
    %c0_i32_0 = arith.constant 0 : i32
    return %arg0, %c0_i32 : i32, i32
  }
  func.func @transform_2(%arg0: i32) -> (i32, i32) {
    %c0_i32 = arith.constant 0 : i32
    %c0_i32_0 = arith.constant 0 : i32
    %c0_i32_1 = arith.constant 0 : i32
    return %c0_i32, %c0_i32_0 : i32, i32
  }
  func.func @transform_3(%arg0: i32) -> (i32, i32) {
    %c0_i32 = arith.constant 0 : i32
    %c0_i32_0 = arith.constant 0 : i32
    %c0_i32_1 = arith.constant 0 : i32
    return %c0_i32, %c0_i32_0 : i32, i32
  }
  func.func @transform_4(%arg0: i32) -> (i32, i32) {
    %c0_i32 = arith.constant 0 : i32
    %c0_i32_0 = arith.constant 0 : i32
    %c0_i32_1 = arith.constant 0 : i32
    return %c0_i32, %c0_i32_0 : i32, i32
  }
  func.func @transform_5(%arg0: i32) -> (i32, i32) {
    %c0_i32 = arith.constant 0 : i32
    %c0_i32_0 = arith.constant 0 : i32
    %c0_i32_1 = arith.constant 0 : i32
    return %c0_i32, %c0_i32_0 : i32, i32
  }
  func.func @transform_6(%arg0: i32) -> (i32, i32) {
    %c0_i32 = arith.constant 0 : i32
    %c0_i32_0 = arith.constant 0 : i32
    %c0_i32_1 = arith.constant 0 : i32
    return %c0_i32, %c0_i32_0 : i32, i32
  }
  func.func @transform_7(%arg0: i32) -> (i32, i32) {
    %c0_i32 = arith.constant 0 : i32
    %c0_i32_0 = arith.constant 0 : i32
    %c0_i32_1 = arith.constant 0 : i32
    return %c0_i32, %c0_i32_0 : i32, i32
  }
  func.func @transform_8(%arg0: i32) -> (i32, i32) {
    %c0_i32 = arith.constant 0 : i32
    %c0_i32_0 = arith.constant 0 : i32
    return %arg0, %c0_i32 : i32, i32
  }
}

</mosaic_0001>

<bundles_post_ra>
// kernel: tpu_custom_call.1
= control target key start
LH: loop header
LB: loop body
LE: loop exit
PB: predicated region body
PF: predicated region fallthrough
CT: control target
= control target key end

     0   :  { %s5771_s0 = inlined_call_operand.hbm [shape: f32[2,64], index: 0, kind: input, shape index: {}]   ;;  %s5772_s1 = inlined_call_operand.hbm [shape: f32[2,64], index: 1, kind: input, shape index: {}]   ;;  %s5773_s2 = inlined_call_operand.hbm [shape: bf16[128,1024], index: 2, kind: input, shape index: {}]   ;;  %s5774_s3 = inlined_call_operand.hbm [shape: f32[1,1024], index: 3, kind: input, shape index: {}]   ;;  %s5775_s4 = inlined_call_operand.hbm [shape: bf16[1024,1024], index: 4, kind: input, shape index: {}]   ;;  %s5776_s5 = inlined_call_operand.hbm [shape: f32[1,1024], index: 5, kind: input, shape index: {}]   ;;  %s5777_s6 = inlined_call_operand.hbm [shape: f32[1,1024], index: 6, kind: input, shape index: {}]   ;;  %s5778_s7 = inlined_call_operand.<no memory space> [shape: f32[1,1], index: 7, kind: input, shape index: {}]   ;;  %s5779_s8 = inlined_call_operand.vmem [shape: f32[2,1], index: 8, kind: output, shape index: {}]  }
   0x1   :  { %v13_v0 = vstv %s5778_s7 }
   0x2   :  { %14 = vst [vmem:[#allocation2] sm:$0x1] %v13_v0 }
   0x3   :  { %15 = vsyncpa [#allocation4], 0 }
   0x4   :  { %16 = vsyncpa [#allocation6], 0 }
   0x5   :  { %17 = vsyncpa [#allocation9], 0 }
   0x6   :  { %18 = vsyncpa [#allocation12], 0 }
   0x7   :  { %23 = vsyncadd [#allocation4], 96  ;;  %s5434_s29 = smov [#allocation3]   ;;  %s5272_s11 = scalar_lea.hbm %s5771_s0, 32 }
   0x8   :  { %s24_s30 = sshll.u32 %s5434_s29, 4  ;;  %p5273_p0 = scmp.ne.s32.totalorder %s5771_s0, %s5272_s11  ;;  %s25_s30 = int_to_ptr.vmem [resolvable:$true] %s24_s30 }
   0x9   :  { %p5276_p1 = scmp.lt.u32.totalorder %s5272_s11, %s5771_s0 }
   0xb   :  { %p5278_p2 = pnand %p5276_p1, %p5273_p0 }
   0xd   :  { %5281 = shalt.err (!%p5278_p2)
}
   0xe   :  { %s5282_s7 = scalar_lea.vmem %s25_s30, 32  ;;  %s5286_s16 = scalar_lea.vmem %s25_s30, 128 }
   0xf   :  { %p5283_p3 = scmp.ne.s32.totalorder %s25_s30, %s5282_s7  ;;  %p5287_p4 = scmp.lt.s32.totalorder %s25_s30, %s25_s30 }
  0x10   :  { %p5288_p5 = scmp.lt.s32.totalorder %s5286_s16, %s5282_s7 }
  0x12   :  { %p5289_p6 = por %p5288_p5, %p5287_p4 }
  0x14   :  { %p5290_p7 = pnand %p5289_p6, %p5283_p3 }
  0x16   :  { %5293 = shalt.err (!%p5290_p7)
}
  0x17   :  { %s5435_s17 = smov 32   ;;  %s5436_s18 = smov 2  }
  0x18   :  { %30 = dma.hbm_to_vmem [thread:$0]  %s5771_s0, 32, %s25_s30, [#allocation4], %s5435_s17, %s5435_s17, %s5436_s18  }
  0x19   :  { %35 = vsyncadd [#allocation6], 96  ;;  %s5437_s21 = smov [#allocation5]   ;;  %s5438_s23 = smov [#allocation8]  }
  0x1a   :  { %s36_s22 = sshll.u32 %s5437_s21, 4  ;;  %s61_s24 = sshll.u32 %s5438_s23, 4  ;;  %s37_s22 = int_to_ptr.vmem [resolvable:$true] %s36_s22  ;;  %s62_s24 = int_to_ptr.vmem [resolvable:$true] %s61_s24 }
  0x1b   :  { %s5294_s27 = scalar_lea.hbm %s5772_s1, 32 }
  0x1c   :  { %p5295_p8 = scmp.ne.s32.totalorder %s5772_s1, %s5294_s27  ;;  %p5298_p9 = scmp.lt.u32.totalorder %s5294_s27, %s5772_s1 }
  0x1e   :  { %p5300_p10 = pnand %p5298_p9, %p5295_p8 }
  0x20   :  { %5303 = shalt.err (!%p5300_p10)
}
  0x21   :  { %s5304_s0 = scalar_lea.vmem %s37_s22, 32  ;;  %s5308_s30 = scalar_lea.vmem %s37_s22, 128 }
  0x22   :  { %p5305_p11 = scmp.ne.s32.totalorder %s37_s22, %s5304_s0  ;;  %p5309_p12 = scmp.lt.s32.totalorder %s37_s22, %s37_s22 }
  0x23   :  { %p5310_p13 = scmp.lt.s32.totalorder %s5308_s30, %s5304_s0 }
  0x25   :  { %p5311_p0 = por %p5310_p13, %p5309_p12 }
  0x27   :  { %p5312_p1 = pnand %p5311_p0, %p5305_p11 }
  0x29   :  { %5315 = shalt.err (!%p5312_p1)
}
  0x2a   :  { %42 = dma.hbm_to_vmem [thread:$0]  %s5772_s1, 32, %s37_s22, [#allocation6], %s5435_s17, %s5435_s17, %s5436_s18  }
  0x2b   :  { %s5316_s15 = scalar_lea.hbm %s5774_s3, 128 }
  0x2c   :  { %p5317_p2 = scmp.ne.s32.totalorder %s5774_s3, %s5316_s15  ;;  %p5320_p3 = scmp.lt.u32.totalorder %s5316_s15, %s5774_s3 }
  0x2e   :  { %p5322_p4 = pnand %p5320_p3, %p5317_p2 }
  0x30   :  { %5325 = shalt.err (!%p5322_p4)
}
  0x31   :  { %s5326_s21 = scalar_lea.vmem %s62_s24, 128  ;;  %p5331_p6 = scmp.lt.s32.totalorder %s62_s24, %s62_s24 }
  0x32   :  { %p5327_p5 = scmp.ne.s32.totalorder %s62_s24, %s5326_s21  ;;  %p5332_p7 = scmp.lt.s32.totalorder %s5326_s21, %s5326_s21 }
  0x34   :  { %p5333_p8 = por %p5332_p7, %p5331_p6 }
  0x36   :  { %p5334_p9 = pnand %p5333_p8, %p5327_p5 }
  0x38   :  { %5337 = shalt.err (!%p5334_p9)
}
  0x39   :  { %64 = dma.hbm_to_vmem [thread:$0]  %s5774_s3, 128, %s62_s24, [#allocation9]  }
  0x3a   :  { %s5439_s22 = smov [#allocation11]   ;;  %s5440_s25 = smov [#allocation7]  }
  0x3b   :  { %s83_s23 = sshll.u32 %s5439_s22, 4  ;;  %s48_s26 = sshll.u32 %s5440_s25, 4  ;;  %s84_s23 = int_to_ptr.vmem [resolvable:$true] %s83_s23  ;;  %s5534_s26 = int_to_ptr.vmem [resolvable:$true] %s48_s26 }
  0x3c   :  { %s5338_s29 = scalar_lea.hbm %s5776_s5, 128 }
  0x3d   :  { %p5339_p10 = scmp.ne.s32.totalorder %s5776_s5, %s5338_s29  ;;  %p5342_p11 = scmp.lt.u32.totalorder %s5338_s29, %s5776_s5 }
  0x3f   :  { %p5344_p12 = pnand %p5342_p11, %p5339_p10 }
  0x41   :  { %5347 = shalt.err (!%p5344_p12)
}
  0x42   :  { %s5348_s3 = scalar_lea.vmem %s84_s23, 128  ;;  %p5353_p0 = scmp.lt.s32.totalorder %s84_s23, %s84_s23 }
  0x43   :  { %p5349_p13 = scmp.ne.s32.totalorder %s84_s23, %s5348_s3  ;;  %p5354_p1 = scmp.lt.s32.totalorder %s5348_s3, %s5348_s3 }
  0x45   :  { %p5355_p2 = por %p5354_p1, %p5353_p0 }
  0x47   :  { %p5356_p3 = pnand %p5355_p2, %p5349_p13 }
  0x49   :  { %5359 = shalt.err (!%p5356_p3)
}
  0x4a   :  { %86 = dma.hbm_to_vmem [thread:$0]  %s5776_s5, 128, %s84_s23, [#allocation12]  }
  0x4b   :  { %s5360_s14 = scalar_lea.hbm %s5773_s2, 8192 }
  0x4c   :  { %p5361_p4 = scmp.ne.s32.totalorder %s5773_s2, %s5360_s14  ;;  %p5364_p5 = scmp.lt.u32.totalorder %s5360_s14, %s5773_s2 }
  0x4e   :  { %p5366_p6 = pnand %p5364_p5, %p5361_p4 }
  0x50   :  { %5369 = shalt.err (!%p5366_p6)
}
  0x51   :  { %s5370_s20 = scalar_lea.vmem %s5534_s26, 8192  ;;  %p5375_p8 = scmp.lt.s32.totalorder %s5534_s26, %s5534_s26 }
  0x52   :  { %p5371_p7 = scmp.ne.s32.totalorder %s5534_s26, %s5370_s20  ;;  %p5376_p9 = scmp.lt.s32.totalorder %s5370_s20, %s5370_s20 }
  0x54   :  { %p5377_p10 = por %p5376_p9, %p5375_p8 }
  0x56   :  { %p5378_p11 = pnand %p5377_p10, %p5371_p7 }
  0x58   :  { %5381 = shalt.err (!%p5378_p11)
}
  0x59   :  { %s5441_s5 = smov 512   ;;  %s5442_s18 = smov [#allocation10]  }
  0x5a   :  { %54 = dma.hbm_to_vmem [thread:$0]  %s5773_s2, 8192, %s5534_s26, [#allocation6], %s5441_s5, %s5441_s5, %s5435_s17  }
  0x5b   :  { %s70_s22 = sshll.u32 %s5442_s18, 4  ;;  %s5443_s23 = smov [#allocation13]   ;;  %s71_s22 = int_to_ptr.vmem [resolvable:$true] %s70_s22 }
  0x5c   :  { %s93_s25 = sshll.u32 %s5443_s23, 4  ;;  %s5382_s29 = scalar_lea.hbm %s5775_s4, 65536  ;;  %s94_s25 = int_to_ptr.vmem [resolvable:$true] %s93_s25 }
  0x5d   :  { %p5383_p12 = scmp.ne.s32.totalorder %s5775_s4, %s5382_s29  ;;  %p5386_p13 = scmp.lt.u32.totalorder %s5382_s29, %s5775_s4 }
  0x5f   :  { %p5388_p0 = pnand %p5386_p13, %p5383_p12 }
  0x61   :  { %5391 = shalt.err (!%p5388_p0)
}
  0x62   :  { %s5392_s2 = scalar_lea.vmem %s71_s22, 65536  ;;  %p5397_p2 = scmp.lt.s32.totalorder %s71_s22, %s71_s22 }
  0x63   :  { %p5393_p1 = scmp.ne.s32.totalorder %s71_s22, %s5392_s2  ;;  %p5398_p3 = scmp.lt.s32.totalorder %s5392_s2, %s5392_s2 }
  0x65   :  { %p5399_p4 = por %p5398_p3, %p5397_p2 }
  0x67   :  { %p5400_p5 = pnand %p5399_p4, %p5393_p1 }
  0x69   :  { %5403 = shalt.err (!%p5400_p5)
}
  0x6a   :  { %76 = dma.hbm_to_vmem [thread:$0]  %s5775_s4, 65536, %s71_s22, [#allocation9], %s5441_s5, %s5441_s5, %s5435_s17  }
  0x6b   :  { %s5404_s12 = scalar_lea.hbm %s5777_s6, 128 }
  0x6c   :  { %p5405_p6 = scmp.ne.s32.totalorder %s5777_s6, %s5404_s12  ;;  %p5408_p7 = scmp.lt.u32.totalorder %s5404_s12, %s5777_s6 }
  0x6e   :  { %p5410_p8 = pnand %p5408_p7, %p5405_p6 }
  0x70   :  { %5413 = shalt.err (!%p5410_p8)
}
  0x71   :  { %s5414_s16 = scalar_lea.vmem %s94_s25, 128  ;;  %p5419_p10 = scmp.lt.s32.totalorder %s94_s25, %s94_s25 }
  0x72   :  { %p5415_p9 = scmp.ne.s32.totalorder %s94_s25, %s5414_s16  ;;  %p5420_p11 = scmp.lt.s32.totalorder %s5414_s16, %s5414_s16 }
  0x74   :  { %p5421_p12 = por %p5420_p11, %p5419_p10 }
  0x76   :  { %p5422_p13 = pnand %p5421_p12, %p5415_p9 }
  0x78   :  { %5425 = shalt.err (!%p5422_p13)
}
  0x79   :  { %96 = dma.hbm_to_vmem [thread:$0]  %s5777_s6, 128, %s94_s25, [#allocation12]  }
  0x7a   :  { %5426 = dma.done.wait [#allocation4], 128  }
  0x7b   :  { %5427 = vsyncadd [#allocation4], 4294967168 }
  0x7c   :  { %5428 = dma.done.wait [#allocation6], 8320  }
  0x7d   :  { %5429 = vsyncadd [#allocation6], 4294958976 }
  0x7e   :  { %5430 = dma.done.wait [#allocation9], 65664  }
  0x7f   :  { %5431 = vsyncadd [#allocation9], 4294901632 }
  0x80   :  { %5432 = dma.done.wait [#allocation12], 256  }
  0x81   :  { %5433 = vsyncadd [#allocation12], 4294967040  ;;  %v5444_v1 = vmov 0   ;;  %v122_v2 = vld [vmem:[#allocation5] sm:$0xff]  ;;  %v130_v3 = vld [vmem:[#allocation7] sm:$0xff]  ;;  %s5445_s19 = smov 64  }
  0x82   :  { %588 = vmatprep.mubr.bf16.mxu0 %v5444_v1  ;;  %629 = vmatprep.mubr.bf16.mxu1 %v5444_v1  ;;  %v134_v4 = vld [vmem:[#allocation7 + $0x20] sm:$0xff]  ;;  %v131_v6 = vld [vmem:[#allocation7 + $0x8] sm:$0xff]  ;;  %v5593_v37 = vld [vmem:[#allocation7 + $0x10] sm:$0xff]  ;;  %vm127_vm0 = vcmask 523264   ;;  %vm4581_vm1 = vcmask 7168  }
  0x83   :  { %124 = vrot.lane.b32.xlu0 %v122_v2, %s5445_s19  ;;  %v4627_v5 = vcombine.high %v130_v3, %v134_v4  ;;  %v135_v7 = vld [vmem:[#allocation7 + $0x28] sm:$0xff]  ;;  %v4626_v8 = vcombine.low %v130_v3, %v134_v4  ;;  %v138_v9 = vld [vmem:[#allocation7 + $0x40] sm:$0xff]  ;;  %v5595_v38 = vld [vmem:[#allocation7 + $0x30] sm:$0xff] }
  0x84   :  { %v4629_v10 = vcombine.high %v131_v6, %v135_v7  ;;  %v4628_v11 = vcombine.low %v131_v6, %v135_v7  ;;  %v142_v12 = vld [vmem:[#allocation7 + $0x60] sm:$0xff]  ;;  %v139_v13 = vld [vmem:[#allocation7 + $0x48] sm:$0xff]  ;;  %v4630_v40 = vcombine.low %v5593_v37, %v5595_v38  ;;  %v5599_v41 = vld [vmem:[#allocation7 + $0x18] sm:$0xff] }
  0x85   :  { %v143_v14 = vld [vmem:[#allocation7 + $0x68] sm:$0xff]  ;;  %556 = vmatprep.subr.bf16.mxu0 %v4627_v5  ;;  %v4635_v15 = vcombine.high %v138_v9, %v142_v12  ;;  %v146_v17 = vld [vmem:[#allocation7 + $0x80] sm:$0xff]  ;;  %v4634_v20 = vcombine.low %v138_v9, %v142_v12  ;;  %v5601_v42 = vld [vmem:[#allocation7 + $0x38] sm:$0xff] }
  0x86   :  { %v4637_v16 = vcombine.high %v139_v13, %v143_v14  ;;  %v150_v18 = vld [vmem:[#allocation7 + $0xa0] sm:$0xff]  ;;  %v147_v19 = vld [vmem:[#allocation7 + $0x88] sm:$0xff]  ;;  %597 = vmatprep.subr.bf16.mxu1 %v4629_v10  ;;  %557 = vmatpush1.bf16.msra.mxu0 %v4626_v8  ;;  %v4636_v22 = vcombine.low %v139_v13, %v143_v14  ;;  %v4632_v45 = vcombine.low %v5599_v41, %v5601_v42  ;;  %v121_v12 = vld [vmem:[#allocation3] sm:$0xff] }
  0x87   :  { %v151_v21 = vld [vmem:[#allocation7 + $0xa8] sm:$0xff]  ;;  %598 = vmatpush1.bf16.msra.mxu1 %v4628_v11  ;;  %558 = vmatprep.subr.bf16.mxu0 %v4635_v15  ;;  %v4643_v23 = vcombine.high %v146_v17, %v150_v18  ;;  %v154_v25 = vld [vmem:[#allocation7 + $0xc0] sm:$0xff]  ;;  %v4642_v29 = vcombine.low %v146_v17, %v150_v18  ;;  %v4631_v10 = vcombine.high %v5593_v37, %v5595_v38  ;;  %v140_v13 = vld [vmem:[#allocation7 + $0x50] sm:$0xff] }
  0x88   :  { %599 = vmatprep.subr.bf16.mxu1 %v4637_v16  ;;  %v4645_v24 = vcombine.high %v147_v19, %v151_v21  ;;  %v158_v26 = vld [vmem:[#allocation7 + $0xe0] sm:$0xff]  ;;  %v155_v27 = vld [vmem:[#allocation7 + $0xc8] sm:$0xff]  ;;  %v4644_v30 = vcombine.low %v147_v19, %v151_v21  ;;  %v4633_v11 = vcombine.high %v5599_v41, %v5601_v42  ;;  %v144_v14 = vld [vmem:[#allocation7 + $0x70] sm:$0xff] }
  0x89   :  { %v159_v28 = vld [vmem:[#allocation7 + $0xe8] sm:$0xff]  ;;  %v4651_v31 = vcombine.high %v154_v25, %v158_v26  ;;  %v162_v33 = vld [vmem:[#allocation7 + $0x100] sm:$0xff]  ;;  %v4650_v39 = vcombine.low %v154_v25, %v158_v26  ;;  %v141_v15 = vld [vmem:[#allocation7 + $0x58] sm:$0xff]  ;;  %v4638_v26 = vcombine.low %v140_v13, %v144_v14 }
  0x8a   :  { %559 = vmatpush1.bf16.msra.mxu0 %v4634_v20  ;;  %v4653_v32 = vcombine.high %v155_v27, %v159_v28  ;;  %v166_v34 = vld [vmem:[#allocation7 + $0x120] sm:$0xff]  ;;  %v163_v35 = vld [vmem:[#allocation7 + $0x108] sm:$0xff]  ;;  %v4652_v43 = vcombine.low %v155_v27, %v159_v28  ;;  %v145_v16 = vld [vmem:[#allocation7 + $0x78] sm:$0xff]  ;;  %v4639_v20 = vcombine.high %v140_v13, %v144_v14 }
  0x8b   :  { %600 = vmatpush1.bf16.msra.mxu1 %v4636_v22  ;;  %560 = vmatprep.subr.bf16.mxu0 %v4643_v23  ;;  %v167_v36 = vld [vmem:[#allocation7 + $0x128] sm:$0xff]  ;;  %v4659_v44 = vcombine.high %v162_v33, %v166_v34  ;;  %v170_v47 = vld [vmem:[#allocation7 + $0x140] sm:$0xff]  ;;  %v4658_v51 = vcombine.low %v162_v33, %v166_v34  ;;  %v4641_v21 = vcombine.high %v141_v15, %v145_v16  ;;  %v148_v22 = vld [vmem:[#allocation7 + $0x90] sm:$0xff] }
  0x8c   :  { %601 = vmatprep.subr.bf16.mxu1 %v4645_v24  ;;  %v4661_v46 = vcombine.high %v163_v35, %v167_v36  ;;  %v174_v48 = vld [vmem:[#allocation7 + $0x160] sm:$0xff]  ;;  %v171_v49 = vld [vmem:[#allocation7 + $0x148] sm:$0xff]  ;;  %v4660_v52 = vcombine.low %v163_v35, %v167_v36  ;;  %v152_v23 = vld [vmem:[#allocation7 + $0xb0] sm:$0xff]  ;;  %v4640_v27 = vcombine.low %v141_v15, %v145_v16 }
  0x8d   :  { %v175_v50 = vld [vmem:[#allocation7 + $0x168] sm:$0xff]  ;;  %v4667_v53 = vcombine.high %v170_v47, %v174_v48  ;;  %v178_v55 = vld [vmem:[#allocation7 + $0x180] sm:$0xff]  ;;  %v4666_v59 = vcombine.low %v170_v47, %v174_v48  ;;  %v149_v24 = vld [vmem:[#allocation7 + $0x98] sm:$0xff]  ;;  %v4647_v28 = vcombine.high %v148_v22, %v152_v23  ;;  %v4646_v34 = vcombine.low %v148_v22, %v152_v23 }
  0x8e   :  { %561 = vmatpush1.bf16.msra.mxu0 %v4642_v29  ;;  %v4669_v54 = vcombine.high %v171_v49, %v175_v50  ;;  %v182_v56 = vld [vmem:[#allocation7 + $0x1a0] sm:$0xff]  ;;  %v179_v57 = vld [vmem:[#allocation7 + $0x188] sm:$0xff]  ;;  %v4668_v60 = vcombine.low %v171_v49, %v175_v50  ;;  %v153_v25 = vld [vmem:[#allocation7 + $0xb8] sm:$0xff] }
  0x8f   :  { %602 = vmatpush1.bf16.msra.mxu1 %v4644_v30  ;;  %562 = vmatprep.subr.bf16.mxu0 %v4651_v31  ;;  %v183_v58 = vld [vmem:[#allocation7 + $0x1a8] sm:$0xff]  ;;  %v4675_v61 = vcombine.high %v178_v55, %v182_v56  ;;  %v186_v63 = vld [vmem:[#allocation7 + $0x1c0] sm:$0xff]  ;;  %v4674_v4 = vcombine.low %v178_v55, %v182_v56  ;;  %v4649_v29 = vcombine.high %v149_v24, %v153_v25  ;;  %v156_v30 = vld [vmem:[#allocation7 + $0xd0] sm:$0xff] }
  0x90   :  { %603 = vmatprep.subr.bf16.mxu1 %v4653_v32  ;;  %v4677_v62 = vcombine.high %v179_v57, %v183_v58  ;;  %v190_v0 = vld [vmem:[#allocation7 + $0x1e0] sm:$0xff]  ;;  %v187_v2 = vld [vmem:[#allocation7 + $0x1c8] sm:$0xff]  ;;  %v4676_v5 = vcombine.low %v179_v57, %v183_v58  ;;  %v160_v31 = vld [vmem:[#allocation7 + $0xf0] sm:$0xff]  ;;  %v4648_v35 = vcombine.low %v149_v24, %v153_v25 }
  0x91   :  { %v191_v3 = vld [vmem:[#allocation7 + $0x1e8] sm:$0xff]  ;;  %v4683_v6 = vcombine.high %v186_v63, %v190_v0  ;;  %v4682_v8 = vcombine.low %v186_v63, %v190_v0  ;;  %v157_v32 = vld [vmem:[#allocation7 + $0xd8] sm:$0xff]  ;;  %v4655_v36 = vcombine.high %v156_v30, %v160_v31  ;;  %v164_v38 = vld [vmem:[#allocation7 + $0x110] sm:$0xff]  ;;  %v4654_v42 = vcombine.low %v156_v30, %v160_v31 }
  0x92   :  { %563 = vmatpush1.bf16.msra.mxu0 %v4650_v39  ;;  %v4685_v7 = vcombine.high %v187_v2, %v191_v3  ;;  %v4684_v9 = vcombine.low %v187_v2, %v191_v3  ;;  %v161_v33 = vld [vmem:[#allocation7 + $0xf8] sm:$0xff]  ;;  %v168_v39 = vld [vmem:[#allocation7 + $0x130] sm:$0xff]  ;;  %v744_v14 = vld [vmem:[#allocation10 + $0x40] sm:$0xff] }
  0x93   :  { %604 = vmatpush1.bf16.msra.mxu1 %v4652_v43  ;;  %564 = vmatprep.subr.bf16.mxu0 %v4659_v44  ;;  %v4657_v37 = vcombine.high %v157_v32, %v161_v33  ;;  %v169_v41 = vld [vmem:[#allocation7 + $0x138] sm:$0xff]  ;;  %v4656_v43 = vcombine.low %v157_v32, %v161_v33  ;;  %v4663_v44 = vcombine.high %v164_v38, %v168_v39  ;;  %v748_v15 = vld [vmem:[#allocation10 + $0x60] sm:$0xff]  ;;  %v745_v16 = vld [vmem:[#allocation10 + $0x48] sm:$0xff] }
  0x94   :  { %605 = vmatprep.subr.bf16.mxu1 %v4661_v46  ;;  %v176_v46 = vld [vmem:[#allocation7 + $0x170] sm:$0xff]  ;;  %v173_v47 = vld [vmem:[#allocation7 + $0x158] sm:$0xff]  ;;  %v4662_v49 = vcombine.low %v164_v38, %v168_v39  ;;  %v752_v23 = vld [vmem:[#allocation10 + $0x80] sm:$0xff] }
  0x95   :  { %v177_v48 = vld [vmem:[#allocation7 + $0x178] sm:$0xff]  ;;  %v756_v24 = vld [vmem:[#allocation10 + $0xa0] sm:$0xff]  ;;  %v753_v25 = vld [vmem:[#allocation10 + $0x88] sm:$0xff] }
  0x96   :  { %565 = vmatpush1.bf16.msra.mxu0 %v4658_v51  ;;  %v181_v55 = vld [vmem:[#allocation7 + $0x198] sm:$0xff]  ;;  %v4672_v58 = vcombine.low %v173_v47, %v177_v48  ;;  %v760_v31 = vld [vmem:[#allocation10 + $0xc0] sm:$0xff]  ;;  %v761_v33 = vld [vmem:[#allocation10 + $0xc8] sm:$0xff] }
  0x97   :  { %606 = vmatpush1.bf16.msra.mxu1 %v4660_v52  ;;  %566 = vmatprep.subr.bf16.mxu0 %v4667_v53  ;;  %v4673_v52 = vcombine.high %v173_v47, %v177_v48  ;;  %v180_v53 = vld [vmem:[#allocation7 + $0x190] sm:$0xff]  ;;  %v185_v56 = vld [vmem:[#allocation7 + $0x1b8] sm:$0xff]  ;;  %v764_v32 = vld [vmem:[#allocation10 + $0xe0] sm:$0xff] }
  0x98   :  { %607 = vmatprep.subr.bf16.mxu1 %v4669_v54  ;;  %v184_v54 = vld [vmem:[#allocation7 + $0x1b0] sm:$0xff]  ;;  %v189_v63 = vld [vmem:[#allocation7 + $0x1d8] sm:$0xff]  ;;  %v4680_v3 = vcombine.low %v181_v55, %v185_v56  ;;  %v768_v38 = vld [vmem:[#allocation10 + $0x100] sm:$0xff] }
  0x99   :  { %v193_v0 = vld [vmem:[#allocation7 + $0x1f8] sm:$0xff]  ;;  %v4678_v2 = vcombine.low %v180_v53, %v184_v54  ;;  %v772_v39 = vld [vmem:[#allocation10 + $0x120] sm:$0xff]  ;;  %v777_v47 = vld [vmem:[#allocation10 + $0x148] sm:$0xff] }
  0x9a   :  { %567 = vmatpush1.bf16.msra.mxu0 %v4666_v59  ;;  %v4679_v59 = vcombine.high %v180_v53, %v184_v54  ;;  %v781_v48 = vld [vmem:[#allocation10 + $0x168] sm:$0xff]  ;;  %v784_v53 = vld [vmem:[#allocation10 + $0x180] sm:$0xff] }
  0x9b   :  { %608 = vmatpush1.bf16.msra.mxu1 %v4668_v60  ;;  %568 = vmatprep.subr.bf16.mxu0 %v4675_v61  ;;  %v4681_v60 = vcombine.high %v181_v55, %v185_v56  ;;  %v188_v61 = vld [vmem:[#allocation7 + $0x1d0] sm:$0xff]  ;;  %v788_v54 = vld [vmem:[#allocation10 + $0x1a0] sm:$0xff] }
  0x9c   :  { %609 = vmatprep.subr.bf16.mxu1 %v4677_v62  ;;  %v192_v62 = vld [vmem:[#allocation7 + $0x1f0] sm:$0xff] }
  0x9d   :  { %v785_v55 = vld [vmem:[#allocation10 + $0x188] sm:$0xff] }
  0x9e   :  { %569 = vmatpush1.bf16.msra.mxu0 %v4674_v4  ;;  %v4687_v4 = vcombine.high %v188_v61, %v192_v62  ;;  %v789_v56 = vld [vmem:[#allocation10 + $0x1a8] sm:$0xff] }
  0x9f   :  { %610 = vmatpush1.bf16.msra.mxu1 %v4676_v5  ;;  %570 = vmatprep.subr.bf16.mxu0 %v4683_v6  ;;  %v4689_v5 = vcombine.high %v189_v63, %v193_v0  ;;  %v736_v6 = vld [vmem:[#allocation10] sm:$0xff] }
  0xa0   :  { %611 = vmatprep.subr.bf16.mxu1 %v4685_v7  ;;  %v740_v7 = vld [vmem:[#allocation10 + $0x20] sm:$0xff] }
  0xa2   :  { %571 = vmatpush1.bf16.msra.mxu0 %v4682_v8  ;;  %v737_v8 = vld [vmem:[#allocation10 + $0x8] sm:$0xff] }
  0xa3   :  { %612 = vmatpush1.bf16.msra.mxu1 %v4684_v9  ;;  %638 = vmatprep.subr.bf16.mxu0 %v4631_v10  ;;  %v741_v9 = vld [vmem:[#allocation10 + $0x28] sm:$0xff]  ;;  %v4686_v10 = vcombine.low %v188_v61, %v192_v62  ;;  %v792_v61 = vld [vmem:[#allocation10 + $0x1c0] sm:$0xff] }
  0xa4   :  { %679 = vmatprep.subr.bf16.mxu1 %v4633_v11  ;;  %v4688_v11 = vcombine.low %v189_v63, %v193_v0  ;;  %v4693_v13 = vcombine.high %v737_v8, %v741_v9  ;;  %v796_v62 = vld [vmem:[#allocation10 + $0x1e0] sm:$0xff]  ;;  %v793_v63 = vld [vmem:[#allocation10 + $0x1c8] sm:$0xff] }
  0xa5   :  { %v797_v0 = vld [vmem:[#allocation10 + $0x1e8] sm:$0xff] }
  0xf5   :  { %v125_v17 = vpop.permute.xlu0 %124 }
  0xf6   :  { %v128_v18 = vsel %vm127_vm0, %v121_v12, %v125_v17  ;;  %v4691_v12 = vcombine.high %v736_v6, %v740_v7  ;;  %v749_v17 = vld [vmem:[#allocation10 + $0x68] sm:$0xff] }
  0xf7   :  { %v5609_v19 = vpack.c.bf16 %v128_v18, %v128_v18  ;;  %v4690_v18 = vcombine.low %v736_v6, %v740_v7  ;;  %v4701_v22 = vcombine.high %v745_v16, %v749_v17  ;;  %v800_v6 = vld [vmem:[#allocation10 + $0x200] sm:$0xff] }
  0xf8   :  { %v804_v7 = vld [vmem:[#allocation10 + $0x220] sm:$0xff] }
  0xf9   :  { %589 = vmatmul.mubr.bf16.vlgmr.msra.gmra.mrb[0].mxu0 %v5609_v19  ;;  %630 = vmatmul.mubr.bf16.vlgmr.msra.gmra.mrb[0].mxu1 %v5609_v19 }
  0xfa   :  { %639 = vmatpush1.bf16.msra.mxu0 %v4630_v40  ;;  %680 = vmatpush1.bf16.msra.mxu1 %v4632_v45  ;;  %v165_v40 = vld [vmem:[#allocation7 + $0x118] sm:$0xff]  ;;  %v172_v45 = vld [vmem:[#allocation7 + $0x150] sm:$0xff] }
  0xfb   :  { %640 = vmatprep.subr.bf16.mxu0 %v4639_v20  ;;  %681 = vmatprep.subr.bf16.mxu1 %v4641_v21  ;;  %v4664_v50 = vcombine.low %v165_v40, %v169_v41  ;;  %v4671_v51 = vcombine.high %v172_v45, %v176_v46  ;;  %v4670_v57 = vcombine.low %v172_v45, %v176_v46  ;;  %v776_v45 = vld [vmem:[#allocation10 + $0x140] sm:$0xff] }
  0xfc   :  { %670 = vmatprep.mubr.bf16.mxu0 %v5444_v1  ;;  %711 = vmatprep.mubr.bf16.mxu1 %v5444_v1  ;;  %v4665_v1 = vcombine.high %v165_v40, %v169_v41  ;;  %v4692_v20 = vcombine.low %v737_v8, %v741_v9  ;;  %v4699_v21 = vcombine.high %v744_v14, %v748_v15  ;;  %v769_v40 = vld [vmem:[#allocation10 + $0x108] sm:$0xff]  ;;  %v780_v46 = vld [vmem:[#allocation10 + $0x160] sm:$0xff] }
  0xfd   :  { %v773_v41 = vld [vmem:[#allocation10 + $0x128] sm:$0xff] }
  0xfe   :  { %641 = vmatpush1.bf16.msra.mxu0 %v4638_v26  ;;  %682 = vmatpush1.bf16.msra.mxu1 %v4640_v27  ;;  %v757_v26 = vld [vmem:[#allocation10 + $0xa8] sm:$0xff]  ;;  %v4698_v27 = vcombine.low %v744_v14, %v748_v15  ;;  %v808_v14 = vld [vmem:[#allocation10 + $0x240] sm:$0xff] }
  0xff   :  { %642 = vmatprep.subr.bf16.mxu0 %v4647_v28  ;;  %683 = vmatprep.subr.bf16.mxu1 %v4649_v29  ;;  %v4700_v28 = vcombine.low %v745_v16, %v749_v17  ;;  %v4707_v29 = vcombine.high %v752_v23, %v756_v24  ;;  %v4709_v30 = vcombine.high %v753_v25, %v757_v26  ;;  %v801_v8 = vld [vmem:[#allocation10 + $0x208] sm:$0xff]  ;;  %v812_v15 = vld [vmem:[#allocation10 + $0x260] sm:$0xff] }
 0x100   :  { %v805_v9 = vld [vmem:[#allocation10 + $0x228] sm:$0xff] }
 0x101   :  { %v809_v16 = vld [vmem:[#allocation10 + $0x248] sm:$0xff] }
 0x102   :  { %643 = vmatpush1.bf16.msra.mxu0 %v4646_v34  ;;  %684 = vmatpush1.bf16.msra.mxu1 %v4648_v35  ;;  %v765_v34 = vld [vmem:[#allocation10 + $0xe8] sm:$0xff]  ;;  %v4706_v35 = vcombine.low %v752_v23, %v756_v24  ;;  %v816_v23 = vld [vmem:[#allocation10 + $0x280] sm:$0xff] }
 0x103   :  { %644 = vmatprep.subr.bf16.mxu0 %v4655_v36  ;;  %685 = vmatprep.subr.bf16.mxu1 %v4657_v37  ;;  %v4708_v36 = vcombine.low %v753_v25, %v757_v26  ;;  %v4715_v37 = vcombine.high %v760_v31, %v764_v32  ;;  %v813_v17 = vld [vmem:[#allocation10 + $0x268] sm:$0xff]  ;;  %v820_v24 = vld [vmem:[#allocation10 + $0x2a0] sm:$0xff] }
 0x104   :  { %v817_v25 = vld [vmem:[#allocation10 + $0x288] sm:$0xff] }
 0x105   :  { %v821_v26 = vld [vmem:[#allocation10 + $0x2a8] sm:$0xff] }
 0x106   :  { %645 = vmatpush1.bf16.msra.mxu0 %v4654_v42  ;;  %686 = vmatpush1.bf16.msra.mxu1 %v4656_v43  ;;  %v4714_v42 = vcombine.low %v760_v31, %v764_v32  ;;  %v4716_v43 = vcombine.low %v761_v33, %v765_v34  ;;  %v824_v31 = vld [vmem:[#allocation10 + $0x2c0] sm:$0xff] }
 0x107   :  { %646 = vmatprep.subr.bf16.mxu0 %v4663_v44  ;;  %687 = vmatprep.subr.bf16.mxu1 %v4665_v1  ;;  %v4723_v44 = vcombine.high %v768_v38, %v772_v39  ;;  %v4725_v1 = vcombine.high %v769_v40, %v773_v41  ;;  %v828_v32 = vld [vmem:[#allocation10 + $0x2e0] sm:$0xff] }
 0x10a   :  { %647 = vmatpush1.bf16.msra.mxu0 %v4662_v49  ;;  %688 = vmatpush1.bf16.msra.mxu1 %v4664_v50  ;;  %v4722_v49 = vcombine.low %v768_v38, %v772_v39  ;;  %v4724_v50 = vcombine.low %v769_v40, %v773_v41  ;;  %v832_v38 = vld [vmem:[#allocation10 + $0x300] sm:$0xff]  ;;  %v833_v40 = vld [vmem:[#allocation10 + $0x308] sm:$0xff] }
 0x10b   :  { %648 = vmatprep.subr.bf16.mxu0 %v4671_v51  ;;  %689 = vmatprep.subr.bf16.mxu1 %v4673_v52  ;;  %v4731_v51 = vcombine.high %v776_v45, %v780_v46  ;;  %v4733_v52 = vcombine.high %v777_v47, %v781_v48  ;;  %v836_v39 = vld [vmem:[#allocation10 + $0x320] sm:$0xff]  ;;  %v837_v41 = vld [vmem:[#allocation10 + $0x328] sm:$0xff] }
 0x10e   :  { %649 = vmatpush1.bf16.msra.mxu0 %v4670_v57  ;;  %690 = vmatpush1.bf16.msra.mxu1 %v4672_v58  ;;  %v4730_v57 = vcombine.low %v776_v45, %v780_v46  ;;  %v4732_v58 = vcombine.low %v777_v47, %v781_v48  ;;  %v840_v45 = vld [vmem:[#allocation10 + $0x340] sm:$0xff]  ;;  %v841_v47 = vld [vmem:[#allocation10 + $0x348] sm:$0xff] }
 0x10f   :  { %650 = vmatprep.subr.bf16.mxu0 %v4679_v59  ;;  %691 = vmatprep.subr.bf16.mxu1 %v4681_v60  ;;  %v4739_v59 = vcombine.high %v784_v53, %v788_v54  ;;  %v4741_v60 = vcombine.high %v785_v55, %v789_v56  ;;  %v844_v46 = vld [vmem:[#allocation10 + $0x360] sm:$0xff]  ;;  %v845_v48 = vld [vmem:[#allocation10 + $0x368] sm:$0xff] }
 0x112   :  { %651 = vmatpush1.bf16.msra.mxu0 %v4678_v2  ;;  %692 = vmatpush1.bf16.msra.mxu1 %v4680_v3  ;;  %v4738_v2 = vcombine.low %v784_v53, %v788_v54  ;;  %v4740_v3 = vcombine.low %v785_v55, %v789_v56  ;;  %v4794_v53 = vcombine.low %v840_v45, %v844_v46  ;;  %v848_v55 = vld [vmem:[#allocation10 + $0x380] sm:$0xff] }
 0x113   :  { %652 = vmatprep.subr.bf16.mxu0 %v4687_v4  ;;  %693 = vmatprep.subr.bf16.mxu1 %v4689_v5  ;;  %v4747_v4 = vcombine.high %v792_v61, %v796_v62  ;;  %v4749_v5 = vcombine.high %v793_v63, %v797_v0  ;;  %v4796_v54 = vcombine.low %v841_v47, %v845_v48  ;;  %v852_v56 = vld [vmem:[#allocation10 + $0x3a0] sm:$0xff] }
 0x116   :  { %653 = vmatpush1.bf16.msra.mxu0 %v4686_v10  ;;  %694 = vmatpush1.bf16.msra.mxu1 %v4688_v11  ;;  %v4746_v10 = vcombine.low %v792_v61, %v796_v62  ;;  %v4748_v11 = vcombine.low %v793_v63, %v797_v0  ;;  %v4802_v61 = vcombine.low %v848_v55, %v852_v56  ;;  %v856_v63 = vld [vmem:[#allocation10 + $0x3c0] sm:$0xff] }
 0x117   :  { %3850 = vmatprep.subr.bf16.mxu0 %v4691_v12  ;;  %4014 = vmatprep.subr.bf16.mxu1 %v4693_v13  ;;  %v4755_v12 = vcombine.high %v800_v6, %v804_v7  ;;  %v4757_v13 = vcombine.high %v801_v8, %v805_v9  ;;  %v860_v0 = vld [vmem:[#allocation10 + $0x3e0] sm:$0xff] }
 0x119   :  { %671 = vmatmul.mubr.bf16.vlgmr.msra.gmra.mrb[4].mxu0 %v5609_v19  ;;  %712 = vmatmul.mubr.bf16.vlgmr.msra.gmra.mrb[4].mxu1 %v5609_v19  ;;  %v4717_v19 = vcombine.high %v761_v33, %v765_v34  ;;  %v825_v33 = vld [vmem:[#allocation10 + $0x2c8] sm:$0xff] }
 0x11a   :  { %3851 = vmatpush1.bf16.msra.mxu0 %v4690_v18  ;;  %4015 = vmatpush1.bf16.msra.mxu1 %v4692_v20  ;;  %v4754_v18 = vcombine.low %v800_v6, %v804_v7  ;;  %v4756_v20 = vcombine.low %v801_v8, %v805_v9  ;;  %v829_v34 = vld [vmem:[#allocation10 + $0x2e8] sm:$0xff]  ;;  %v4810_v6 = vcombine.low %v856_v63, %v860_v0  ;;  %v864_v8 = vld [vmem:[#allocation10 + $0x400] sm:$0xff] }
 0x11b   :  { %3852 = vmatprep.subr.bf16.mxu0 %v4699_v21  ;;  %4016 = vmatprep.subr.bf16.mxu1 %v4701_v22  ;;  %v4763_v21 = vcombine.high %v808_v14, %v812_v15  ;;  %v4765_v22 = vcombine.high %v809_v16, %v813_v17  ;;  %v868_v9 = vld [vmem:[#allocation10 + $0x420] sm:$0xff] }
 0x11e   :  { %3853 = vmatpush1.bf16.msra.mxu0 %v4698_v27  ;;  %4017 = vmatpush1.bf16.msra.mxu1 %v4700_v28  ;;  %v4762_v27 = vcombine.low %v808_v14, %v812_v15  ;;  %v4764_v28 = vcombine.low %v809_v16, %v813_v17  ;;  %v196_v16 = vlaneseq }
 0x11f   :  { %3854 = vmatprep.subr.bf16.mxu0 %v4707_v29  ;;  %4018 = vmatprep.subr.bf16.mxu1 %v4709_v30  ;;  %v4771_v29 = vcombine.high %v816_v23, %v820_v24  ;;  %v4773_v30 = vcombine.high %v817_v25, %v821_v26 }
 0x120   :  { %v5623_v17 = vshrl.u32 %v196_v16, 7  ;;  %v912_v16 = vld [vmem:[#allocation10 + $0x580] sm:$0xff] }
 0x122   :  { %3855 = vmatpush1.bf16.msra.mxu0 %v4706_v35  ;;  %4019 = vmatpush1.bf16.msra.mxu1 %v4708_v36  ;;  %v4770_v35 = vcombine.low %v816_v23, %v820_v24  ;;  %v4772_v36 = vcombine.low %v817_v25, %v821_v26 }
 0x123   :  { %3856 = vmatprep.subr.bf16.mxu0 %v4715_v37  ;;  %4020 = vmatprep.subr.bf16.mxu1 %v4717_v19  ;;  %v4779_v37 = vcombine.high %v824_v31, %v828_v32  ;;  %v4781_v19 = vcombine.high %v825_v33, %v829_v34 }
 0x126   :  { %3857 = vmatpush1.bf16.msra.mxu0 %v4714_v42  ;;  %4021 = vmatpush1.bf16.msra.mxu1 %v4716_v43  ;;  %v4778_v42 = vcombine.low %v824_v31, %v828_v32  ;;  %v4780_v43 = vcombine.low %v825_v33, %v829_v34 }
 0x127   :  { %3858 = vmatprep.subr.bf16.mxu0 %v4723_v44  ;;  %4022 = vmatprep.subr.bf16.mxu1 %v4725_v1  ;;  %v4787_v44 = vcombine.high %v832_v38, %v836_v39  ;;  %v4789_v1 = vcombine.high %v833_v40, %v837_v41 }
 0x12a   :  { %3859 = vmatpush1.bf16.msra.mxu0 %v4722_v49  ;;  %4023 = vmatpush1.bf16.msra.mxu1 %v4724_v50  ;;  %v4786_v49 = vcombine.low %v832_v38, %v836_v39  ;;  %v4788_v50 = vcombine.low %v833_v40, %v837_v41  ;;  %v872_v38 = vld [vmem:[#allocation10 + $0x440] sm:$0xff]  ;;  %v873_v41 = vld [vmem:[#allocation10 + $0x448] sm:$0xff] }
 0x12b   :  { %3860 = vmatprep.subr.bf16.mxu0 %v4731_v51  ;;  %4024 = vmatprep.subr.bf16.mxu1 %v4733_v52  ;;  %v4795_v51 = vcombine.high %v840_v45, %v844_v46  ;;  %v4797_v52 = vcombine.high %v841_v47, %v845_v48  ;;  %v876_v40 = vld [vmem:[#allocation10 + $0x460] sm:$0xff]  ;;  %v881_v48 = vld [vmem:[#allocation10 + $0x488] sm:$0xff] }
 0x12c   :  { %v4827_v45 = vcombine.high %v872_v38, %v876_v40  ;;  %v884_v47 = vld [vmem:[#allocation10 + $0x4a0] sm:$0xff] }
 0x12e   :  { %3861 = vmatpush1.bf16.msra.mxu0 %v4730_v57  ;;  %4025 = vmatpush1.bf16.msra.mxu1 %v4732_v58  ;;  %v849_v57 = vld [vmem:[#allocation10 + $0x388] sm:$0xff]  ;;  %v4803_v58 = vcombine.high %v848_v55, %v852_v56  ;;  %v888_v55 = vld [vmem:[#allocation10 + $0x4c0] sm:$0xff] }
 0x12f   :  { %3862 = vmatprep.subr.bf16.mxu0 %v4739_v59  ;;  %4026 = vmatprep.subr.bf16.mxu1 %v4741_v60  ;;  %v853_v59 = vld [vmem:[#allocation10 + $0x3a8] sm:$0xff]  ;;  %v892_v56 = vld [vmem:[#allocation10 + $0x4e0] sm:$0xff] }
 0x130   :  { %v4805_v60 = vcombine.high %v849_v57, %v853_v59  ;;  %v4804_v62 = vcombine.low %v849_v57, %v853_v59  ;;  %v889_v57 = vld [vmem:[#allocation10 + $0x4c8] sm:$0xff] }
 0x132   :  { %3863 = vmatpush1.bf16.msra.mxu0 %v4738_v2  ;;  %4027 = vmatpush1.bf16.msra.mxu1 %v4740_v3  ;;  %v857_v2 = vld [vmem:[#allocation10 + $0x3c8] sm:$0xff]  ;;  %v4811_v3 = vcombine.high %v856_v63, %v860_v0  ;;  %v896_v63 = vld [vmem:[#allocation10 + $0x500] sm:$0xff] }
 0x133   :  { %3864 = vmatprep.subr.bf16.mxu0 %v4747_v4  ;;  %4028 = vmatprep.subr.bf16.mxu1 %v4749_v5  ;;  %v861_v4 = vld [vmem:[#allocation10 + $0x3e8] sm:$0xff]  ;;  %v900_v0 = vld [vmem:[#allocation10 + $0x520] sm:$0xff] }
 0x134   :  { %v4813_v5 = vcombine.high %v857_v2, %v861_v4  ;;  %v4812_v7 = vcombine.low %v857_v2, %v861_v4  ;;  %v897_v2 = vld [vmem:[#allocation10 + $0x508] sm:$0xff]  ;;  %v4842_v4 = vcombine.low %v888_v55, %v892_v56 }
 0x136   :  { %3865 = vmatpush1.bf16.msra.mxu0 %v4746_v10  ;;  %4029 = vmatpush1.bf16.msra.mxu1 %v4748_v11  ;;  %v865_v10 = vld [vmem:[#allocation10 + $0x408] sm:$0xff]  ;;  %v4819_v11 = vcombine.high %v864_v8, %v868_v9 }
 0x137   :  { %3866 = vmatprep.subr.bf16.mxu0 %v4755_v12  ;;  %4030 = vmatprep.subr.bf16.mxu1 %v4757_v13  ;;  %v869_v12 = vld [vmem:[#allocation10 + $0x428] sm:$0xff]  ;;  %v4818_v13 = vcombine.low %v864_v8, %v868_v9  ;;  %v904_v8 = vld [vmem:[#allocation10 + $0x540] sm:$0xff] }
 0x138   :  { %v4820_v14 = vcombine.low %v865_v10, %v869_v12  ;;  %v4821_v15 = vcombine.high %v865_v10, %v869_v12  ;;  %v908_v9 = vld [vmem:[#allocation10 + $0x560] sm:$0xff]  ;;  %v905_v10 = vld [vmem:[#allocation10 + $0x548] sm:$0xff]  ;;  %v4850_v12 = vcombine.low %v896_v63, %v900_v0 }
 0x13a   :  { %3867 = vmatpush1.bf16.msra.mxu0 %v4754_v18  ;;  %4031 = vmatpush1.bf16.msra.mxu1 %v4756_v20  ;;  %v5626_v18 = vsub.s32 0, %v5623_v17  ;;  %v5628_v20 = vld [vmem:[#allocation8] sm:$0xff] }
 0x13b   :  { %3868 = vmatprep.subr.bf16.mxu0 %v4763_v21  ;;  %4032 = vmatprep.subr.bf16.mxu1 %v4765_v22  ;;  %v5631_v21 = vsub.s32 1, %v5623_v17  ;;  %v5634_v22 = vsub.s32 3, %v5623_v17 }
 0x13c   :  { %v199_v23 = vrot.slane %v5628_v20, %v5626_v18 }
 0x13d   :  { %v203_v24 = vrot.slane %v5628_v20, %v5631_v21  ;;  %v211_v25 = vrot.slane %v5628_v20, %v5634_v22 }
 0x13e   :  { %3869 = vmatpush1.bf16.msra.mxu0 %v4762_v27  ;;  %4033 = vmatpush1.bf16.msra.mxu1 %v4764_v28 }
 0x13f   :  { %3870 = vmatprep.subr.bf16.mxu0 %v4771_v29  ;;  %4034 = vmatprep.subr.bf16.mxu1 %v4773_v30 }
 0x142   :  { %3871 = vmatpush1.bf16.msra.mxu0 %v4770_v35  ;;  %4035 = vmatpush1.bf16.msra.mxu1 %v4772_v36 }
 0x143   :  { %3872 = vmatprep.subr.bf16.mxu0 %v4779_v37  ;;  %4036 = vmatprep.subr.bf16.mxu1 %v4781_v19 }
 0x146   :  { %3873 = vmatpush1.bf16.msra.mxu0 %v4778_v42  ;;  %4037 = vmatpush1.bf16.msra.mxu1 %v4780_v43  ;;  %v877_v42 = vld [vmem:[#allocation10 + $0x468] sm:$0xff] }
 0x147   :  { %3874 = vmatprep.subr.bf16.mxu0 %v4787_v44  ;;  %4038 = vmatprep.subr.bf16.mxu1 %v4789_v1  ;;  %v880_v1 = vld [vmem:[#allocation10 + $0x480] sm:$0xff]  ;;  %v4829_v46 = vcombine.high %v873_v41, %v877_v42 }
 0x148   :  { %v4834_v59 = vcombine.low %v880_v1, %v884_v47 }
 0x14a   :  { %3875 = vmatpush1.bf16.msra.mxu0 %v4786_v49  ;;  %4039 = vmatpush1.bf16.msra.mxu1 %v4788_v50  ;;  %v885_v49 = vld [vmem:[#allocation10 + $0x4a8] sm:$0xff] }
 0x14b   :  { %3876 = vmatprep.subr.bf16.mxu0 %v4795_v51  ;;  %4040 = vmatprep.subr.bf16.mxu1 %v4797_v52  ;;  %v4826_v51 = vcombine.low %v872_v38, %v876_v40  ;;  %v4828_v52 = vcombine.low %v873_v41, %v877_v42  ;;  %v928_v38 = vld [vmem:[#allocation10 + $0x600] sm:$0xff]  ;;  %v929_v42 = vld [vmem:[#allocation10 + $0x608] sm:$0xff] }
 0x14c   :  { %v932_v41 = vld [vmem:[#allocation10 + $0x620] sm:$0xff] }
 0x14e   :  { %3877 = vmatpush1.bf16.msra.mxu0 %v4794_v53  ;;  %4041 = vmatpush1.bf16.msra.mxu1 %v4796_v54  ;;  %v4835_v53 = vcombine.high %v880_v1, %v884_v47  ;;  %v4837_v54 = vcombine.high %v881_v48, %v885_v49  ;;  %v933_v1 = vld [vmem:[#allocation10 + $0x628] sm:$0xff] }
 0x14f   :  { %3878 = vmatprep.subr.bf16.mxu0 %v4803_v58  ;;  %4042 = vmatprep.subr.bf16.mxu1 %v4805_v60  ;;  %v893_v58 = vld [vmem:[#allocation10 + $0x4e8] sm:$0xff]  ;;  %v4836_v60 = vcombine.low %v881_v48, %v885_v49 }
 0x152   :  { %3879 = vmatpush1.bf16.msra.mxu0 %v4802_v61  ;;  %4043 = vmatpush1.bf16.msra.mxu1 %v4804_v62  ;;  %v4843_v61 = vcombine.high %v888_v55, %v892_v56  ;;  %v4845_v62 = vcombine.high %v889_v57, %v893_v58  ;;  %v4885_v55 = vcombine.high %v929_v42, %v933_v1  ;;  %v936_v56 = vld [vmem:[#allocation10 + $0x640] sm:$0xff] }
 0x153   :  { %3880 = vmatprep.subr.bf16.mxu0 %v4811_v3  ;;  %4044 = vmatprep.subr.bf16.mxu1 %v4813_v5  ;;  %v901_v3 = vld [vmem:[#allocation10 + $0x528] sm:$0xff]  ;;  %v4844_v5 = vcombine.low %v889_v57, %v893_v58  ;;  %v940_v57 = vld [vmem:[#allocation10 + $0x660] sm:$0xff] }
 0x154   :  { %v937_v58 = vld [vmem:[#allocation10 + $0x648] sm:$0xff] }
 0x156   :  { %3881 = vmatpush1.bf16.msra.mxu0 %v4810_v6  ;;  %4045 = vmatpush1.bf16.msra.mxu1 %v4812_v7  ;;  %v4851_v6 = vcombine.high %v896_v63, %v900_v0  ;;  %v4853_v7 = vcombine.high %v897_v2, %v901_v3  ;;  %v944_v0 = vld [vmem:[#allocation10 + $0x680] sm:$0xff] }
 0x157   :  { %3891 = vmatprep.subr.bf16.mxu0 %v4819_v11  ;;  %4055 = vmatprep.subr.bf16.mxu1 %v4821_v15  ;;  %v909_v11 = vld [vmem:[#allocation10 + $0x568] sm:$0xff] }
 0x158   :  { %v4861_v15 = vcombine.high %v905_v10, %v909_v11 }
 0x1cc   :  { %v590_v26 = vpop.f32.mrb[0].mxu0  ;;  %v5642_v27 = vpop.f32.mrb[0].mxu1 }
 0x1cd   :  { %v591_v28 = vadd.f32 %v590_v26, %v199_v23  ;;  %v592_v29 = vpop.f32.mrb[1].mxu0  ;;  %v633_v30 = vpop.f32.mrb[1].mxu1  ;;  %v916_v23 = vld [vmem:[#allocation10 + $0x5a0] sm:$0xff]  ;;  %v4858_v26 = vcombine.low %v904_v8, %v908_v9 }
 0x1ce   :  { %v593_v31 = vadd.f32 %v592_v29, %v203_v24  ;;  %v634_v32 = vadd.f32 %v633_v30, %v211_v25  ;;  %v594_v33 = vpop.f32.mrb[2].mxu0  ;;  %v635_v34 = vpop.f32.mrb[2].mxu1  ;;  %v913_v24 = vld [vmem:[#allocation10 + $0x588] sm:$0xff]  ;;  %v4867_v29 = vcombine.high %v912_v16, %v916_v23 }
 0x1cf   :  { %v720_v35 = vmax.f32 %v591_v28, 0.0  ;;  %v595_v36 = vpop.f32.mrb[3].mxu0  ;;  %v636_v37 = vpop.f32.mrb[3].mxu1  ;;  %v917_v25 = vld [vmem:[#allocation10 + $0x5a8] sm:$0xff]  ;;  %v4860_v28 = vcombine.low %v905_v10, %v909_v11  ;;  %v956_v10 = vld [vmem:[#allocation10 + $0x6e0] sm:$0xff] }
 0x1d0   :  { %v721_v19 = vmax.f32 %v593_v31, 0.0  ;;  %v723_v39 = vmax.f32 %v634_v32, 0.0  ;;  %v4869_v30 = vcombine.high %v913_v24, %v917_v25  ;;  %v920_v31 = vld [vmem:[#allocation10 + $0x5c0] sm:$0xff]  ;;  %v921_v33 = vld [vmem:[#allocation10 + $0x5c8] sm:$0xff]  ;;  %v4868_v36 = vcombine.low %v913_v24, %v917_v25 }
 0x1d1   :  { %v5646_v44 = vpack.c.bf16 %v720_v35, %v720_v35  ;;  %v924_v32 = vld [vmem:[#allocation10 + $0x5e0] sm:$0xff]  ;;  %v925_v34 = vld [vmem:[#allocation10 + $0x5e8] sm:$0xff]  ;;  %v4866_v35 = vcombine.low %v912_v16, %v916_v23 }
 0x1d2   :  { %v5644_v43 = vpack.c.bf16 %v721_v19, %v721_v19  ;;  %v5650_v50 = vpack.c.bf16 %v723_v39, %v723_v39  ;;  %v4875_v37 = vcombine.high %v920_v31, %v924_v32  ;;  %v4877_v19 = vcombine.high %v921_v33, %v925_v34  ;;  %v953_v11 = vld [vmem:[#allocation10 + $0x6c8] sm:$0xff]  ;;  %v960_v23 = vld [vmem:[#allocation10 + $0x700] sm:$0xff] }
 0x1d3   :  { %v4874_v49 = vcombine.low %v920_v31, %v924_v32  ;;  %v964_v24 = vld [vmem:[#allocation10 + $0x720] sm:$0xff]  ;;  %v961_v25 = vld [vmem:[#allocation10 + $0x708] sm:$0xff] }
 0x1d4   :  { %3882 = vmatprep.mubr.bf16.mxu0 %v5644_v43  ;;  %4046 = vmatprep.mubr.bf16.mxu1 %v5644_v43  ;;  %v968_v32 = vld [vmem:[#allocation10 + $0x740] sm:$0xff] }
 0x1d5   :  { %3883 = vmatmul.mubr.bf16.vlgmr.msra.gmra.mrb[8].mxu0 %v5646_v44  ;;  %4047 = vmatmul.mubr.bf16.vlgmr.msra.gmra.mrb[8].mxu1 %v5646_v44 }
 0x1d6   :  { %3892 = vmatpush1.bf16.msra.mxu0 %v4818_v13  ;;  %4056 = vmatpush1.bf16.msra.mxu1 %v4820_v14  ;;  %v4852_v13 = vcombine.low %v897_v2, %v901_v3  ;;  %v4859_v14 = vcombine.high %v904_v8, %v908_v9  ;;  %v948_v2 = vld [vmem:[#allocation10 + $0x6a0] sm:$0xff]  ;;  %v945_v3 = vld [vmem:[#allocation10 + $0x688] sm:$0xff] }
 0x1d7   :  { %3923 = vmatprep.mubr.bf16.mxu0 %v5650_v50  ;;  %4087 = vmatprep.mubr.bf16.mxu1 %v5650_v50  ;;  %v952_v9 = vld [vmem:[#allocation10 + $0x6c0] sm:$0xff] }
 0x1d8   :  { %3893 = vmatprep.subr.bf16.mxu0 %v4827_v45  ;;  %4057 = vmatprep.subr.bf16.mxu1 %v4829_v46 }
 0x1da   :  { %3894 = vmatpush1.bf16.msra.mxu0 %v4826_v51  ;;  %4058 = vmatpush1.bf16.msra.mxu1 %v4828_v52  ;;  %v4876_v51 = vcombine.low %v921_v33, %v925_v34  ;;  %v972_v33 = vld [vmem:[#allocation10 + $0x760] sm:$0xff]  ;;  %v969_v34 = vld [vmem:[#allocation10 + $0x748] sm:$0xff] }
 0x1db   :  { %3895 = vmatprep.subr.bf16.mxu0 %v4835_v53  ;;  %4059 = vmatprep.subr.bf16.mxu1 %v4837_v54  ;;  %v4883_v54 = vcombine.high %v928_v38, %v932_v41 }
 0x1de   :  { %3896 = vmatpush1.bf16.msra.mxu0 %v4834_v59  ;;  %4060 = vmatpush1.bf16.msra.mxu1 %v4836_v60  ;;  %v941_v59 = vld [vmem:[#allocation10 + $0x668] sm:$0xff]  ;;  %v4882_v60 = vcombine.low %v928_v38, %v932_v41  ;;  %v4923_v38 = vcombine.high %v968_v32, %v972_v33 }
 0x1df   :  { %3897 = vmatprep.subr.bf16.mxu0 %v4843_v61  ;;  %4061 = vmatprep.subr.bf16.mxu1 %v4845_v62  ;;  %v4884_v61 = vcombine.low %v929_v42, %v933_v1  ;;  %v4891_v62 = vcombine.high %v936_v56, %v940_v57  ;;  %v4893_v63 = vcombine.high %v937_v58, %v941_v59  ;;  %v976_v42 = vld [vmem:[#allocation10 + $0x780] sm:$0xff]  ;;  %v5668_v1 = vsub.s32 5, %v5623_v17 }
 0x1e2   :  { %3898 = vmatpush1.bf16.msra.mxu0 %v4842_v4  ;;  %4062 = vmatpush1.bf16.msra.mxu1 %v4844_v5  ;;  %v949_v4 = vld [vmem:[#allocation10 + $0x6a8] sm:$0xff]  ;;  %v4890_v5 = vcombine.low %v936_v56, %v940_v57  ;;  %v984_v56 = vld [vmem:[#allocation10 + $0x7c0] sm:$0xff]  ;;  %v219_v57 = vrot.slane %v5628_v20, %v5668_v1 }
 0x1e3   :  { %3899 = vmatprep.subr.bf16.mxu0 %v4851_v6  ;;  %4063 = vmatprep.subr.bf16.mxu1 %v4853_v7  ;;  %v4892_v6 = vcombine.low %v937_v58, %v941_v59  ;;  %v4899_v7 = vcombine.high %v944_v0, %v948_v2  ;;  %v4901_v8 = vcombine.high %v945_v3, %v949_v4  ;;  %v988_v58 = vld [vmem:[#allocation10 + $0x7e0] sm:$0xff]  ;;  %v985_v59 = vld [vmem:[#allocation10 + $0x7c8] sm:$0xff] }
 0x1e6   :  { %3900 = vmatpush1.bf16.msra.mxu0 %v4850_v12  ;;  %4064 = vmatpush1.bf16.msra.mxu1 %v4852_v13  ;;  %v957_v12 = vld [vmem:[#allocation10 + $0x6e8] sm:$0xff]  ;;  %v4898_v13 = vcombine.low %v944_v0, %v948_v2  ;;  %v4939_v0 = vcombine.high %v984_v56, %v988_v58 }
 0x1e7   :  { %3901 = vmatprep.subr.bf16.mxu0 %v4859_v14  ;;  %4065 = vmatprep.subr.bf16.mxu1 %v4861_v15  ;;  %v4900_v14 = vcombine.low %v945_v3, %v949_v4  ;;  %v4907_v15 = vcombine.high %v952_v9, %v956_v10  ;;  %v4909_v16 = vcombine.high %v953_v11, %v957_v12  ;;  %v992_v3 = vld [vmem:[#allocation10 + $0x800] sm:$0xff] }
 0x1ea   :  { %3902 = vmatpush1.bf16.msra.mxu0 %v4858_v26  ;;  %4066 = vmatpush1.bf16.msra.mxu1 %v4860_v28  ;;  %v965_v26 = vld [vmem:[#allocation10 + $0x728] sm:$0xff]  ;;  %v4906_v28 = vcombine.low %v952_v9, %v956_v10 }
 0x1eb   :  { %3903 = vmatprep.subr.bf16.mxu0 %v4867_v29  ;;  %4067 = vmatprep.subr.bf16.mxu1 %v4869_v30  ;;  %v4908_v29 = vcombine.low %v953_v11, %v957_v12  ;;  %v4915_v30 = vcombine.high %v960_v23, %v964_v24  ;;  %v4917_v31 = vcombine.high %v961_v25, %v965_v26 }
 0x1ec   :  { %v5656_v39 = vpop.f32.mrb[4].mxu0  ;;  %v5658_v40 = vpop.f32.mrb[4].mxu1 }
 0x1ed   :  { %v5660_v45 = vpop.f32.mrb[5].mxu0  ;;  %v5662_v46 = vpop.f32.mrb[5].mxu1 }
 0x1ee   :  { %v676_v47 = vpop.f32.mrb[6].mxu0  ;;  %v717_v48 = vpop.f32.mrb[6].mxu1  ;;  %3904 = vmatpush1.bf16.msra.mxu0 %v4866_v35  ;;  %4068 = vmatpush1.bf16.msra.mxu1 %v4868_v36  ;;  %v973_v35 = vld [vmem:[#allocation10 + $0x768] sm:$0xff]  ;;  %v4914_v36 = vcombine.low %v960_v23, %v964_v24  ;;  %v675_v4 = vadd.f32 %v5660_v45, %v219_v57 }
 0x1ef   :  { %v677_v52 = vpop.f32.mrb[7].mxu0  ;;  %v718_v53 = vpop.f32.mrb[7].mxu1  ;;  %3905 = vmatprep.subr.bf16.mxu0 %v4875_v37  ;;  %4069 = vmatprep.subr.bf16.mxu1 %v4877_v19  ;;  %v4916_v37 = vcombine.low %v961_v25, %v965_v26  ;;  %v5665_v19 = vsub.s32 2, %v5623_v17  ;;  %v4925_v41 = vcombine.high %v969_v34, %v973_v35  ;;  %v980_v47 = vld [vmem:[#allocation10 + $0x7a0] sm:$0xff]  ;;  %v977_v48 = vld [vmem:[#allocation10 + $0x788] sm:$0xff] }
 0x1f0   :  { %v4924_v52 = vcombine.low %v969_v34, %v973_v35 }
 0x1f1   :  { %v207_v53 = vrot.slane %v5628_v20, %v5665_v19 }
 0x1f2   :  { %3906 = vmatpush1.bf16.msra.mxu0 %v4874_v49  ;;  %4070 = vmatpush1.bf16.msra.mxu1 %v4876_v51  ;;  %v981_v49 = vld [vmem:[#allocation10 + $0x7a8] sm:$0xff]  ;;  %v4922_v51 = vcombine.low %v968_v32, %v972_v33 }
 0x1f3   :  { %3907 = vmatprep.subr.bf16.mxu0 %v4883_v54  ;;  %4071 = vmatprep.subr.bf16.mxu1 %v4885_v55  ;;  %v4931_v54 = vcombine.high %v976_v42, %v980_v47  ;;  %v4933_v55 = vcombine.high %v977_v48, %v981_v49  ;;  %v1013_v32 = vld [vmem:[#allocation10 + $0x8a8] sm:$0xff] }
 0x1f6   :  { %3908 = vmatpush1.bf16.msra.mxu0 %v4882_v60  ;;  %4072 = vmatpush1.bf16.msra.mxu1 %v4884_v61  ;;  %v989_v60 = vld [vmem:[#allocation10 + $0x7e8] sm:$0xff]  ;;  %v4930_v61 = vcombine.low %v976_v42, %v980_v47 }
 0x1f7   :  { %3909 = vmatprep.subr.bf16.mxu0 %v4891_v62  ;;  %4073 = vmatprep.subr.bf16.mxu1 %v4893_v63  ;;  %v4932_v62 = vcombine.low %v977_v48, %v981_v49  ;;  %v632_v63 = vadd.f32 %v5642_v27, %v207_v53  ;;  %v4941_v2 = vcombine.high %v985_v59, %v989_v60  ;;  %v725_v27 = vmax.f32 %v675_v4, 0.0  ;;  %v1021_v42 = vld [vmem:[#allocation10 + $0x8e8] sm:$0xff]  ;;  %v1028_v53 = vld [vmem:[#allocation10 + $0x920] sm:$0xff] }
 0x1f8   :  { %v4940_v9 = vcombine.low %v985_v59, %v989_v60  ;;  %v1032_v60 = vld [vmem:[#allocation10 + $0x940] sm:$0xff] }
 0x1f9   :  { %v722_v10 = vmax.f32 %v632_v63, 0.0  ;;  %v5678_v25 = vpack.c.bf16 %v725_v27, %v725_v27  ;;  %v1037_v63 = vld [vmem:[#allocation10 + $0x968] sm:$0xff]  ;;  %v1048_v27 = vld [vmem:[#allocation10 + $0x9c0] sm:$0xff] }
 0x1fa   :  { %3910 = vmatpush1.bf16.msra.mxu0 %v4890_v5  ;;  %4074 = vmatpush1.bf16.msra.mxu1 %v4892_v6  ;;  %v996_v5 = vld [vmem:[#allocation10 + $0x820] sm:$0xff]  ;;  %v993_v6 = vld [vmem:[#allocation10 + $0x808] sm:$0xff] }
 0x1fb   :  { %3911 = vmatprep.subr.bf16.mxu0 %v4899_v7  ;;  %4075 = vmatprep.subr.bf16.mxu1 %v4901_v8  ;;  %v997_v7 = vld [vmem:[#allocation10 + $0x828] sm:$0xff]  ;;  %v4938_v8 = vcombine.low %v984_v56, %v988_v58  ;;  %v4947_v11 = vcombine.high %v992_v3, %v996_v5  ;;  %v4946_v45 = vcombine.low %v992_v3, %v996_v5  ;;  %v1040_v5 = vld [vmem:[#allocation10 + $0x980] sm:$0xff] }
 0x1fc   :  { %v4949_v12 = vcombine.high %v993_v6, %v997_v7  ;;  %v5676_v23 = vpack.c.bf16 %v722_v10, %v722_v10  ;;  %v4948_v24 = vcombine.low %v993_v6, %v997_v7  ;;  %v1044_v6 = vld [vmem:[#allocation10 + $0x9a0] sm:$0xff]  ;;  %v1041_v7 = vld [vmem:[#allocation10 + $0x988] sm:$0xff] }
 0x1fe   :  { %3912 = vmatpush1.bf16.msra.mxu0 %v4898_v13  ;;  %4076 = vmatpush1.bf16.msra.mxu1 %v4900_v14  ;;  %v1000_v13 = vld [vmem:[#allocation10 + $0x840] sm:$0xff] }
 0x1ff   :  { %3913 = vmatprep.subr.bf16.mxu0 %v4907_v15  ;;  %4077 = vmatprep.subr.bf16.mxu1 %v4909_v16  ;;  %v1004_v14 = vld [vmem:[#allocation10 + $0x860] sm:$0xff]  ;;  %v1001_v15 = vld [vmem:[#allocation10 + $0x848] sm:$0xff] }
 0x200   :  { %v1005_v16 = vld [vmem:[#allocation10 + $0x868] sm:$0xff]  ;;  %v4955_v26 = vcombine.high %v1000_v13, %v1004_v14  ;;  %v4954_v33 = vcombine.low %v1000_v13, %v1004_v14  ;;  %v1052_v13 = vld [vmem:[#allocation10 + $0x9e0] sm:$0xff] }
 0x201   :  { %v4956_v34 = vcombine.low %v1001_v15, %v1005_v16  ;;  %v1049_v14 = vld [vmem:[#allocation10 + $0x9c8] sm:$0xff] }
 0x202   :  { %3914 = vmatpush1.bf16.msra.mxu0 %v4906_v28  ;;  %4078 = vmatpush1.bf16.msra.mxu1 %v4908_v29  ;;  %v4957_v28 = vcombine.high %v1001_v15, %v1005_v16  ;;  %v1008_v29 = vld [vmem:[#allocation10 + $0x880] sm:$0xff]  ;;  %v1053_v15 = vld [vmem:[#allocation10 + $0x9e8] sm:$0xff]  ;;  %v4994_v16 = vcombine.low %v1040_v5, %v1044_v6 }
 0x203   :  { %3915 = vmatprep.subr.bf16.mxu0 %v4915_v30  ;;  %4079 = vmatprep.subr.bf16.mxu1 %v4917_v31  ;;  %v1012_v30 = vld [vmem:[#allocation10 + $0x8a0] sm:$0xff]  ;;  %v1009_v31 = vld [vmem:[#allocation10 + $0x888] sm:$0xff] }
 0x204   :  { %v4963_v35 = vcombine.high %v1008_v29, %v1012_v30  ;;  %v4962_v47 = vcombine.low %v1008_v29, %v1012_v30  ;;  %v4964_v48 = vcombine.low %v1009_v31, %v1013_v32  ;;  %v1060_v29 = vld [vmem:[#allocation10 + $0xa20] sm:$0xff]  ;;  %v1057_v30 = vld [vmem:[#allocation10 + $0xa08] sm:$0xff] }
 0x206   :  { %3916 = vmatpush1.bf16.msra.mxu0 %v4914_v36  ;;  %4080 = vmatpush1.bf16.msra.mxu1 %v4916_v37  ;;  %v4965_v36 = vcombine.high %v1009_v31, %v1013_v32  ;;  %v1016_v37 = vld [vmem:[#allocation10 + $0x8c0] sm:$0xff]  ;;  %v1061_v31 = vld [vmem:[#allocation10 + $0xa28] sm:$0xff]  ;;  %v5002_v32 = vcombine.low %v1048_v27, %v1052_v13 }
 0x207   :  { %3917 = vmatprep.subr.bf16.mxu0 %v4923_v38  ;;  %4081 = vmatprep.subr.bf16.mxu1 %v4925_v41  ;;  %v1020_v38 = vld [vmem:[#allocation10 + $0x8e0] sm:$0xff]  ;;  %v1017_v41 = vld [vmem:[#allocation10 + $0x8c8] sm:$0xff] }
 0x208   :  { %v4971_v49 = vcombine.high %v1016_v37, %v1020_v38  ;;  %v4970_v56 = vcombine.low %v1016_v37, %v1020_v38  ;;  %v4972_v57 = vcombine.low %v1017_v41, %v1021_v42  ;;  %v1068_v37 = vld [vmem:[#allocation10 + $0xa60] sm:$0xff]  ;;  %v1065_v38 = vld [vmem:[#allocation10 + $0xa48] sm:$0xff] }
 0x20a   :  { %3918 = vmatpush1.bf16.msra.mxu0 %v4922_v51  ;;  %4082 = vmatpush1.bf16.msra.mxu1 %v4924_v52  ;;  %v4973_v51 = vcombine.high %v1017_v41, %v1021_v42  ;;  %v1024_v52 = vld [vmem:[#allocation10 + $0x900] sm:$0xff]  ;;  %v1069_v41 = vld [vmem:[#allocation10 + $0xa68] sm:$0xff] }
 0x20b   :  { %3919 = vmatprep.subr.bf16.mxu0 %v4931_v54  ;;  %4083 = vmatprep.subr.bf16.mxu1 %v4933_v55  ;;  %v1025_v54 = vld [vmem:[#allocation10 + $0x908] sm:$0xff]  ;;  %v4979_v58 = vcombine.high %v1024_v52, %v1028_v53 }
 0x20c   :  { %v1029_v55 = vld [vmem:[#allocation10 + $0x928] sm:$0xff] }
 0x20d   :  { %v4981_v59 = vcombine.high %v1025_v54, %v1029_v55 }
 0x20e   :  { %3920 = vmatpush1.bf16.msra.mxu0 %v4930_v61  ;;  %4084 = vmatpush1.bf16.msra.mxu1 %v4932_v62  ;;  %v1036_v61 = vld [vmem:[#allocation10 + $0x960] sm:$0xff]  ;;  %v1033_v62 = vld [vmem:[#allocation10 + $0x948] sm:$0xff] }
 0x20f   :  { %3921 = vmatprep.subr.bf16.mxu0 %v4939_v0  ;;  %4085 = vmatprep.subr.bf16.mxu1 %v4941_v2  ;;  %v4978_v0 = vcombine.low %v1024_v52, %v1028_v53  ;;  %v4980_v2 = vcombine.low %v1025_v54, %v1029_v55  ;;  %v4987_v3 = vcombine.high %v1032_v60, %v1036_v61  ;;  %v1076_v52 = vld [vmem:[#allocation10 + $0xaa0] sm:$0xff]  ;;  %v1073_v53 = vld [vmem:[#allocation10 + $0xa88] sm:$0xff] }
 0x210   :  { %v4989_v4 = vcombine.high %v1033_v62, %v1037_v63  ;;  %v4988_v10 = vcombine.low %v1033_v62, %v1037_v63  ;;  %v1077_v54 = vld [vmem:[#allocation10 + $0xaa8] sm:$0xff] }
 0x211   :  { %v1085_v62 = vld [vmem:[#allocation10 + $0xae8] sm:$0xff] }
 0x212   :  { %3922 = vmatpush1.bf16.msra.mxu0 %v4938_v8  ;;  %4086 = vmatpush1.bf16.msra.mxu1 %v4940_v9  ;;  %v1045_v8 = vld [vmem:[#allocation10 + $0x9a8] sm:$0xff]  ;;  %v4986_v9 = vcombine.low %v1032_v60, %v1036_v61  ;;  %v1084_v60 = vld [vmem:[#allocation10 + $0xae0] sm:$0xff] }
 0x213   :  { %3932 = vmatprep.subr.bf16.mxu0 %v4947_v11  ;;  %4096 = vmatprep.subr.bf16.mxu1 %v4949_v12  ;;  %v4995_v11 = vcombine.high %v1040_v5, %v1044_v6  ;;  %v4997_v12 = vcombine.high %v1041_v7, %v1045_v8  ;;  %v1081_v61 = vld [vmem:[#allocation10 + $0xac8] sm:$0xff]  ;;  %v1092_v5 = vld [vmem:[#allocation10 + $0xb20] sm:$0xff] }
 0x214   :  { %v1089_v6 = vld [vmem:[#allocation10 + $0xb08] sm:$0xff] }
 0x215   :  { %3924 = vmatmul.mubr.bf16.vlgmr.msra.gmra.mrb[8].mxu0 %v5676_v23  ;;  %4088 = vmatmul.mubr.bf16.vlgmr.msra.gmra.mrb[8].mxu1 %v5676_v23 }
 0x216   :  { %3933 = vmatpush1.bf16.msra.mxu0 %v4946_v45  ;;  %3964 = vmatprep.mubr.bf16.mxu0 %v5678_v25  ;;  %v4996_v45 = vcombine.low %v1041_v7, %v1045_v8  ;;  %v1093_v7 = vld [vmem:[#allocation10 + $0xb28] sm:$0xff] }
 0x217   :  { %4097 = vmatpush1.bf16.msra.mxu1 %v4948_v24  ;;  %4128 = vmatprep.mubr.bf16.mxu1 %v5678_v25  ;;  %v5003_v24 = vcombine.high %v1048_v27, %v1052_v13  ;;  %v1100_v27 = vld [vmem:[#allocation10 + $0xb60] sm:$0xff]  ;;  %v1097_v13 = vld [vmem:[#allocation10 + $0xb48] sm:$0xff] }
 0x218   :  { %3934 = vmatprep.subr.bf16.mxu0 %v4955_v26  ;;  %4098 = vmatprep.subr.bf16.mxu1 %v4957_v28  ;;  %v5005_v26 = vcombine.high %v1049_v14, %v1053_v15  ;;  %v1056_v28 = vld [vmem:[#allocation10 + $0xa00] sm:$0xff] }
 0x219   :  { %v5010_v42 = vcombine.low %v1056_v28, %v1060_v29 }
 0x21a   :  { %3935 = vmatpush1.bf16.msra.mxu0 %v4954_v33  ;;  %v5004_v33 = vcombine.low %v1049_v14, %v1053_v15  ;;  %v1101_v14 = vld [vmem:[#allocation10 + $0xb68] sm:$0xff] }
 0x21b   :  { %4099 = vmatpush1.bf16.msra.mxu1 %v4956_v34  ;;  %3936 = vmatprep.subr.bf16.mxu0 %v4963_v35  ;;  %v5011_v34 = vcombine.high %v1056_v28, %v1060_v29  ;;  %v5013_v35 = vcombine.high %v1057_v30, %v1061_v31  ;;  %v1104_v28 = vld [vmem:[#allocation10 + $0xb80] sm:$0xff] }
 0x21c   :  { %4100 = vmatprep.subr.bf16.mxu1 %v4965_v36  ;;  %v1064_v36 = vld [vmem:[#allocation10 + $0xa40] sm:$0xff] }
 0x21d   :  { %v5018_v55 = vcombine.low %v1064_v36, %v1068_v37  ;;  %v1108_v29 = vld [vmem:[#allocation10 + $0xba0] sm:$0xff] }
 0x21e   :  { %3937 = vmatpush1.bf16.msra.mxu0 %v4962_v47  ;;  %v5012_v47 = vcombine.low %v1057_v30, %v1061_v31  ;;  %v5688_v30 = vsub.s32 7, %v5623_v17  ;;  %v1105_v31 = vld [vmem:[#allocation10 + $0xb88] sm:$0xff] }
 0x21f   :  { %4101 = vmatpush1.bf16.msra.mxu1 %v4964_v48  ;;  %3938 = vmatprep.subr.bf16.mxu0 %v4971_v49  ;;  %v5019_v48 = vcombine.high %v1064_v36, %v1068_v37  ;;  %v5021_v49 = vcombine.high %v1065_v38, %v1069_v41  ;;  %v5059_v36 = vcombine.high %v1104_v28, %v1108_v29 }
 0x220   :  { %4102 = vmatprep.subr.bf16.mxu1 %v4973_v51  ;;  %v1072_v51 = vld [vmem:[#allocation10 + $0xa80] sm:$0xff] }
 0x221   :  { %v5026_v63 = vcombine.low %v1072_v51, %v1076_v52 }
 0x222   :  { %3939 = vmatpush1.bf16.msra.mxu0 %v4970_v56  ;;  %v5020_v56 = vcombine.low %v1065_v38, %v1069_v41  ;;  %v1112_v38 = vld [vmem:[#allocation10 + $0xbc0] sm:$0xff] }
 0x223   :  { %4103 = vmatpush1.bf16.msra.mxu1 %v4972_v57  ;;  %3940 = vmatprep.subr.bf16.mxu0 %v4979_v58  ;;  %v5027_v57 = vcombine.high %v1072_v51, %v1076_v52  ;;  %v5029_v58 = vcombine.high %v1073_v53, %v1077_v54  ;;  %v1116_v41 = vld [vmem:[#allocation10 + $0xbe0] sm:$0xff] }
 0x224   :  { %4104 = vmatprep.subr.bf16.mxu1 %v4981_v59  ;;  %v1080_v59 = vld [vmem:[#allocation10 + $0xac0] sm:$0xff] }
 0x225   :  { %v5034_v8 = vcombine.low %v1080_v59, %v1084_v60 }
 0x226   :  { %3941 = vmatpush1.bf16.msra.mxu0 %v4978_v0  ;;  %v5028_v0 = vcombine.low %v1073_v53, %v1077_v54  ;;  %v5067_v53 = vcombine.high %v1112_v38, %v1116_v41 }
 0x227   :  { %4105 = vmatpush1.bf16.msra.mxu1 %v4980_v2  ;;  %3942 = vmatprep.subr.bf16.mxu0 %v4987_v3  ;;  %v5035_v2 = vcombine.high %v1080_v59, %v1084_v60  ;;  %v5037_v3 = vcombine.high %v1081_v61, %v1085_v62  ;;  %v1125_v59 = vld [vmem:[#allocation10 + $0xc28] sm:$0xff] }
 0x228   :  { %4106 = vmatprep.subr.bf16.mxu1 %v4989_v4  ;;  %v1088_v4 = vld [vmem:[#allocation10 + $0xb00] sm:$0xff] }
 0x229   :  { %v5042_v15 = vcombine.low %v1088_v4, %v1092_v5 }
 0x22a   :  { %3943 = vmatpush1.bf16.msra.mxu0 %v4986_v9  ;;  %v5036_v9 = vcombine.low %v1081_v61, %v1085_v62 }
 0x22b   :  { %4107 = vmatpush1.bf16.msra.mxu1 %v4988_v10  ;;  %3944 = vmatprep.subr.bf16.mxu0 %v4995_v11  ;;  %v5043_v10 = vcombine.high %v1088_v4, %v1092_v5  ;;  %v5045_v11 = vcombine.high %v1089_v6, %v1093_v7  ;;  %v1129_v4 = vld [vmem:[#allocation10 + $0xc48] sm:$0xff] }
 0x22c   :  { %4108 = vmatprep.subr.bf16.mxu1 %v4997_v12  ;;  %v1096_v12 = vld [vmem:[#allocation10 + $0xb40] sm:$0xff]  ;;  %v1133_v5 = vld [vmem:[#allocation10 + $0xc68] sm:$0xff] }
 0x22e   :  { %3945 = vmatpush1.bf16.msra.mxu0 %v4994_v16  ;;  %v5685_v16 = vsub.s32 4, %v5623_v17 }
 0x22f   :  { %4109 = vmatpush1.bf16.msra.mxu1 %v4996_v45  ;;  %3946 = vmatprep.subr.bf16.mxu0 %v5003_v24  ;;  %v5044_v45 = vcombine.low %v1089_v6, %v1093_v7  ;;  %v5051_v24 = vcombine.high %v1096_v12, %v1100_v27 }
 0x230   :  { %4110 = vmatprep.subr.bf16.mxu1 %v5005_v26  ;;  %v5053_v26 = vcombine.high %v1097_v13, %v1101_v14 }
 0x232   :  { %3947 = vmatpush1.bf16.msra.mxu0 %v5002_v32  ;;  %v1109_v32 = vld [vmem:[#allocation10 + $0xba8] sm:$0xff] }
 0x233   :  { %4111 = vmatpush1.bf16.msra.mxu1 %v5004_v33  ;;  %3948 = vmatprep.subr.bf16.mxu0 %v5011_v34  ;;  %v5050_v33 = vcombine.low %v1096_v12, %v1100_v27  ;;  %v215_v34 = vrot.slane %v5628_v20, %v5685_v16  ;;  %v5061_v37 = vcombine.high %v1105_v31, %v1109_v32  ;;  %v1137_v12 = vld [vmem:[#allocation10 + $0xc88] sm:$0xff] }
 0x234   :  { %4112 = vmatprep.subr.bf16.mxu1 %v5013_v35  ;;  %v5052_v35 = vcombine.low %v1097_v13, %v1101_v14  ;;  %v5060_v52 = vcombine.low %v1105_v31, %v1109_v32  ;;  %v1141_v27 = vld [vmem:[#allocation10 + $0xca8] sm:$0xff]  ;;  %v5084_v14 = vcombine.low %v1129_v4, %v1133_v5 }
 0x235   :  { %v673_v51 = vadd.f32 %v5656_v39, %v215_v34  ;;  %v5092_v32 = vcombine.low %v1137_v12, %v1141_v27 }
 0x236   :  { %3949 = vmatpush1.bf16.msra.mxu0 %v5010_v42  ;;  %v227_v42 = vrot.slane %v5628_v20, %v5688_v30  ;;  %v5066_v20 = vcombine.low %v1112_v38, %v1116_v41  ;;  %v1157_v38 = vld [vmem:[#allocation10 + $0xd28] sm:$0xff] }
 0x237   :  { %4113 = vmatpush1.bf16.msra.mxu1 %v5012_v47  ;;  %3950 = vmatprep.subr.bf16.mxu0 %v5019_v48  ;;  %v1113_v47 = vld [vmem:[#allocation10 + $0xbc8] sm:$0xff]  ;;  %v724_v60 = vmax.f32 %v673_v51, 0.0  ;;  %v1164_v51 = vld [vmem:[#allocation10 + $0xd60] sm:$0xff] }
 0x238   :  { %4114 = vmatprep.subr.bf16.mxu1 %v5021_v49  ;;  %v1117_v48 = vld [vmem:[#allocation10 + $0xbe8] sm:$0xff]  ;;  %v5058_v49 = vcombine.low %v1104_v28, %v1108_v29 }
 0x239   :  { %v5069_v54 = vcombine.high %v1113_v47, %v1117_v48  ;;  %v5068_v61 = vcombine.low %v1113_v47, %v1117_v48  ;;  %v5696_v6 = vpack.c.bf16 %v724_v60, %v724_v60  ;;  %v1145_v28 = vld [vmem:[#allocation10 + $0xcc8] sm:$0xff] }
 0x23a   :  { %3951 = vmatpush1.bf16.msra.mxu0 %v5018_v55  ;;  %v1120_v55 = vld [vmem:[#allocation10 + $0xc00] sm:$0xff]  ;;  %v1149_v29 = vld [vmem:[#allocation10 + $0xce8] sm:$0xff] }
 0x23b   :  { %4115 = vmatpush1.bf16.msra.mxu1 %v5020_v56  ;;  %3952 = vmatprep.subr.bf16.mxu0 %v5027_v57  ;;  %v1124_v56 = vld [vmem:[#allocation10 + $0xc20] sm:$0xff]  ;;  %v716_v57 = vadd.f32 %v5662_v46, %v227_v42  ;;  %v5101_v34 = vcombine.high %v1145_v28, %v1149_v29  ;;  %v5100_v42 = vcombine.low %v1145_v28, %v1149_v29  ;;  %v1173_v60 = vld [vmem:[#allocation10 + $0xda8] sm:$0xff] }
 0x23c   :  { %4116 = vmatprep.subr.bf16.mxu1 %v5029_v58  ;;  %v1121_v58 = vld [vmem:[#allocation10 + $0xc08] sm:$0xff]  ;;  %v5075_v62 = vcombine.high %v1120_v55, %v1124_v56 }
 0x23d   :  { %v5077_v39 = vcombine.high %v1121_v58, %v1125_v59  ;;  %v5076_v46 = vcombine.low %v1121_v58, %v1125_v59  ;;  %v1168_v58 = vld [vmem:[#allocation10 + $0xd80] sm:$0xff]  ;;  %v1193_v28 = vld [vmem:[#allocation10 + $0xe48] sm:$0xff] }
 0x23e   :  { %3953 = vmatpush1.bf16.msra.mxu0 %v5026_v63  ;;  %v727_v63 = vmax.f32 %v716_v57, 0.0  ;;  %v1172_v59 = vld [vmem:[#allocation10 + $0xda0] sm:$0xff]  ;;  %v1197_v29 = vld [vmem:[#allocation10 + $0xe68] sm:$0xff] }
 0x23f   :  { %4117 = vmatpush1.bf16.msra.mxu1 %v5028_v0  ;;  %3954 = vmatprep.subr.bf16.mxu0 %v5035_v2  ;;  %v1128_v0 = vld [vmem:[#allocation10 + $0xc40] sm:$0xff] }
 0x240   :  { %4118 = vmatprep.subr.bf16.mxu1 %v5037_v3  ;;  %v1132_v2 = vld [vmem:[#allocation10 + $0xc60] sm:$0xff]  ;;  %v5074_v3 = vcombine.low %v1120_v55, %v1124_v56 }
 0x241   :  { %v5083_v7 = vcombine.high %v1128_v0, %v1132_v2  ;;  %v5082_v13 = vcombine.low %v1128_v0, %v1132_v2  ;;  %v1176_v0 = vld [vmem:[#allocation10 + $0xdc0] sm:$0xff] }
 0x242   :  { %3955 = vmatpush1.bf16.msra.mxu0 %v5034_v8  ;;  %v1136_v8 = vld [vmem:[#allocation10 + $0xc80] sm:$0xff] }
 0x243   :  { %4119 = vmatpush1.bf16.msra.mxu1 %v5036_v9  ;;  %3956 = vmatprep.subr.bf16.mxu0 %v5043_v10  ;;  %v1140_v9 = vld [vmem:[#allocation10 + $0xca0] sm:$0xff]  ;;  %v5698_v10 = vpack.c.bf16 %v727_v63, %v727_v63 }
 0x244   :  { %4120 = vmatprep.subr.bf16.mxu1 %v5045_v11  ;;  %v5085_v11 = vcombine.high %v1129_v4, %v1133_v5  ;;  %v5090_v31 = vcombine.low %v1136_v8, %v1140_v9  ;;  %v1180_v2 = vld [vmem:[#allocation10 + $0xde0] sm:$0xff]  ;;  %v1181_v4 = vld [vmem:[#allocation10 + $0xde8] sm:$0xff]  ;;  %v5122_v5 = vcombine.low %v1168_v58, %v1172_v59 }
 0x246   :  { %3957 = vmatpush1.bf16.msra.mxu0 %v5042_v15  ;;  %v5091_v15 = vcombine.high %v1136_v8, %v1140_v9  ;;  %v1184_v9 = vld [vmem:[#allocation10 + $0xe00] sm:$0xff] }
 0x247   :  { %4121 = vmatpush1.bf16.msra.mxu1 %v5044_v45  ;;  %3958 = vmatprep.subr.bf16.mxu0 %v5051_v24  ;;  %v5093_v45 = vcombine.high %v1137_v12, %v1141_v27  ;;  %v1144_v24 = vld [vmem:[#allocation10 + $0xcc0] sm:$0xff]  ;;  %v1185_v12 = vld [vmem:[#allocation10 + $0xe08] sm:$0xff] }
 0x248   :  { %4122 = vmatprep.subr.bf16.mxu1 %v5053_v26  ;;  %v1148_v26 = vld [vmem:[#allocation10 + $0xce0] sm:$0xff]  ;;  %v1189_v27 = vld [vmem:[#allocation10 + $0xe28] sm:$0xff] }
 0x249   :  { %v5098_v41 = vcombine.low %v1144_v24, %v1148_v26 }
 0x24a   :  { %3959 = vmatpush1.bf16.msra.mxu0 %v5050_v33  ;;  %v5099_v33 = vcombine.high %v1144_v24, %v1148_v26  ;;  %v1192_v24 = vld [vmem:[#allocation10 + $0xe40] sm:$0xff] }
 0x24b   :  { %4123 = vmatpush1.bf16.msra.mxu1 %v5052_v35  ;;  %3960 = vmatprep.subr.bf16.mxu0 %v5059_v36  ;;  %v1152_v35 = vld [vmem:[#allocation10 + $0xd00] sm:$0xff] }
 0x24c   :  { %4124 = vmatprep.subr.bf16.mxu1 %v5061_v37  ;;  %v1156_v36 = vld [vmem:[#allocation10 + $0xd20] sm:$0xff]  ;;  %v1153_v37 = vld [vmem:[#allocation10 + $0xd08] sm:$0xff] }
 0x24d   :  { %v5107_v47 = vcombine.high %v1152_v35, %v1156_v36  ;;  %v5109_v48 = vcombine.high %v1153_v37, %v1157_v38  ;;  %v5108_v55 = vcombine.low %v1153_v37, %v1157_v38  ;;  %v1196_v26 = vld [vmem:[#allocation10 + $0xe60] sm:$0xff]  ;;  %v1201_v37 = vld [vmem:[#allocation10 + $0xe88] sm:$0xff] }
 0x24e   :  { %3961 = vmatpush1.bf16.msra.mxu0 %v5058_v49  ;;  %v1160_v49 = vld [vmem:[#allocation10 + $0xd40] sm:$0xff]  ;;  %v1205_v38 = vld [vmem:[#allocation10 + $0xea8] sm:$0xff] }
 0x24f   :  { %4125 = vmatpush1.bf16.msra.mxu1 %v5060_v52  ;;  %3962 = vmatprep.subr.bf16.mxu0 %v5067_v53  ;;  %v1161_v52 = vld [vmem:[#allocation10 + $0xd48] sm:$0xff]  ;;  %v5115_v56 = vcombine.high %v1160_v49, %v1164_v51 }
 0x250   :  { %4126 = vmatprep.subr.bf16.mxu1 %v5069_v54  ;;  %v1165_v53 = vld [vmem:[#allocation10 + $0xd68] sm:$0xff]  ;;  %v5106_v54 = vcombine.low %v1152_v35, %v1156_v36  ;;  %v1200_v35 = vld [vmem:[#allocation10 + $0xe80] sm:$0xff] }
 0x251   :  { %v5117_v57 = vcombine.high %v1161_v52, %v1165_v53  ;;  %v1204_v36 = vld [vmem:[#allocation10 + $0xea0] sm:$0xff] }
 0x252   :  { %3963 = vmatpush1.bf16.msra.mxu0 %v5066_v20  ;;  %v1169_v20 = vld [vmem:[#allocation10 + $0xd88] sm:$0xff] }
 0x253   :  { %4127 = vmatpush1.bf16.msra.mxu1 %v5068_v61  ;;  %3973 = vmatprep.subr.bf16.mxu0 %v5075_v62  ;;  %v5114_v61 = vcombine.low %v1160_v49, %v1164_v51  ;;  %v5116_v62 = vcombine.low %v1161_v52, %v1165_v53  ;;  %v5125_v63 = vcombine.high %v1169_v20, %v1173_v60  ;;  %v1208_v49 = vld [vmem:[#allocation10 + $0xec0] sm:$0xff]  ;;  %v1209_v52 = vld [vmem:[#allocation10 + $0xec8] sm:$0xff] }
 0x254   :  { %4137 = vmatprep.subr.bf16.mxu1 %v5077_v39  ;;  %v5123_v39 = vcombine.high %v1168_v58, %v1172_v59  ;;  %v1212_v51 = vld [vmem:[#allocation10 + $0xee0] sm:$0xff]  ;;  %v1213_v53 = vld [vmem:[#allocation10 + $0xee8] sm:$0xff] }
 0x255   :  { %3965 = vmatmul.mubr.bf16.vlgmr.msra.gmra.mrb[8].mxu0 %v5696_v6  ;;  %v1216_v58 = vld [vmem:[#allocation10 + $0xf00] sm:$0xff] }
 0x256   :  { %4129 = vmatmul.mubr.bf16.vlgmr.msra.gmra.mrb[8].mxu1 %v5696_v6  ;;  %3974 = vmatpush1.bf16.msra.mxu0 %v5074_v3  ;;  %v1177_v3 = vld [vmem:[#allocation10 + $0xdc8] sm:$0xff]  ;;  %v1220_v59 = vld [vmem:[#allocation10 + $0xf20] sm:$0xff] }
 0x257   :  { %4005 = vmatprep.mubr.bf16.mxu0 %v5698_v10  ;;  %4138 = vmatpush1.bf16.msra.mxu1 %v5076_v46  ;;  %v5124_v46 = vcombine.low %v1169_v20, %v1173_v60  ;;  %v5133_v8 = vcombine.high %v1177_v3, %v1181_v4  ;;  %v1217_v20 = vld [vmem:[#allocation10 + $0xf08] sm:$0xff] }
 0x258   :  { %4169 = vmatprep.mubr.bf16.mxu1 %v5698_v10  ;;  %3975 = vmatprep.subr.bf16.mxu0 %v5083_v7  ;;  %v5131_v7 = vcombine.high %v1176_v0, %v1180_v2  ;;  %v1221_v60 = vld [vmem:[#allocation10 + $0xf28] sm:$0xff] }
 0x259   :  { %4139 = vmatprep.subr.bf16.mxu1 %v5085_v11  ;;  %v1188_v11 = vld [vmem:[#allocation10 + $0xe20] sm:$0xff] }
 0x25a   :  { %3976 = vmatpush1.bf16.msra.mxu0 %v5082_v13  ;;  %v5130_v13 = vcombine.low %v1176_v0, %v1180_v2  ;;  %v1224_v0 = vld [vmem:[#allocation10 + $0xf40] sm:$0xff] }
 0x25b   :  { %4140 = vmatpush1.bf16.msra.mxu1 %v5084_v14  ;;  %3977 = vmatprep.subr.bf16.mxu0 %v5091_v15  ;;  %v5132_v14 = vcombine.low %v1177_v3, %v1181_v4  ;;  %v5139_v15 = vcombine.high %v1184_v9, %v1188_v11  ;;  %v1228_v2 = vld [vmem:[#allocation10 + $0xf60] sm:$0xff]  ;;  %v1225_v3 = vld [vmem:[#allocation10 + $0xf48] sm:$0xff] }
 0x25c   :  { %4141 = vmatprep.subr.bf16.mxu1 %v5093_v45  ;;  %v5141_v45 = vcombine.high %v1185_v12, %v1189_v27  ;;  %v1229_v4 = vld [vmem:[#allocation10 + $0xf68] sm:$0xff] }
 0x25e   :  { %3978 = vmatpush1.bf16.msra.mxu0 %v5090_v31  ;;  %v5138_v31 = vcombine.low %v1184_v9, %v1188_v11  ;;  %v5181_v9 = vcombine.high %v1225_v3, %v1229_v4  ;;  %v1232_v11 = vld [vmem:[#allocation10 + $0xf80] sm:$0xff] }
 0x25f   :  { %4142 = vmatpush1.bf16.msra.mxu1 %v5092_v32  ;;  %3979 = vmatprep.subr.bf16.mxu0 %v5099_v33  ;;  %v5140_v32 = vcombine.low %v1185_v12, %v1189_v27  ;;  %v5147_v33 = vcombine.high %v1192_v24, %v1196_v26  ;;  %v1236_v12 = vld [vmem:[#allocation10 + $0xfa0] sm:$0xff]  ;;  %v1233_v27 = vld [vmem:[#allocation10 + $0xf88] sm:$0xff] }
 0x260   :  { %4143 = vmatprep.subr.bf16.mxu1 %v5101_v34  ;;  %v5149_v34 = vcombine.high %v1193_v28, %v1197_v29 }
 0x262   :  { %3980 = vmatpush1.bf16.msra.mxu0 %v5098_v41  ;;  %v5146_v41 = vcombine.low %v1192_v24, %v1196_v26  ;;  %v5180_v24 = vcombine.low %v1225_v3, %v1229_v4 }
 0x263   :  { %4144 = vmatpush1.bf16.msra.mxu1 %v5100_v42  ;;  %3981 = vmatprep.subr.bf16.mxu0 %v5107_v47  ;;  %v5148_v42 = vcombine.low %v1193_v28, %v1197_v29  ;;  %v5155_v47 = vcombine.high %v1200_v35, %v1204_v36  ;;  %v1240_v28 = vld [vmem:[#allocation10 + $0xfc0] sm:$0xff] }
 0x264   :  { %4145 = vmatprep.subr.bf16.mxu1 %v5109_v48  ;;  %v5157_v48 = vcombine.high %v1201_v37, %v1205_v38  ;;  %v1244_v29 = vld [vmem:[#allocation10 + $0xfe0] sm:$0xff] }
 0x266   :  { %3982 = vmatpush1.bf16.msra.mxu0 %v5106_v54  ;;  %v5154_v54 = vcombine.low %v1200_v35, %v1204_v36  ;;  %v5195_v36 = vcombine.high %v1240_v28, %v1244_v29 }
 0x267   :  { %4146 = vmatpush1.bf16.msra.mxu1 %v5108_v55  ;;  %3983 = vmatprep.subr.bf16.mxu0 %v5115_v56  ;;  %v5156_v55 = vcombine.low %v1201_v37, %v1205_v38  ;;  %v5163_v56 = vcombine.high %v1208_v49, %v1212_v51  ;;  %v738_v38 = vld [vmem:[#allocation10 + $0x10] sm:$0xff] }
 0x268   :  { %4147 = vmatprep.subr.bf16.mxu1 %v5117_v57  ;;  %v5165_v57 = vcombine.high %v1209_v52, %v1213_v53 }
 0x26a   :  { %3984 = vmatpush1.bf16.msra.mxu0 %v5114_v61  ;;  %v5162_v61 = vcombine.low %v1208_v49, %v1212_v51 }
 0x26b   :  { %4148 = vmatpush1.bf16.msra.mxu1 %v5116_v62  ;;  %3985 = vmatprep.subr.bf16.mxu0 %v5123_v39  ;;  %v5164_v62 = vcombine.low %v1209_v52, %v1213_v53  ;;  %v5171_v39 = vcombine.high %v1216_v58, %v1220_v59 }
 0x26c   :  { %4149 = vmatprep.subr.bf16.mxu1 %v5125_v63  ;;  %v5173_v63 = vcombine.high %v1217_v20, %v1221_v60 }
 0x26e   :  { %3986 = vmatpush1.bf16.msra.mxu0 %v5122_v5  ;;  %v5170_v5 = vcombine.low %v1216_v58, %v1220_v59 }
 0x26f   :  { %4150 = vmatpush1.bf16.msra.mxu1 %v5124_v46  ;;  %3987 = vmatprep.subr.bf16.mxu0 %v5131_v7  ;;  %v5705_v46 = vsub.s32 6, %v5623_v17  ;;  %v5172_v7 = vcombine.low %v1217_v20, %v1221_v60  ;;  %v5187_v17 = vcombine.high %v1232_v11, %v1236_v12  ;;  %v754_v60 = vld [vmem:[#allocation10 + $0x90] sm:$0xff] }
 0x270   :  { %4151 = vmatprep.subr.bf16.mxu1 %v5133_v8  ;;  %v5179_v8 = vcombine.high %v1224_v0, %v1228_v2 }
 0x272   :  { %3988 = vmatpush1.bf16.msra.mxu0 %v5130_v13  ;;  %v1237_v13 = vld [vmem:[#allocation10 + $0xfa8] sm:$0xff] }
 0x273   :  { %4152 = vmatpush1.bf16.msra.mxu1 %v5132_v14  ;;  %3989 = vmatprep.subr.bf16.mxu0 %v5139_v15  ;;  %v5178_v14 = vcombine.low %v1224_v0, %v1228_v2  ;;  %v5271_v15 = vld [vmem:[#allocation8] sm:$0xff]  ;;  %v5189_v26 = vcombine.high %v1233_v27, %v1237_v13  ;;  %v5188_v35 = vcombine.low %v1233_v27, %v1237_v13 }
 0x274   :  { %4153 = vmatprep.subr.bf16.mxu1 %v5141_v45  ;;  %v223_v45 = vrot.slane %v5271_v15, %v5705_v46  ;;  %v774_v15 = vld [vmem:[#allocation10 + $0x130] sm:$0xff] }
 0x276   :  { %3990 = vmatpush1.bf16.msra.mxu0 %v5138_v31  ;;  %v1241_v31 = vld [vmem:[#allocation10 + $0xfc8] sm:$0xff] }
 0x277   :  { %4154 = vmatpush1.bf16.msra.mxu1 %v5140_v32  ;;  %3991 = vmatprep.subr.bf16.mxu0 %v5147_v33  ;;  %v1245_v32 = vld [vmem:[#allocation10 + $0xfe8] sm:$0xff]  ;;  %v5186_v33 = vcombine.low %v1232_v11, %v1236_v12 }
 0x278   :  { %4155 = vmatprep.subr.bf16.mxu1 %v5149_v34  ;;  %v714_v34 = vadd.f32 %v5658_v40, %v223_v45  ;;  %v5197_v37 = vcombine.high %v1241_v31, %v1245_v32  ;;  %v5196_v51 = vcombine.low %v1241_v31, %v1245_v32  ;;  %v746_v40 = vld [vmem:[#allocation10 + $0x50] sm:$0xff]  ;;  %v771_v45 = vld [vmem:[#allocation10 + $0x118] sm:$0xff] }
 0x279   :  { %v782_v31 = vld [vmem:[#allocation10 + $0x170] sm:$0xff]  ;;  %v779_v32 = vld [vmem:[#allocation10 + $0x158] sm:$0xff] }
 0x27a   :  { %3992 = vmatpush1.bf16.msra.mxu0 %v5146_v41  ;;  %v742_v41 = vld [vmem:[#allocation10 + $0x30] sm:$0xff]  ;;  %v726_v49 = vmax.f32 %v714_v34, 0.0 }
 0x27b   :  { %4156 = vmatpush1.bf16.msra.mxu1 %v5148_v42  ;;  %3993 = vmatprep.subr.bf16.mxu0 %v5155_v47  ;;  %v739_v42 = vld [vmem:[#allocation10 + $0x18] sm:$0xff]  ;;  %v4695_v52 = vcombine.high %v738_v38, %v742_v41 }
 0x27c   :  { %4157 = vmatprep.subr.bf16.mxu1 %v5157_v48  ;;  %v743_v47 = vld [vmem:[#allocation10 + $0x38] sm:$0xff]  ;;  %v5194_v48 = vcombine.low %v1240_v28, %v1244_v29  ;;  %v5709_v58 = vpack.c.bf16 %v726_v49, %v726_v49  ;;  %v778_v29 = vld [vmem:[#allocation10 + $0x150] sm:$0xff] }
 0x27d   :  { %v4697_v53 = vcombine.high %v739_v42, %v743_v47  ;;  %v4696_v59 = vcombine.low %v739_v42, %v743_v47  ;;  %v787_v42 = vld [vmem:[#allocation10 + $0x198] sm:$0xff] }
 0x27e   :  { %3994 = vmatpush1.bf16.msra.mxu0 %v5154_v54  ;;  %v750_v54 = vld [vmem:[#allocation10 + $0x70] sm:$0xff]  ;;  %v791_v47 = vld [vmem:[#allocation10 + $0x1b8] sm:$0xff] }
 0x27f   :  { %4158 = vmatpush1.bf16.msra.mxu1 %v5156_v55  ;;  %3995 = vmatprep.subr.bf16.mxu0 %v5163_v56  ;;  %v4694_v55 = vcombine.low %v738_v38, %v742_v41  ;;  %v747_v56 = vld [vmem:[#allocation10 + $0x58] sm:$0xff]  ;;  %v4703_v20 = vcombine.high %v746_v40, %v750_v54  ;;  %v4702_v0 = vcombine.low %v746_v40, %v750_v54  ;;  %v786_v38 = vld [vmem:[#allocation10 + $0x190] sm:$0xff] }
 0x280   :  { %4159 = vmatprep.subr.bf16.mxu1 %v5165_v57  ;;  %v751_v57 = vld [vmem:[#allocation10 + $0x78] sm:$0xff]  ;;  %v790_v41 = vld [vmem:[#allocation10 + $0x1b0] sm:$0xff] }
 0x281   :  { %v4704_v2 = vcombine.low %v747_v56, %v751_v57  ;;  %v798_v40 = vld [vmem:[#allocation10 + $0x1f0] sm:$0xff]  ;;  %v795_v54 = vld [vmem:[#allocation10 + $0x1d8] sm:$0xff] }
 0x282   :  { %3996 = vmatpush1.bf16.msra.mxu0 %v5162_v61  ;;  %v758_v61 = vld [vmem:[#allocation10 + $0xb0] sm:$0xff] }
 0x283   :  { %4160 = vmatpush1.bf16.msra.mxu1 %v5164_v62  ;;  %3997 = vmatprep.subr.bf16.mxu0 %v5171_v39  ;;  %v4705_v62 = vcombine.high %v747_v56, %v751_v57  ;;  %v755_v39 = vld [vmem:[#allocation10 + $0x98] sm:$0xff]  ;;  %v4711_v3 = vcombine.high %v754_v60, %v758_v61  ;;  %v4710_v11 = vcombine.low %v754_v60, %v758_v61  ;;  %v802_v60 = vld [vmem:[#allocation10 + $0x210] sm:$0xff] }
 0x284   :  { %4161 = vmatprep.subr.bf16.mxu1 %v5173_v63  ;;  %v759_v63 = vld [vmem:[#allocation10 + $0xb8] sm:$0xff]  ;;  %v4742_v56 = vcombine.low %v786_v38, %v790_v41  ;;  %v4744_v57 = vcombine.low %v787_v42, %v791_v47  ;;  %v806_v61 = vld [vmem:[#allocation10 + $0x230] sm:$0xff] }
 0x285   :  { %v4713_v4 = vcombine.high %v755_v39, %v759_v63  ;;  %v4712_v12 = vcombine.low %v755_v39, %v759_v63  ;;  %v807_v39 = vld [vmem:[#allocation10 + $0x238] sm:$0xff] }
 0x286   :  { %3998 = vmatpush1.bf16.msra.mxu0 %v5170_v5  ;;  %v762_v5 = vld [vmem:[#allocation10 + $0xd0] sm:$0xff] }
 0x287   :  { %4162 = vmatpush1.bf16.msra.mxu1 %v5172_v7  ;;  %3999 = vmatprep.subr.bf16.mxu0 %v5179_v8  ;;  %v766_v7 = vld [vmem:[#allocation10 + $0xf0] sm:$0xff]  ;;  %v763_v8 = vld [vmem:[#allocation10 + $0xd8] sm:$0xff] }
 0x288   :  { %4163 = vmatprep.subr.bf16.mxu1 %v5181_v9  ;;  %v767_v9 = vld [vmem:[#allocation10 + $0xf8] sm:$0xff]  ;;  %v4719_v27 = vcombine.high %v762_v5, %v766_v7 }
 0x289   :  { %v4721_v13 = vcombine.high %v763_v8, %v767_v9 }
 0x28a   :  { %4000 = vmatpush1.bf16.msra.mxu0 %v5178_v14  ;;  %v770_v14 = vld [vmem:[#allocation10 + $0x110] sm:$0xff] }
 0x28b   :  { %4164 = vmatpush1.bf16.msra.mxu1 %v5180_v24  ;;  %4001 = vmatprep.subr.bf16.mxu0 %v5187_v17  ;;  %v775_v24 = vld [vmem:[#allocation10 + $0x138] sm:$0xff]  ;;  %v4720_v17 = vcombine.low %v763_v8, %v767_v9  ;;  %v4726_v34 = vcombine.low %v770_v14, %v774_v15  ;;  %v4758_v9 = vcombine.low %v802_v60, %v806_v61 }
 0x28c   :  { %4165 = vmatprep.subr.bf16.mxu1 %v5189_v26  ;;  %v4727_v26 = vcombine.high %v770_v14, %v774_v15  ;;  %v4729_v28 = vcombine.high %v771_v45, %v775_v24  ;;  %v815_v8 = vld [vmem:[#allocation10 + $0x278] sm:$0xff]  ;;  %v822_v14 = vld [vmem:[#allocation10 + $0x2b0] sm:$0xff] }
 0x28d   :  { %v819_v15 = vld [vmem:[#allocation10 + $0x298] sm:$0xff] }
 0x28e   :  { %4002 = vmatpush1.bf16.msra.mxu0 %v5186_v33  ;;  %v783_v33 = vld [vmem:[#allocation10 + $0x178] sm:$0xff] }
 0x28f   :  { %4166 = vmatpush1.bf16.msra.mxu1 %v5188_v35  ;;  %4003 = vmatprep.subr.bf16.mxu0 %v5195_v36  ;;  %v4728_v35 = vcombine.low %v771_v45, %v775_v24  ;;  %v4735_v36 = vcombine.high %v778_v29, %v782_v31  ;;  %v4736_v49 = vcombine.low %v779_v32, %v783_v33  ;;  %v823_v45 = vld [vmem:[#allocation10 + $0x2b8] sm:$0xff] }
 0x290   :  { %4167 = vmatprep.subr.bf16.mxu1 %v5197_v37  ;;  %v4737_v37 = vcombine.high %v779_v32, %v783_v33  ;;  %v831_v32 = vld [vmem:[#allocation10 + $0x2f8] sm:$0xff] }
 0x292   :  { %4004 = vmatpush1.bf16.msra.mxu0 %v5194_v48  ;;  %v4734_v48 = vcombine.low %v778_v29, %v782_v31  ;;  %v830_v29 = vld [vmem:[#allocation10 + $0x2f0] sm:$0xff]  ;;  %v827_v31 = vld [vmem:[#allocation10 + $0x2d8] sm:$0xff] }
 0x293   :  { %4168 = vmatpush1.bf16.msra.mxu1 %v5196_v51  ;;  %4178 = vmatprep.subr.bf16.mxu0 %v4695_v52  ;;  %v4743_v51 = vcombine.high %v786_v38, %v790_v41  ;;  %v4745_v52 = vcombine.high %v787_v42, %v791_v47  ;;  %v838_v38 = vld [vmem:[#allocation10 + $0x330] sm:$0xff]  ;;  %v835_v41 = vld [vmem:[#allocation10 + $0x318] sm:$0xff] }
 0x294   :  { %4342 = vmatprep.subr.bf16.mxu1 %v4697_v53  ;;  %v794_v53 = vld [vmem:[#allocation10 + $0x1d0] sm:$0xff]  ;;  %v839_v42 = vld [vmem:[#allocation10 + $0x338] sm:$0xff] }
 0x295   :  { %4006 = vmatmul.mubr.bf16.vlgmr.msra.gmra.mrb[8].mxu0 %v5709_v58  ;;  %v4750_v63 = vcombine.low %v794_v53, %v798_v40 }
 0x296   :  { %4170 = vmatmul.mubr.bf16.vlgmr.msra.gmra.mrb[8].mxu1 %v5709_v58  ;;  %4179 = vmatpush1.bf16.msra.mxu0 %v4694_v55  ;;  %v799_v55 = vld [vmem:[#allocation10 + $0x1f8] sm:$0xff] }
 0x297   :  { %4210 = vmatprep.mubr.bf16.mxu0 %v5644_v43  ;;  %4343 = vmatpush1.bf16.msra.mxu1 %v4696_v59  ;;  %v4751_v59 = vcombine.high %v794_v53, %v798_v40  ;;  %v846_v53 = vld [vmem:[#allocation10 + $0x370] sm:$0xff]  ;;  %v843_v40 = vld [vmem:[#allocation10 + $0x358] sm:$0xff] }
 0x298   :  { %4374 = vmatprep.mubr.bf16.mxu1 %v5644_v43  ;;  %4180 = vmatprep.subr.bf16.mxu0 %v4703_v20  ;;  %v4718_v43 = vcombine.low %v762_v5, %v766_v7  ;;  %v4753_v20 = vcombine.high %v795_v54, %v799_v55  ;;  %v814_v5 = vld [vmem:[#allocation10 + $0x270] sm:$0xff]  ;;  %v811_v7 = vld [vmem:[#allocation10 + $0x258] sm:$0xff] }
 0x299   :  { %4344 = vmatprep.subr.bf16.mxu1 %v4705_v62  ;;  %v803_v62 = vld [vmem:[#allocation10 + $0x218] sm:$0xff] }
 0x29a   :  { %4181 = vmatpush1.bf16.msra.mxu0 %v4702_v0  ;;  %v4752_v0 = vcombine.low %v795_v54, %v799_v55  ;;  %v847_v54 = vld [vmem:[#allocation10 + $0x378] sm:$0xff] }
 0x29b   :  { %4345 = vmatpush1.bf16.msra.mxu1 %v4704_v2  ;;  %4182 = vmatprep.subr.bf16.mxu0 %v4711_v3  ;;  %v4759_v2 = vcombine.high %v802_v60, %v806_v61  ;;  %v4761_v3 = vcombine.high %v803_v62, %v807_v39  ;;  %v854_v60 = vld [vmem:[#allocation10 + $0x3b0] sm:$0xff]  ;;  %v851_v61 = vld [vmem:[#allocation10 + $0x398] sm:$0xff] }
 0x29c   :  { %4346 = vmatprep.subr.bf16.mxu1 %v4713_v4  ;;  %v810_v4 = vld [vmem:[#allocation10 + $0x250] sm:$0xff] }
 0x29d   :  { %v4766_v24 = vcombine.low %v810_v4, %v814_v5 }
 0x29e   :  { %4183 = vmatpush1.bf16.msra.mxu0 %v4710_v11  ;;  %v4760_v11 = vcombine.low %v803_v62, %v807_v39  ;;  %v855_v62 = vld [vmem:[#allocation10 + $0x3b8] sm:$0xff] }
 0x29f   :  { %4347 = vmatpush1.bf16.msra.mxu1 %v4712_v12  ;;  %4184 = vmatprep.subr.bf16.mxu0 %v4719_v27  ;;  %v4767_v12 = vcombine.high %v810_v4, %v814_v5  ;;  %v4769_v27 = vcombine.high %v811_v7, %v815_v8  ;;  %v862_v4 = vld [vmem:[#allocation10 + $0x3f0] sm:$0xff]  ;;  %v859_v5 = vld [vmem:[#allocation10 + $0x3d8] sm:$0xff] }
 0x2a0   :  { %4348 = vmatprep.subr.bf16.mxu1 %v4721_v13  ;;  %v818_v13 = vld [vmem:[#allocation10 + $0x290] sm:$0xff] }
 0x2a1   :  { %v4774_v33 = vcombine.low %v818_v13, %v822_v14 }
 0x2a2   :  { %4185 = vmatpush1.bf16.msra.mxu0 %v4718_v43  ;;  %v4768_v43 = vcombine.low %v811_v7, %v815_v8  ;;  %v863_v7 = vld [vmem:[#allocation10 + $0x3f8] sm:$0xff] }
 0x2a3   :  { %4349 = vmatpush1.bf16.msra.mxu1 %v4720_v17  ;;  %4186 = vmatprep.subr.bf16.mxu0 %v4727_v26  ;;  %v4775_v17 = vcombine.high %v818_v13, %v822_v14  ;;  %v4777_v26 = vcombine.high %v819_v15, %v823_v45  ;;  %v870_v13 = vld [vmem:[#allocation10 + $0x430] sm:$0xff]  ;;  %v867_v14 = vld [vmem:[#allocation10 + $0x418] sm:$0xff] }
 0x2a4   :  { %4350 = vmatprep.subr.bf16.mxu1 %v4729_v28  ;;  %v826_v28 = vld [vmem:[#allocation10 + $0x2d0] sm:$0xff] }
 0x2a5   :  { %v4782_v47 = vcombine.low %v826_v28, %v830_v29 }
 0x2a6   :  { %4187 = vmatpush1.bf16.msra.mxu0 %v4726_v34  ;;  %v4776_v34 = vcombine.low %v819_v15, %v823_v45  ;;  %v871_v15 = vld [vmem:[#allocation10 + $0x438] sm:$0xff] }
 0x2a7   :  { %4351 = vmatpush1.bf16.msra.mxu1 %v4728_v35  ;;  %4188 = vmatprep.subr.bf16.mxu0 %v4735_v36  ;;  %v4783_v35 = vcombine.high %v826_v28, %v830_v29  ;;  %v4785_v36 = vcombine.high %v827_v31, %v831_v32  ;;  %v878_v28 = vld [vmem:[#allocation10 + $0x470] sm:$0xff] }
 0x2a8   :  { %4352 = vmatprep.subr.bf16.mxu1 %v4737_v37  ;;  %v834_v37 = vld [vmem:[#allocation10 + $0x310] sm:$0xff] }
 0x2a9   :  { %v4790_v55 = vcombine.low %v834_v37, %v838_v38 }
 0x2aa   :  { %4189 = vmatpush1.bf16.msra.mxu0 %v4734_v48  ;;  %v4784_v48 = vcombine.low %v827_v31, %v831_v32  ;;  %v875_v31 = vld [vmem:[#allocation10 + $0x458] sm:$0xff] }
 0x2ab   :  { %4353 = vmatpush1.bf16.msra.mxu1 %v4736_v49  ;;  %4190 = vmatprep.subr.bf16.mxu0 %v4743_v51  ;;  %v4791_v49 = vcombine.high %v834_v37, %v838_v38  ;;  %v4793_v51 = vcombine.high %v835_v41, %v839_v42  ;;  %v879_v32 = vld [vmem:[#allocation10 + $0x478] sm:$0xff] }
 0x2ac   :  { %4354 = vmatprep.subr.bf16.mxu1 %v4745_v52  ;;  %v842_v52 = vld [vmem:[#allocation10 + $0x350] sm:$0xff]  ;;  %v4833_v37 = vcombine.high %v875_v31, %v879_v32  ;;  %v883_v38 = vld [vmem:[#allocation10 + $0x498] sm:$0xff] }
 0x2ad   :  { %v4798_v39 = vcombine.low %v842_v52, %v846_v53 }
 0x2ae   :  { %4191 = vmatpush1.bf16.msra.mxu0 %v4742_v56  ;;  %v4792_v56 = vcombine.low %v835_v41, %v839_v42  ;;  %v887_v41 = vld [vmem:[#allocation10 + $0x4b8] sm:$0xff] }
 0x2af   :  { %4355 = vmatpush1.bf16.msra.mxu1 %v4744_v57  ;;  %4192 = vmatprep.subr.bf16.mxu0 %v4751_v59  ;;  %v4799_v57 = vcombine.high %v842_v52, %v846_v53  ;;  %v4801_v59 = vcombine.high %v843_v40, %v847_v54  ;;  %v894_v52 = vld [vmem:[#allocation10 + $0x4f0] sm:$0xff]  ;;  %v891_v53 = vld [vmem:[#allocation10 + $0x4d8] sm:$0xff] }
 0x2b0   :  { %4356 = vmatprep.subr.bf16.mxu1 %v4753_v20  ;;  %v850_v20 = vld [vmem:[#allocation10 + $0x390] sm:$0xff] }
 0x2b1   :  { %v4806_v8 = vcombine.low %v850_v20, %v854_v60 }
 0x2b2   :  { %4193 = vmatpush1.bf16.msra.mxu0 %v4750_v63  ;;  %v4800_v63 = vcombine.low %v843_v40, %v847_v54  ;;  %v895_v40 = vld [vmem:[#allocation10 + $0x4f8] sm:$0xff] }
 0x2b3   :  { %4357 = vmatpush1.bf16.msra.mxu1 %v4752_v0  ;;  %4194 = vmatprep.subr.bf16.mxu0 %v4759_v2  ;;  %v4807_v0 = vcombine.high %v850_v20, %v854_v60  ;;  %v4809_v2 = vcombine.high %v851_v61, %v855_v62  ;;  %v899_v20 = vld [vmem:[#allocation10 + $0x518] sm:$0xff] }
 0x2b4   :  { %4358 = vmatprep.subr.bf16.mxu1 %v4761_v3  ;;  %v858_v3 = vld [vmem:[#allocation10 + $0x3d0] sm:$0xff]  ;;  %v903_v60 = vld [vmem:[#allocation10 + $0x538] sm:$0xff] }
 0x2b5   :  { %v4814_v45 = vcombine.low %v858_v3, %v862_v4 }
 0x2b6   :  { %4195 = vmatpush1.bf16.msra.mxu0 %v4758_v9  ;;  %v4808_v9 = vcombine.low %v851_v61, %v855_v62  ;;  %v4848_v61 = vcombine.low %v891_v53, %v895_v40 }
 0x2b7   :  { %4359 = vmatpush1.bf16.msra.mxu1 %v4760_v11  ;;  %4196 = vmatprep.subr.bf16.mxu0 %v4767_v12  ;;  %v4815_v11 = vcombine.high %v858_v3, %v862_v4  ;;  %v4817_v12 = vcombine.high %v859_v5, %v863_v7  ;;  %v911_v3 = vld [vmem:[#allocation10 + $0x578] sm:$0xff] }
 0x2b8   :  { %4360 = vmatprep.subr.bf16.mxu1 %v4769_v27  ;;  %v866_v27 = vld [vmem:[#allocation10 + $0x410] sm:$0xff] }
 0x2b9   :  { %v4822_v29 = vcombine.low %v866_v27, %v870_v13 }
 0x2ba   :  { %4197 = vmatpush1.bf16.msra.mxu0 %v4766_v24  ;;  %v4816_v24 = vcombine.low %v859_v5, %v863_v7  ;;  %v4856_v5 = vcombine.low %v899_v20, %v903_v60 }
 0x2bb   :  { %4361 = vmatpush1.bf16.msra.mxu1 %v4768_v43  ;;  %4198 = vmatprep.subr.bf16.mxu0 %v4775_v17  ;;  %v4823_v43 = vcombine.high %v866_v27, %v870_v13  ;;  %v4825_v17 = vcombine.high %v867_v14, %v871_v15  ;;  %v919_v27 = vld [vmem:[#allocation10 + $0x5b8] sm:$0xff] }
 0x2bc   :  { %4362 = vmatprep.subr.bf16.mxu1 %v4777_v26  ;;  %v874_v26 = vld [vmem:[#allocation10 + $0x450] sm:$0xff] }
 0x2bd   :  { %v4830_v42 = vcombine.low %v874_v26, %v878_v28 }
 0x2be   :  { %4199 = vmatpush1.bf16.msra.mxu0 %v4774_v33  ;;  %v4824_v33 = vcombine.low %v867_v14, %v871_v15 }
 0x2bf   :  { %4363 = vmatpush1.bf16.msra.mxu1 %v4776_v34  ;;  %4200 = vmatprep.subr.bf16.mxu0 %v4783_v35  ;;  %v4831_v34 = vcombine.high %v874_v26, %v878_v28  ;;  %v882_v35 = vld [vmem:[#allocation10 + $0x490] sm:$0xff]  ;;  %v927_v26 = vld [vmem:[#allocation10 + $0x5f8] sm:$0xff] }
 0x2c0   :  { %4364 = vmatprep.subr.bf16.mxu1 %v4785_v36  ;;  %v886_v36 = vld [vmem:[#allocation10 + $0x4b0] sm:$0xff] }
 0x2c1   :  { %v4838_v54 = vcombine.low %v882_v35, %v886_v36 }
 0x2c2   :  { %4201 = vmatpush1.bf16.msra.mxu0 %v4782_v47  ;;  %v4832_v47 = vcombine.low %v875_v31, %v879_v32 }
 0x2c3   :  { %4365 = vmatpush1.bf16.msra.mxu1 %v4784_v48  ;;  %4202 = vmatprep.subr.bf16.mxu0 %v4791_v49  ;;  %v4839_v48 = vcombine.high %v882_v35, %v886_v36  ;;  %v4841_v49 = vcombine.high %v883_v38, %v887_v41  ;;  %v931_v35 = vld [vmem:[#allocation10 + $0x618] sm:$0xff] }
 0x2c4   :  { %4366 = vmatprep.subr.bf16.mxu1 %v4793_v51  ;;  %v890_v51 = vld [vmem:[#allocation10 + $0x4d0] sm:$0xff]  ;;  %v935_v36 = vld [vmem:[#allocation10 + $0x638] sm:$0xff] }
 0x2c6   :  { %4203 = vmatpush1.bf16.msra.mxu0 %v4790_v55  ;;  %v4847_v55 = vcombine.high %v890_v51, %v894_v52 }
 0x2c7   :  { %4367 = vmatpush1.bf16.msra.mxu1 %v4792_v56  ;;  %4204 = vmatprep.subr.bf16.mxu0 %v4799_v57  ;;  %v4849_v56 = vcombine.high %v891_v53, %v895_v40  ;;  %v898_v57 = vld [vmem:[#allocation10 + $0x510] sm:$0xff]  ;;  %v4888_v53 = vcombine.low %v931_v35, %v935_v36 }
 0x2c8   :  { %4368 = vmatprep.subr.bf16.mxu1 %v4801_v59  ;;  %v902_v59 = vld [vmem:[#allocation10 + $0x530] sm:$0xff] }
 0x2c9   :  { %v4855_v62 = vcombine.high %v898_v57, %v902_v59  ;;  %v4854_v4 = vcombine.low %v898_v57, %v902_v59  ;;  %v951_v57 = vld [vmem:[#allocation10 + $0x6b8] sm:$0xff] }
 0x2ca   :  { %4205 = vmatpush1.bf16.msra.mxu0 %v4798_v39  ;;  %v4857_v39 = vcombine.high %v899_v20, %v903_v60 }
 0x2cb   :  { %4369 = vmatpush1.bf16.msra.mxu1 %v4800_v63  ;;  %4206 = vmatprep.subr.bf16.mxu0 %v4807_v0  ;;  %v906_v63 = vld [vmem:[#allocation10 + $0x550] sm:$0xff] }
 0x2cc   :  { %4370 = vmatprep.subr.bf16.mxu1 %v4809_v2  ;;  %v910_v0 = vld [vmem:[#allocation10 + $0x570] sm:$0xff]  ;;  %v907_v2 = vld [vmem:[#allocation10 + $0x558] sm:$0xff] }
 0x2cd   :  { %v4863_v7 = vcombine.high %v906_v63, %v910_v0  ;;  %v4862_v13 = vcombine.low %v906_v63, %v910_v0  ;;  %v4864_v14 = vcombine.low %v907_v2, %v911_v3  ;;  %v959_v63 = vld [vmem:[#allocation10 + $0x6f8] sm:$0xff] }
 0x2ce   :  { %4207 = vmatpush1.bf16.msra.mxu0 %v4806_v8  ;;  %v4865_v8 = vcombine.high %v907_v2, %v911_v3 }
 0x2cf   :  { %4371 = vmatpush1.bf16.msra.mxu1 %v4808_v9  ;;  %4208 = vmatprep.subr.bf16.mxu0 %v4815_v11  ;;  %v914_v9 = vld [vmem:[#allocation10 + $0x590] sm:$0xff] }
 0x2d0   :  { %4372 = vmatprep.subr.bf16.mxu1 %v4817_v12  ;;  %v918_v11 = vld [vmem:[#allocation10 + $0x5b0] sm:$0xff]  ;;  %v915_v12 = vld [vmem:[#allocation10 + $0x598] sm:$0xff] }
 0x2d1   :  { %v4871_v15 = vcombine.high %v914_v9, %v918_v11  ;;  %v4870_v28 = vcombine.low %v914_v9, %v918_v11  ;;  %v967_v9 = vld [vmem:[#allocation10 + $0x738] sm:$0xff] }
 0x2d2   :  { %4209 = vmatpush1.bf16.msra.mxu0 %v4814_v45  ;;  %v4873_v45 = vcombine.high %v915_v12, %v919_v27 }
 0x2d3   :  { %4373 = vmatpush1.bf16.msra.mxu1 %v4816_v24  ;;  %4219 = vmatprep.subr.bf16.mxu0 %v4823_v43  ;;  %v922_v24 = vld [vmem:[#allocation10 + $0x5d0] sm:$0xff] }
 0x2d4   :  { %4383 = vmatprep.subr.bf16.mxu1 %v4825_v17  ;;  %v926_v43 = vld [vmem:[#allocation10 + $0x5f0] sm:$0xff]  ;;  %v923_v17 = vld [vmem:[#allocation10 + $0x5d8] sm:$0xff] }
 0x2d5   :  { %4211 = vmatmul.mubr.bf16.vlgmr.msra.gmra.mrb[12].mxu0 %v5646_v44  ;;  %v4879_v31 = vcombine.high %v922_v24, %v926_v43  ;;  %v4881_v32 = vcombine.high %v923_v17, %v927_v26 }
 0x2d6   :  { %4375 = vmatmul.mubr.bf16.vlgmr.msra.gmra.mrb[12].mxu1 %v5646_v44  ;;  %4220 = vmatpush1.bf16.msra.mxu0 %v4822_v29  ;;  %v4840_v44 = vcombine.low %v883_v38, %v887_v41  ;;  %v4872_v29 = vcombine.low %v915_v12, %v919_v27  ;;  %v4880_v38 = vcombine.low %v923_v17, %v927_v26 }
 0x2d7   :  { %4251 = vmatprep.mubr.bf16.mxu0 %v5650_v50  ;;  %4384 = vmatpush1.bf16.msra.mxu1 %v4824_v33  ;;  %v930_v33 = vld [vmem:[#allocation10 + $0x610] sm:$0xff] }
 0x2d8   :  { %4415 = vmatprep.mubr.bf16.mxu1 %v5650_v50  ;;  %4221 = vmatprep.subr.bf16.mxu0 %v4831_v34  ;;  %v4846_v50 = vcombine.low %v890_v51, %v894_v52  ;;  %v934_v34 = vld [vmem:[#allocation10 + $0x630] sm:$0xff]  ;;  %v943_v51 = vld [vmem:[#allocation10 + $0x678] sm:$0xff] }
 0x2d9   :  { %4385 = vmatprep.subr.bf16.mxu1 %v4833_v37  ;;  %v4878_v37 = vcombine.low %v922_v24, %v926_v43  ;;  %v4887_v41 = vcombine.high %v930_v33, %v934_v34  ;;  %v4886_v52 = vcombine.low %v930_v33, %v934_v34  ;;  %v975_v24 = vld [vmem:[#allocation10 + $0x778] sm:$0xff] }
 0x2da   :  { %4222 = vmatpush1.bf16.msra.mxu0 %v4830_v42  ;;  %v4889_v42 = vcombine.high %v931_v35, %v935_v36  ;;  %v983_v33 = vld [vmem:[#allocation10 + $0x7b8] sm:$0xff] }
 0x2db   :  { %4386 = vmatpush1.bf16.msra.mxu1 %v4832_v47  ;;  %4223 = vmatprep.subr.bf16.mxu0 %v4839_v48  ;;  %v938_v47 = vld [vmem:[#allocation10 + $0x650] sm:$0xff] }
 0x2dc   :  { %4387 = vmatprep.subr.bf16.mxu1 %v4841_v49  ;;  %v942_v48 = vld [vmem:[#allocation10 + $0x670] sm:$0xff]  ;;  %v939_v49 = vld [vmem:[#allocation10 + $0x658] sm:$0xff] }
 0x2dd   :  { %v4895_v40 = vcombine.high %v938_v47, %v942_v48  ;;  %v4894_v59 = vcombine.low %v938_v47, %v942_v48  ;;  %v4896_v20 = vcombine.low %v939_v49, %v943_v51  ;;  %v991_v47 = vld [vmem:[#allocation10 + $0x7f8] sm:$0xff] }
 0x2de   :  { %4224 = vmatpush1.bf16.msra.mxu0 %v4838_v54  ;;  %v4897_v54 = vcombine.high %v939_v49, %v943_v51 }
 0x2df   :  { %4388 = vmatpush1.bf16.msra.mxu1 %v4840_v44  ;;  %4225 = vmatprep.subr.bf16.mxu0 %v4847_v55  ;;  %v946_v44 = vld [vmem:[#allocation10 + $0x690] sm:$0xff] }
 0x2e0   :  { %4389 = vmatprep.subr.bf16.mxu1 %v4849_v56  ;;  %v950_v55 = vld [vmem:[#allocation10 + $0x6b0] sm:$0xff]  ;;  %v947_v56 = vld [vmem:[#allocation10 + $0x698] sm:$0xff] }
 0x2e1   :  { %v4903_v60 = vcombine.high %v946_v44, %v950_v55  ;;  %v4902_v0 = vcombine.low %v946_v44, %v950_v55  ;;  %v4904_v2 = vcombine.low %v947_v56, %v951_v57  ;;  %v999_v44 = vld [vmem:[#allocation10 + $0x838] sm:$0xff] }
 0x2e2   :  { %4226 = vmatpush1.bf16.msra.mxu0 %v4846_v50  ;;  %v4905_v50 = vcombine.high %v947_v56, %v951_v57 }
 0x2e3   :  { %4390 = vmatpush1.bf16.msra.mxu1 %v4848_v61  ;;  %4227 = vmatprep.subr.bf16.mxu0 %v4855_v62  ;;  %v954_v61 = vld [vmem:[#allocation10 + $0x6d0] sm:$0xff] }
 0x2e4   :  { %4391 = vmatprep.subr.bf16.mxu1 %v4857_v39  ;;  %v958_v62 = vld [vmem:[#allocation10 + $0x6f0] sm:$0xff]  ;;  %v955_v39 = vld [vmem:[#allocation10 + $0x6d8] sm:$0xff] }
 0x2e5   :  { %v4911_v3 = vcombine.high %v954_v61, %v958_v62  ;;  %v4910_v11 = vcombine.low %v954_v61, %v958_v62  ;;  %v4912_v12 = vcombine.low %v955_v39, %v959_v63  ;;  %v1003_v61 = vld [vmem:[#allocation10 + $0x858] sm:$0xff] }
 0x2e6   :  { %4228 = vmatpush1.bf16.msra.mxu0 %v4854_v4  ;;  %v4913_v4 = vcombine.high %v955_v39, %v959_v63  ;;  %v1007_v62 = vld [vmem:[#allocation10 + $0x878] sm:$0xff] }
 0x2e7   :  { %4392 = vmatpush1.bf16.msra.mxu1 %v4856_v5  ;;  %4229 = vmatprep.subr.bf16.mxu0 %v4863_v7  ;;  %v962_v5 = vld [vmem:[#allocation10 + $0x710] sm:$0xff] }
 0x2e8   :  { %4393 = vmatprep.subr.bf16.mxu1 %v4865_v8  ;;  %v966_v7 = vld [vmem:[#allocation10 + $0x730] sm:$0xff]  ;;  %v963_v8 = vld [vmem:[#allocation10 + $0x718] sm:$0xff] }
 0x2e9   :  { %v4919_v27 = vcombine.high %v962_v5, %v966_v7  ;;  %v4918_v43 = vcombine.low %v962_v5, %v966_v7  ;;  %v4920_v17 = vcombine.low %v963_v8, %v967_v9  ;;  %v1015_v5 = vld [vmem:[#allocation10 + $0x8b8] sm:$0xff] }
 0x2ea   :  { %4230 = vmatpush1.bf16.msra.mxu0 %v4862_v13  ;;  %v4921_v13 = vcombine.high %v963_v8, %v967_v9  ;;  %v4960_v8 = vcombine.low %v1003_v61, %v1007_v62 }
 0x2eb   :  { %4394 = vmatpush1.bf16.msra.mxu1 %v4864_v14  ;;  %4231 = vmatprep.subr.bf16.mxu0 %v4871_v15  ;;  %v970_v14 = vld [vmem:[#allocation10 + $0x750] sm:$0xff] }
 0x2ec   :  { %4395 = vmatprep.subr.bf16.mxu1 %v4873_v45  ;;  %v974_v15 = vld [vmem:[#allocation10 + $0x770] sm:$0xff]  ;;  %v971_v45 = vld [vmem:[#allocation10 + $0x758] sm:$0xff] }
 0x2ed   :  { %v4927_v26 = vcombine.high %v970_v14, %v974_v15  ;;  %v4926_v34 = vcombine.low %v970_v14, %v974_v15  ;;  %v4928_v35 = vcombine.low %v971_v45, %v975_v24  ;;  %v1023_v14 = vld [vmem:[#allocation10 + $0x8f8] sm:$0xff] }
 0x2ee   :  { %4232 = vmatpush1.bf16.msra.mxu0 %v4870_v28  ;;  %v4929_v28 = vcombine.high %v971_v45, %v975_v24 }
 0x2ef   :  { %4396 = vmatpush1.bf16.msra.mxu1 %v4872_v29  ;;  %4233 = vmatprep.subr.bf16.mxu0 %v4879_v31  ;;  %v978_v29 = vld [vmem:[#allocation10 + $0x790] sm:$0xff] }
 0x2f0   :  { %4397 = vmatprep.subr.bf16.mxu1 %v4881_v32  ;;  %v982_v31 = vld [vmem:[#allocation10 + $0x7b0] sm:$0xff]  ;;  %v979_v32 = vld [vmem:[#allocation10 + $0x798] sm:$0xff] }
 0x2f1   :  { %v4935_v36 = vcombine.high %v978_v29, %v982_v31  ;;  %v4934_v48 = vcombine.low %v978_v29, %v982_v31  ;;  %v4936_v49 = vcombine.low %v979_v32, %v983_v33 }
 0x2f2   :  { %4234 = vmatpush1.bf16.msra.mxu0 %v4878_v37  ;;  %v4937_v37 = vcombine.high %v979_v32, %v983_v33  ;;  %v1034_v33 = vld [vmem:[#allocation10 + $0x950] sm:$0xff] }
 0x2f3   :  { %4398 = vmatpush1.bf16.msra.mxu1 %v4880_v38  ;;  %4235 = vmatprep.subr.bf16.mxu0 %v4887_v41  ;;  %v986_v38 = vld [vmem:[#allocation10 + $0x7d0] sm:$0xff] }
 0x2f4   :  { %4399 = vmatprep.subr.bf16.mxu1 %v4889_v42  ;;  %v990_v41 = vld [vmem:[#allocation10 + $0x7f0] sm:$0xff]  ;;  %v987_v42 = vld [vmem:[#allocation10 + $0x7d8] sm:$0xff] }
 0x2f5   :  { %v4943_v51 = vcombine.high %v986_v38, %v990_v41  ;;  %v4942_v55 = vcombine.low %v986_v38, %v990_v41  ;;  %v4944_v56 = vcombine.low %v987_v42, %v991_v47 }
 0x2f6   :  { %4236 = vmatpush1.bf16.msra.mxu0 %v4886_v52  ;;  %v4945_v52 = vcombine.high %v987_v42, %v991_v47  ;;  %v1042_v47 = vld [vmem:[#allocation10 + $0x990] sm:$0xff] }
 0x2f7   :  { %4400 = vmatpush1.bf16.msra.mxu1 %v4888_v53  ;;  %4237 = vmatprep.subr.bf16.mxu0 %v4895_v40  ;;  %v994_v53 = vld [vmem:[#allocation10 + $0x810] sm:$0xff] }
 0x2f8   :  { %4401 = vmatprep.subr.bf16.mxu1 %v4897_v54  ;;  %v998_v40 = vld [vmem:[#allocation10 + $0x830] sm:$0xff]  ;;  %v995_v54 = vld [vmem:[#allocation10 + $0x818] sm:$0xff] }
 0x2f9   :  { %v4951_v57 = vcombine.high %v994_v53, %v998_v40  ;;  %v4952_v39 = vcombine.low %v995_v54, %v999_v44 }
 0x2fa   :  { %4238 = vmatpush1.bf16.msra.mxu0 %v4894_v59  ;;  %v4953_v59 = vcombine.high %v995_v54, %v999_v44  ;;  %v1050_v44 = vld [vmem:[#allocation10 + $0x9d0] sm:$0xff] }
 0x2fb   :  { %4402 = vmatpush1.bf16.msra.mxu1 %v4896_v20  ;;  %4239 = vmatprep.subr.bf16.mxu0 %v4903_v60  ;;  %v1002_v20 = vld [vmem:[#allocation10 + $0x850] sm:$0xff] }
 0x2fc   :  { %4403 = vmatprep.subr.bf16.mxu1 %v4905_v50  ;;  %v1006_v60 = vld [vmem:[#allocation10 + $0x870] sm:$0xff]  ;;  %v4950_v50 = vcombine.low %v994_v53, %v998_v40 }
 0x2fd   :  { %v4959_v63 = vcombine.high %v1002_v20, %v1006_v60  ;;  %v4958_v7 = vcombine.low %v1002_v20, %v1006_v60 }
 0x2fe   :  { %4240 = vmatpush1.bf16.msra.mxu0 %v4902_v0  ;;  %v1010_v0 = vld [vmem:[#allocation10 + $0x890] sm:$0xff] }
 0x2ff   :  { %4404 = vmatpush1.bf16.msra.mxu1 %v4904_v2  ;;  %4241 = vmatprep.subr.bf16.mxu0 %v4911_v3  ;;  %v1014_v2 = vld [vmem:[#allocation10 + $0x8b0] sm:$0xff]  ;;  %v4961_v3 = vcombine.high %v1003_v61, %v1007_v62 }
 0x300   :  { %4405 = vmatprep.subr.bf16.mxu1 %v4913_v4  ;;  %v1011_v4 = vld [vmem:[#allocation10 + $0x898] sm:$0xff]  ;;  %v4967_v9 = vcombine.high %v1010_v0, %v1014_v2  ;;  %v4966_v15 = vcombine.low %v1010_v0, %v1014_v2  ;;  %v1058_v61 = vld [vmem:[#allocation10 + $0xa10] sm:$0xff] }
 0x301   :  { %v1062_v62 = vld [vmem:[#allocation10 + $0xa30] sm:$0xff] }
 0x302   :  { %4242 = vmatpush1.bf16.msra.mxu0 %v4910_v11  ;;  %v4969_v11 = vcombine.high %v1011_v4, %v1015_v5 }
 0x303   :  { %4406 = vmatpush1.bf16.msra.mxu1 %v4912_v12  ;;  %4243 = vmatprep.subr.bf16.mxu0 %v4919_v27  ;;  %v1018_v12 = vld [vmem:[#allocation10 + $0x8d0] sm:$0xff] }
 0x304   :  { %4407 = vmatprep.subr.bf16.mxu1 %v4921_v13  ;;  %v1022_v27 = vld [vmem:[#allocation10 + $0x8f0] sm:$0xff]  ;;  %v1019_v13 = vld [vmem:[#allocation10 + $0x8d8] sm:$0xff] }
 0x305   :  { %v4975_v45 = vcombine.high %v1018_v12, %v1022_v27  ;;  %v4977_v24 = vcombine.high %v1019_v13, %v1023_v14  ;;  %v4976_v29 = vcombine.low %v1019_v13, %v1023_v14  ;;  %v1074_v14 = vld [vmem:[#allocation10 + $0xa90] sm:$0xff] }
 0x306   :  { %4244 = vmatpush1.bf16.msra.mxu0 %v4918_v43  ;;  %v1026_v43 = vld [vmem:[#allocation10 + $0x910] sm:$0xff] }
 0x307   :  { %4408 = vmatpush1.bf16.msra.mxu1 %v4920_v17  ;;  %4245 = vmatprep.subr.bf16.mxu0 %v4927_v26  ;;  %v1030_v17 = vld [vmem:[#allocation10 + $0x930] sm:$0xff]  ;;  %v1027_v26 = vld [vmem:[#allocation10 + $0x918] sm:$0xff] }
 0x308   :  { %4409 = vmatprep.subr.bf16.mxu1 %v4929_v28  ;;  %v1031_v28 = vld [vmem:[#allocation10 + $0x938] sm:$0xff]  ;;  %v4983_v31 = vcombine.high %v1026_v43, %v1030_v17 }
 0x309   :  { %v4985_v32 = vcombine.high %v1027_v26, %v1031_v28  ;;  %v4984_v38 = vcombine.low %v1027_v26, %v1031_v28  ;;  %v1082_v28 = vld [vmem:[#allocation10 + $0xad0] sm:$0xff] }
 0x30a   :  { %4246 = vmatpush1.bf16.msra.mxu0 %v4926_v34  ;;  %v1038_v34 = vld [vmem:[#allocation10 + $0x970] sm:$0xff] }
 0x30b   :  { %4410 = vmatpush1.bf16.msra.mxu1 %v4928_v35  ;;  %4247 = vmatprep.subr.bf16.mxu0 %v4935_v36  ;;  %v1035_v35 = vld [vmem:[#allocation10 + $0x958] sm:$0xff]  ;;  %v4991_v41 = vcombine.high %v1034_v33, %v1038_v34 }
 0x30c   :  { %4411 = vmatprep.subr.bf16.mxu1 %v4937_v37  ;;  %v1039_v36 = vld [vmem:[#allocation10 + $0x978] sm:$0xff]  ;;  %v4982_v37 = vcombine.low %v1026_v43, %v1030_v17 }
 0x30d   :  { %v4993_v42 = vcombine.high %v1035_v35, %v1039_v36  ;;  %v4992_v53 = vcombine.low %v1035_v35, %v1039_v36  ;;  %v1090_v36 = vld [vmem:[#allocation10 + $0xb10] sm:$0xff] }
 0x30e   :  { %4248 = vmatpush1.bf16.msra.mxu0 %v4934_v48  ;;  %v1046_v48 = vld [vmem:[#allocation10 + $0x9b0] sm:$0xff] }
 0x30f   :  { %4412 = vmatpush1.bf16.msra.mxu1 %v4936_v49  ;;  %4249 = vmatprep.subr.bf16.mxu0 %v4943_v51  ;;  %v1043_v49 = vld [vmem:[#allocation10 + $0x998] sm:$0xff]  ;;  %v4999_v40 = vcombine.high %v1042_v47, %v1046_v48 }
 0x310   :  { %4413 = vmatprep.subr.bf16.mxu1 %v4945_v52  ;;  %v1047_v51 = vld [vmem:[#allocation10 + $0x9b8] sm:$0xff]  ;;  %v4990_v52 = vcombine.low %v1034_v33, %v1038_v34 }
 0x311   :  { %v5001_v54 = vcombine.high %v1043_v49, %v1047_v51  ;;  %v5000_v20 = vcombine.low %v1043_v49, %v1047_v51  ;;  %v1098_v51 = vld [vmem:[#allocation10 + $0xb50] sm:$0xff] }
 0x312   :  { %4250 = vmatpush1.bf16.msra.mxu0 %v4942_v55  ;;  %v1054_v55 = vld [vmem:[#allocation10 + $0x9f0] sm:$0xff] }
 0x313   :  { %4414 = vmatpush1.bf16.msra.mxu1 %v4944_v56  ;;  %4260 = vmatprep.subr.bf16.mxu0 %v4951_v57  ;;  %v1051_v56 = vld [vmem:[#allocation10 + $0x9d8] sm:$0xff]  ;;  %v5007_v60 = vcombine.high %v1050_v44, %v1054_v55  ;;  %v5006_v0 = vcombine.low %v1050_v44, %v1054_v55 }
 0x314   :  { %4424 = vmatprep.subr.bf16.mxu1 %v4953_v59  ;;  %v1055_v57 = vld [vmem:[#allocation10 + $0x9f8] sm:$0xff]  ;;  %v4998_v59 = vcombine.low %v1042_v47, %v1046_v48 }
 0x315   :  { %4252 = vmatmul.mubr.bf16.vlgmr.msra.gmra.mrb[12].mxu0 %v5676_v23  ;;  %v5008_v2 = vcombine.low %v1051_v56, %v1055_v57 }
 0x316   :  { %4416 = vmatmul.mubr.bf16.vlgmr.msra.gmra.mrb[12].mxu1 %v5676_v23  ;;  %4261 = vmatpush1.bf16.msra.mxu0 %v4950_v50  ;;  %v4968_v23 = vcombine.low %v1011_v4, %v1015_v5  ;;  %v5009_v50 = vcombine.high %v1051_v56, %v1055_v57  ;;  %v1066_v5 = vld [vmem:[#allocation10 + $0xa50] sm:$0xff] }
 0x317   :  { %4292 = vmatprep.mubr.bf16.mxu0 %v5678_v25  ;;  %4425 = vmatpush1.bf16.msra.mxu1 %v4952_v39  ;;  %v1059_v39 = vld [vmem:[#allocation10 + $0xa18] sm:$0xff]  ;;  %v1106_v57 = vld [vmem:[#allocation10 + $0xb90] sm:$0xff] }
 0x318   :  { %4456 = vmatprep.mubr.bf16.mxu1 %v5678_v25  ;;  %4262 = vmatprep.subr.bf16.mxu0 %v4959_v63  ;;  %v4974_v25 = vcombine.low %v1018_v12, %v1022_v27  ;;  %v1063_v63 = vld [vmem:[#allocation10 + $0xa38] sm:$0xff] }
 0x319   :  { %4426 = vmatprep.subr.bf16.mxu1 %v4961_v3  ;;  %v5015_v3 = vcombine.high %v1058_v61, %v1062_v62  ;;  %v5017_v4 = vcombine.high %v1059_v39, %v1063_v63  ;;  %v5016_v12 = vcombine.low %v1059_v39, %v1063_v63  ;;  %v1114_v63 = vld [vmem:[#allocation10 + $0xbd0] sm:$0xff] }
 0x31a   :  { %4263 = vmatpush1.bf16.msra.mxu0 %v4958_v7  ;;  %v1070_v7 = vld [vmem:[#allocation10 + $0xa70] sm:$0xff] }
 0x31b   :  { %4427 = vmatpush1.bf16.msra.mxu1 %v4960_v8  ;;  %4264 = vmatprep.subr.bf16.mxu0 %v4967_v9  ;;  %v1067_v8 = vld [vmem:[#allocation10 + $0xa58] sm:$0xff]  ;;  %v5023_v27 = vcombine.high %v1066_v5, %v1070_v7 }
 0x31c   :  { %4428 = vmatprep.subr.bf16.mxu1 %v4969_v11  ;;  %v1071_v9 = vld [vmem:[#allocation10 + $0xa78] sm:$0xff]  ;;  %v5014_v11 = vcombine.low %v1058_v61, %v1062_v62 }
 0x31d   :  { %v5025_v13 = vcombine.high %v1067_v8, %v1071_v9  ;;  %v5024_v43 = vcombine.low %v1067_v8, %v1071_v9  ;;  %v1122_v9 = vld [vmem:[#allocation10 + $0xc10] sm:$0xff] }
 0x31e   :  { %4265 = vmatpush1.bf16.msra.mxu0 %v4966_v15  ;;  %v1078_v15 = vld [vmem:[#allocation10 + $0xab0] sm:$0xff] }
 0x31f   :  { %4429 = vmatpush1.bf16.msra.mxu1 %v4968_v23  ;;  %4266 = vmatprep.subr.bf16.mxu0 %v4975_v45  ;;  %v1075_v23 = vld [vmem:[#allocation10 + $0xa98] sm:$0xff]  ;;  %v5031_v17 = vcombine.high %v1074_v14, %v1078_v15 }
 0x320   :  { %4430 = vmatprep.subr.bf16.mxu1 %v4977_v24  ;;  %v1079_v45 = vld [vmem:[#allocation10 + $0xab8] sm:$0xff]  ;;  %v5022_v24 = vcombine.low %v1066_v5, %v1070_v7 }
 0x321   :  { %v5033_v26 = vcombine.high %v1075_v23, %v1079_v45  ;;  %v5032_v33 = vcombine.low %v1075_v23, %v1079_v45  ;;  %v1130_v45 = vld [vmem:[#allocation10 + $0xc50] sm:$0xff] }
 0x322   :  { %4267 = vmatpush1.bf16.msra.mxu0 %v4974_v25  ;;  %v1086_v25 = vld [vmem:[#allocation10 + $0xaf0] sm:$0xff] }
 0x323   :  { %4431 = vmatpush1.bf16.msra.mxu1 %v4976_v29  ;;  %4268 = vmatprep.subr.bf16.mxu0 %v4983_v31  ;;  %v1083_v29 = vld [vmem:[#allocation10 + $0xad8] sm:$0xff]  ;;  %v5039_v34 = vcombine.high %v1082_v28, %v1086_v25 }
 0x324   :  { %4432 = vmatprep.subr.bf16.mxu1 %v4985_v32  ;;  %v1087_v31 = vld [vmem:[#allocation10 + $0xaf8] sm:$0xff]  ;;  %v5030_v32 = vcombine.low %v1074_v14, %v1078_v15 }
 0x325   :  { %v5041_v35 = vcombine.high %v1083_v29, %v1087_v31  ;;  %v5040_v47 = vcombine.low %v1083_v29, %v1087_v31  ;;  %v1138_v29 = vld [vmem:[#allocation10 + $0xc90] sm:$0xff] }
 0x326   :  { %4269 = vmatpush1.bf16.msra.mxu0 %v4982_v37  ;;  %v1094_v37 = vld [vmem:[#allocation10 + $0xb30] sm:$0xff] }
 0x327   :  { %4433 = vmatpush1.bf16.msra.mxu1 %v4984_v38  ;;  %4270 = vmatprep.subr.bf16.mxu0 %v4991_v41  ;;  %v1091_v38 = vld [vmem:[#allocation10 + $0xb18] sm:$0xff]  ;;  %v5047_v48 = vcombine.high %v1090_v36, %v1094_v37  ;;  %v1142_v31 = vld [vmem:[#allocation10 + $0xcb0] sm:$0xff] }
 0x328   :  { %4434 = vmatprep.subr.bf16.mxu1 %v4993_v42  ;;  %v1095_v41 = vld [vmem:[#allocation10 + $0xb38] sm:$0xff]  ;;  %v5038_v42 = vcombine.low %v1082_v28, %v1086_v25 }
 0x329   :  { %v5049_v49 = vcombine.high %v1091_v38, %v1095_v41  ;;  %v5048_v44 = vcombine.low %v1091_v38, %v1095_v41  ;;  %v1146_v41 = vld [vmem:[#allocation10 + $0xcd0] sm:$0xff] }
 0x32a   :  { %4271 = vmatpush1.bf16.msra.mxu0 %v4990_v52  ;;  %v1102_v52 = vld [vmem:[#allocation10 + $0xb70] sm:$0xff] }
 0x32b   :  { %4435 = vmatpush1.bf16.msra.mxu1 %v4992_v53  ;;  %4272 = vmatprep.subr.bf16.mxu0 %v4999_v40  ;;  %v1099_v53 = vld [vmem:[#allocation10 + $0xb58] sm:$0xff]  ;;  %v5055_v55 = vcombine.high %v1098_v51, %v1102_v52 }
 0x32c   :  { %4436 = vmatprep.subr.bf16.mxu1 %v5001_v54  ;;  %v1103_v40 = vld [vmem:[#allocation10 + $0xb78] sm:$0xff]  ;;  %v5046_v54 = vcombine.low %v1090_v36, %v1094_v37  ;;  %v5095_v37 = vcombine.high %v1138_v29, %v1142_v31 }
 0x32d   :  { %v5057_v56 = vcombine.high %v1099_v53, %v1103_v40  ;;  %v5056_v61 = vcombine.low %v1099_v53, %v1103_v40  ;;  %v1154_v53 = vld [vmem:[#allocation10 + $0xd10] sm:$0xff] }
 0x32e   :  { %4273 = vmatpush1.bf16.msra.mxu0 %v4998_v59  ;;  %v1110_v59 = vld [vmem:[#allocation10 + $0xbb0] sm:$0xff] }
 0x32f   :  { %4437 = vmatpush1.bf16.msra.mxu1 %v5000_v20  ;;  %4274 = vmatprep.subr.bf16.mxu0 %v5007_v60  ;;  %v1107_v20 = vld [vmem:[#allocation10 + $0xb98] sm:$0xff]  ;;  %v5063_v62 = vcombine.high %v1106_v57, %v1110_v59  ;;  %v1158_v40 = vld [vmem:[#allocation10 + $0xd30] sm:$0xff] }
 0x330   :  { %4438 = vmatprep.subr.bf16.mxu1 %v5009_v50  ;;  %v1111_v60 = vld [vmem:[#allocation10 + $0xbb8] sm:$0xff]  ;;  %v5054_v50 = vcombine.low %v1098_v51, %v1102_v52 }
 0x331   :  { %v5065_v39 = vcombine.high %v1107_v20, %v1111_v60  ;;  %v5064_v5 = vcombine.low %v1107_v20, %v1111_v60  ;;  %v1166_v20 = vld [vmem:[#allocation10 + $0xd70] sm:$0xff]  ;;  %v1163_v60 = vld [vmem:[#allocation10 + $0xd58] sm:$0xff] }
 0x332   :  { %4275 = vmatpush1.bf16.msra.mxu0 %v5006_v0  ;;  %v1118_v0 = vld [vmem:[#allocation10 + $0xbf0] sm:$0xff] }
 0x333   :  { %4439 = vmatpush1.bf16.msra.mxu1 %v5008_v2  ;;  %4276 = vmatprep.subr.bf16.mxu0 %v5015_v3  ;;  %v1115_v2 = vld [vmem:[#allocation10 + $0xbd8] sm:$0xff]  ;;  %v5071_v7 = vcombine.high %v1114_v63, %v1118_v0 }
 0x334   :  { %4440 = vmatprep.subr.bf16.mxu1 %v5017_v4  ;;  %v1119_v3 = vld [vmem:[#allocation10 + $0xbf8] sm:$0xff]  ;;  %v5062_v4 = vcombine.low %v1106_v57, %v1110_v59  ;;  %v1162_v59 = vld [vmem:[#allocation10 + $0xd50] sm:$0xff] }
 0x335   :  { %v5073_v8 = vcombine.high %v1115_v2, %v1119_v3  ;;  %v5072_v14 = vcombine.low %v1115_v2, %v1119_v3  ;;  %v1170_v2 = vld [vmem:[#allocation10 + $0xd90] sm:$0xff] }
 0x336   :  { %4277 = vmatpush1.bf16.msra.mxu0 %v5014_v11  ;;  %v1126_v11 = vld [vmem:[#allocation10 + $0xc30] sm:$0xff] }
 0x337   :  { %4441 = vmatpush1.bf16.msra.mxu1 %v5016_v12  ;;  %4278 = vmatprep.subr.bf16.mxu0 %v5023_v27  ;;  %v1123_v12 = vld [vmem:[#allocation10 + $0xc18] sm:$0xff]  ;;  %v5079_v15 = vcombine.high %v1122_v9, %v1126_v11  ;;  %v1174_v3 = vld [vmem:[#allocation10 + $0xdb0] sm:$0xff] }
 0x338   :  { %4442 = vmatprep.subr.bf16.mxu1 %v5025_v13  ;;  %v1127_v27 = vld [vmem:[#allocation10 + $0xc38] sm:$0xff]  ;;  %v5070_v13 = vcombine.low %v1114_v63, %v1118_v0  ;;  %v5119_v63 = vcombine.high %v1162_v59, %v1166_v20 }
 0x339   :  { %v5081_v23 = vcombine.high %v1123_v12, %v1127_v27  ;;  %v5080_v28 = vcombine.low %v1123_v12, %v1127_v27  ;;  %v5118_v12 = vcombine.low %v1162_v59, %v1166_v20 }
 0x33a   :  { %4279 = vmatpush1.bf16.msra.mxu0 %v5022_v24  ;;  %v1134_v24 = vld [vmem:[#allocation10 + $0xc70] sm:$0xff] }
 0x33b   :  { %4443 = vmatpush1.bf16.msra.mxu1 %v5024_v43  ;;  %4280 = vmatprep.subr.bf16.mxu0 %v5031_v17  ;;  %v5078_v43 = vcombine.low %v1122_v9, %v1126_v11  ;;  %v1131_v17 = vld [vmem:[#allocation10 + $0xc58] sm:$0xff]  ;;  %v5087_v25 = vcombine.high %v1130_v45, %v1134_v24 }
 0x33c   :  { %4444 = vmatprep.subr.bf16.mxu1 %v5033_v26  ;;  %v1135_v26 = vld [vmem:[#allocation10 + $0xc78] sm:$0xff] }
 0x33d   :  { %v5088_v36 = vcombine.low %v1131_v17, %v1135_v26 }
 0x33e   :  { %4281 = vmatpush1.bf16.msra.mxu0 %v5030_v32  ;;  %v5089_v32 = vcombine.high %v1131_v17, %v1135_v26 }
 0x33f   :  { %4445 = vmatpush1.bf16.msra.mxu1 %v5032_v33  ;;  %4282 = vmatprep.subr.bf16.mxu0 %v5039_v34  ;;  %v1139_v33 = vld [vmem:[#allocation10 + $0xc98] sm:$0xff] }
 0x340   :  { %4446 = vmatprep.subr.bf16.mxu1 %v5041_v35  ;;  %v1143_v34 = vld [vmem:[#allocation10 + $0xcb8] sm:$0xff]  ;;  %v5086_v35 = vcombine.low %v1130_v45, %v1134_v24  ;;  %v1178_v45 = vld [vmem:[#allocation10 + $0xdd0] sm:$0xff] }
 0x341   :  { %v5097_v38 = vcombine.high %v1139_v33, %v1143_v34  ;;  %v1182_v24 = vld [vmem:[#allocation10 + $0xdf0] sm:$0xff] }
 0x342   :  { %4283 = vmatpush1.bf16.msra.mxu0 %v5038_v42  ;;  %v1150_v42 = vld [vmem:[#allocation10 + $0xcf0] sm:$0xff] }
 0x343   :  { %4447 = vmatpush1.bf16.msra.mxu1 %v5040_v47  ;;  %4284 = vmatprep.subr.bf16.mxu0 %v5047_v48  ;;  %v1147_v47 = vld [vmem:[#allocation10 + $0xcd8] sm:$0xff]  ;;  %v5103_v51 = vcombine.high %v1146_v41, %v1150_v42 }
 0x344   :  { %4448 = vmatprep.subr.bf16.mxu1 %v5049_v49  ;;  %v1151_v48 = vld [vmem:[#allocation10 + $0xcf8] sm:$0xff]  ;;  %v5094_v49 = vcombine.low %v1138_v29, %v1142_v31 }
 0x345   :  { %v5105_v52 = vcombine.high %v1147_v47, %v1151_v48  ;;  %v1183_v29 = vld [vmem:[#allocation10 + $0xdf8] sm:$0xff] }
 0x346   :  { %4285 = vmatpush1.bf16.msra.mxu0 %v5046_v54  ;;  %v1155_v54 = vld [vmem:[#allocation10 + $0xd18] sm:$0xff] }
 0x347   :  { %4449 = vmatpush1.bf16.msra.mxu1 %v5048_v44  ;;  %4286 = vmatprep.subr.bf16.mxu0 %v5055_v55  ;;  %v1159_v44 = vld [vmem:[#allocation10 + $0xd38] sm:$0xff]  ;;  %v5104_v55 = vcombine.low %v1147_v47, %v1151_v48  ;;  %v5135_v47 = vcombine.high %v1178_v45, %v1182_v24 }
 0x348   :  { %4450 = vmatprep.subr.bf16.mxu1 %v5057_v56  ;;  %v5111_v56 = vcombine.high %v1154_v53, %v1158_v40  ;;  %v5113_v57 = vcombine.high %v1155_v54, %v1159_v44 }
 0x34a   :  { %4287 = vmatpush1.bf16.msra.mxu0 %v5054_v50  ;;  %v1167_v50 = vld [vmem:[#allocation10 + $0xd78] sm:$0xff] }
 0x34b   :  { %4451 = vmatpush1.bf16.msra.mxu1 %v5056_v61  ;;  %4288 = vmatprep.subr.bf16.mxu0 %v5063_v62  ;;  %v5110_v61 = vcombine.low %v1154_v53, %v1158_v40  ;;  %v5727_v62 = vld [vmem:[#allocation11] sm:$0xff]  ;;  %v5121_v0 = vcombine.high %v1163_v60, %v1167_v50  ;;  %v1190_v53 = vld [vmem:[#allocation10 + $0xe30] sm:$0xff] }
 0x34c   :  { %4452 = vmatprep.subr.bf16.mxu1 %v5065_v39  ;;  %v5112_v39 = vcombine.low %v1155_v54, %v1159_v44  ;;  %v1261_v9 = vrot.slane %v5727_v62, %v5665_v19  ;;  %v1257_v11 = vrot.slane %v5727_v62, %v5631_v21  ;;  %v1265_v27 = vrot.slane %v5727_v62, %v5634_v22  ;;  %v1187_v54 = vld [vmem:[#allocation10 + $0xe18] sm:$0xff] }
 0x34d   :  { %v1191_v44 = vld [vmem:[#allocation10 + $0xe38] sm:$0xff] }
 0x34e   :  { %4289 = vmatpush1.bf16.msra.mxu0 %v5062_v4  ;;  %v1253_v4 = vrot.slane %v5727_v62, %v5626_v18 }
 0x34f   :  { %4453 = vmatpush1.bf16.msra.mxu1 %v5064_v5  ;;  %4290 = vmatprep.subr.bf16.mxu0 %v5071_v7  ;;  %v1171_v5 = vld [vmem:[#allocation10 + $0xd98] sm:$0xff] }
 0x350   :  { %4454 = vmatprep.subr.bf16.mxu1 %v5073_v8  ;;  %v1175_v7 = vld [vmem:[#allocation10 + $0xdb8] sm:$0xff]  ;;  %v5731_v8 = vld [vmem:[#allocation13] sm:$0xff] }
 0x351   :  { %v4519_v17 = vrot.slane %v5731_v8, %v5626_v18  ;;  %v5128_v18 = vcombine.low %v1171_v5, %v1175_v7 }
 0x352   :  { %4291 = vmatpush1.bf16.msra.mxu0 %v5070_v13  ;;  %v5120_v13 = vcombine.low %v1163_v60, %v1167_v50  ;;  %v5145_v50 = vcombine.high %v1187_v54, %v1191_v44 }
 0x353   :  { %4455 = vmatpush1.bf16.msra.mxu1 %v5072_v14  ;;  %4301 = vmatprep.subr.bf16.mxu0 %v5079_v15  ;;  %v5127_v14 = vcombine.high %v1170_v2, %v1174_v3 }
 0x354   :  { %4465 = vmatprep.subr.bf16.mxu1 %v5081_v23  ;;  %v5129_v23 = vcombine.high %v1171_v5, %v1175_v7 }
 0x355   :  { %4293 = vmatmul.mubr.bf16.vlgmr.msra.gmra.mrb[12].mxu0 %v5696_v6 }
 0x356   :  { %4457 = vmatmul.mubr.bf16.vlgmr.msra.gmra.mrb[12].mxu1 %v5696_v6  ;;  %4302 = vmatpush1.bf16.msra.mxu0 %v5078_v43  ;;  %v5096_v6 = vcombine.low %v1139_v33, %v1143_v34  ;;  %v4523_v33 = vrot.slane %v5731_v8, %v5631_v21 }
 0x357   :  { %4333 = vmatprep.mubr.bf16.mxu0 %v5698_v10  ;;  %4466 = vmatpush1.bf16.msra.mxu1 %v5080_v28 }
 0x358   :  { %4497 = vmatprep.mubr.bf16.mxu1 %v5698_v10  ;;  %4303 = vmatprep.subr.bf16.mxu0 %v5087_v25  ;;  %v5102_v10 = vcombine.low %v1146_v41, %v1150_v42  ;;  %v1179_v25 = vld [vmem:[#allocation10 + $0xdd8] sm:$0xff] }
 0x359   :  { %4467 = vmatprep.subr.bf16.mxu1 %v5089_v32  ;;  %v5137_v21 = vcombine.high %v1179_v25, %v1183_v29  ;;  %v5136_v59 = vcombine.low %v1179_v25, %v1183_v29 }
 0x35a   :  { %4304 = vmatpush1.bf16.msra.mxu0 %v5086_v35 }
 0x35b   :  { %4468 = vmatpush1.bf16.msra.mxu1 %v5088_v36  ;;  %4305 = vmatprep.subr.bf16.mxu0 %v5095_v37  ;;  %v5126_v36 = vcombine.low %v1170_v2, %v1174_v3 }
 0x35c   :  { %4469 = vmatprep.subr.bf16.mxu1 %v5097_v38 }
 0x35e   :  { %4306 = vmatpush1.bf16.msra.mxu0 %v5094_v49  ;;  %v4527_v49 = vrot.slane %v5731_v8, %v5665_v19 }
 0x35f   :  { %4470 = vmatpush1.bf16.msra.mxu1 %v5096_v6  ;;  %4307 = vmatprep.subr.bf16.mxu0 %v5103_v51 }
 0x360   :  { %4471 = vmatprep.subr.bf16.mxu1 %v5105_v52  ;;  %v1186_v52 = vld [vmem:[#allocation10 + $0xe10] sm:$0xff] }
 0x361   :  { %v5143_v19 = vcombine.high %v1186_v52, %v1190_v53 }
 0x362   :  { %4308 = vmatpush1.bf16.msra.mxu0 %v5102_v10 }
 0x363   :  { %4472 = vmatpush1.bf16.msra.mxu1 %v5104_v55  ;;  %4309 = vmatprep.subr.bf16.mxu0 %v5111_v56  ;;  %v4531_v56 = vrot.slane %v5731_v8, %v5634_v22  ;;  %v5144_v22 = vcombine.low %v1187_v54, %v1191_v44  ;;  %v1239_v54 = vld [vmem:[#allocation10 + $0xfb8] sm:$0xff] }
 0x364   :  { %4473 = vmatprep.subr.bf16.mxu1 %v5113_v57  ;;  %v5134_v57 = vcombine.low %v1178_v45, %v1182_v24  ;;  %v1210_v24 = vld [vmem:[#allocation10 + $0xed0] sm:$0xff] }
 0x366   :  { %4310 = vmatpush1.bf16.msra.mxu0 %v5110_v61  ;;  %v1194_v61 = vld [vmem:[#allocation10 + $0xe50] sm:$0xff] }
 0x367   :  { %4474 = vmatpush1.bf16.msra.mxu1 %v5112_v39  ;;  %4311 = vmatprep.subr.bf16.mxu0 %v5119_v63  ;;  %v1198_v39 = vld [vmem:[#allocation10 + $0xe70] sm:$0xff]  ;;  %v1195_v63 = vld [vmem:[#allocation10 + $0xe58] sm:$0xff] }
 0x368   :  { %v4007_v15 = vpop.f32.mrb[8].mxu0  ;;  %4475 = vmatprep.subr.bf16.mxu1 %v5121_v0  ;;  %v1199_v0 = vld [vmem:[#allocation10 + $0xe78] sm:$0xff]  ;;  %v5151_v5 = vcombine.high %v1194_v61, %v1198_v39 }
 0x369   :  { %v5203_v43 = vadd.f32 %v4007_v15, %v1253_v4  ;;  %v4171_v26 = vpop.f32.mrb[8].mxu1  ;;  %v4009_v28 = vpop.f32.mrb[9].mxu0  ;;  %v5142_v4 = vcombine.low %v1186_v52, %v1190_v53  ;;  %v5152_v15 = vcombine.low %v1195_v63, %v1199_v0  ;;  %v1234_v52 = vld [vmem:[#allocation10 + $0xf90] sm:$0xff] }
 0x36a   :  { %v5205_v31 = vadd.f32 %v4171_v26, %v1261_v9  ;;  %v5204_v32 = vadd.f32 %v4009_v28, %v1257_v11  ;;  %v4173_v34 = vpop.f32.mrb[9].mxu1  ;;  %v4011_v35 = vpop.f32.mrb[10].mxu0  ;;  %4312 = vmatpush1.bf16.msra.mxu0 %v5118_v12  ;;  %v5153_v9 = vcombine.high %v1195_v63, %v1199_v0  ;;  %v1202_v11 = vld [vmem:[#allocation10 + $0xe90] sm:$0xff]  ;;  %v1215_v26 = vld [vmem:[#allocation10 + $0xef8] sm:$0xff] }
 0x36b   :  { %v4506_v37 = vmax.f32 %v5203_v43, 0.0  ;;  %v5206_v38 = vadd.f32 %v4173_v34, %v1265_v27  ;;  %v4175_v41 = vpop.f32.mrb[10].mxu1  ;;  %4476 = vmatpush1.bf16.msra.mxu1 %v5120_v13  ;;  %v4012_v42 = vpop.f32.mrb[11].mxu0  ;;  %4313 = vmatprep.subr.bf16.mxu0 %v5127_v14  ;;  %v1206_v12 = vld [vmem:[#allocation10 + $0xeb0] sm:$0xff]  ;;  %v1203_v27 = vld [vmem:[#allocation10 + $0xe98] sm:$0xff]  ;;  %v5150_v14 = vcombine.low %v1194_v61, %v1198_v39 }
 0x36c   :  { %v4508_v48 = vmax.f32 %v5205_v31, 0.0  ;;  %v4507_v6 = vmax.f32 %v5204_v32, 0.0  ;;  %v4176_v51 = vpop.f32.mrb[11].mxu1  ;;  %4477 = vmatprep.subr.bf16.mxu1 %v5129_v23  ;;  %v1207_v13 = vld [vmem:[#allocation10 + $0xeb8] sm:$0xff]  ;;  %v5159_v23 = vcombine.high %v1202_v11, %v1206_v12  ;;  %v1214_v43 = vld [vmem:[#allocation10 + $0xef0] sm:$0xff]  ;;  %v5158_v28 = vcombine.low %v1202_v11, %v1206_v12 }
 0x36d   :  { %v4556_v40 = vmul.f32 %v4519_v17, %v4506_v37  ;;  %v4509_v55 = vmax.f32 %v5206_v38, 0.0  ;;  %v5161_v45 = vcombine.high %v1203_v27, %v1207_v13  ;;  %v1211_v17 = vld [vmem:[#allocation10 + $0xed8] sm:$0xff]  ;;  %v5160_v25 = vcombine.low %v1203_v27, %v1207_v13  ;;  %v1218_v32 = vld [vmem:[#allocation10 + $0xf10] sm:$0xff] }
 0x36e   :  { %v4557_v10 = vmul.f32 %v4523_v33, %v4507_v6  ;;  %4314 = vmatpush1.bf16.msra.mxu0 %v5126_v36  ;;  %v4558_v20 = vmul.f32 %v4527_v49, %v4508_v48  ;;  %v5167_v29 = vcombine.high %v1210_v24, %v1214_v43  ;;  %v5169_v31 = vcombine.high %v1211_v17, %v1215_v26  ;;  %v1222_v33 = vld [vmem:[#allocation10 + $0xf30] sm:$0xff]  ;;  %v1219_v34 = vld [vmem:[#allocation10 + $0xf18] sm:$0xff] }
 0x36f   :  { %4478 = vmatpush1.bf16.msra.mxu1 %v5128_v18  ;;  %4315 = vmatprep.subr.bf16.mxu0 %v5135_v47  ;;  %v4559_v2 = vmul.f32 %v4531_v56, %v4509_v55  ;;  %v1223_v35 = vld [vmem:[#allocation10 + $0xf38] sm:$0xff]  ;;  %v5166_v36 = vcombine.low %v1210_v24, %v1214_v43  ;;  %v5168_v37 = vcombine.low %v1211_v17, %v1215_v26  ;;  %v1226_v42 = vld [vmem:[#allocation10 + $0xf50] sm:$0xff] }
 0x370   :  { %v4564_v60 = vadd.f32 %v4557_v10, %v4556_v40  ;;  %4479 = vmatprep.subr.bf16.mxu1 %v5137_v21  ;;  %v5175_v38 = vcombine.high %v1218_v32, %v1222_v33  ;;  %v5177_v41 = vcombine.high %v1219_v34, %v1223_v35  ;;  %v1230_v18 = vld [vmem:[#allocation10 + $0xf70] sm:$0xff]  ;;  %v1227_v47 = vld [vmem:[#allocation10 + $0xf58] sm:$0xff]  ;;  %v5174_v49 = vcombine.low %v1218_v32, %v1222_v33 }
 0x371   :  { %v1231_v48 = vld [vmem:[#allocation10 + $0xf78] sm:$0xff]  ;;  %v5176_v6 = vcombine.low %v1219_v34, %v1223_v35  ;;  %v5183_v51 = vcombine.high %v1226_v42, %v1230_v18  ;;  %v1238_v53 = vld [vmem:[#allocation10 + $0xfb0] sm:$0xff]  ;;  %v5182_v44 = vcombine.low %v1226_v42, %v1230_v18  ;;  %v4535_v11 = vrot.slane %v5731_v8, %v5685_v16 }
 0x372   :  { %v4565_v3 = vadd.f32 %v4564_v60, %v4558_v20  ;;  %4316 = vmatpush1.bf16.msra.mxu0 %v5134_v57  ;;  %v5185_v21 = vcombine.high %v1227_v47, %v1231_v48  ;;  %v1235_v40 = vld [vmem:[#allocation10 + $0xf98] sm:$0xff]  ;;  %v5184_v10 = vcombine.low %v1227_v47, %v1231_v48  ;;  %v5191_v55 = vcombine.high %v1234_v52, %v1238_v53  ;;  %v1242_v57 = vld [vmem:[#allocation10 + $0xfd0] sm:$0xff] }
 0x373   :  { %4480 = vmatpush1.bf16.msra.mxu1 %v5136_v59  ;;  %4317 = vmatprep.subr.bf16.mxu0 %v5143_v19  ;;  %v5193_v56 = vcombine.high %v1235_v40, %v1239_v54  ;;  %v1246_v59 = vld [vmem:[#allocation10 + $0xff0] sm:$0xff]  ;;  %v1243_v19 = vld [vmem:[#allocation10 + $0xfd8] sm:$0xff]  ;;  %v5190_v60 = vcombine.low %v1234_v52, %v1238_v53 }
 0x374   :  { %v5747_v7 = vadd.f32 %v4565_v3, %v4559_v2  ;;  %4481 = vmatprep.subr.bf16.mxu1 %v5145_v50  ;;  %v1247_v20 = vld [vmem:[#allocation10 + $0xff8] sm:$0xff]  ;;  %v5192_v50 = vcombine.low %v1235_v40, %v1239_v54  ;;  %v5199_v61 = vcombine.high %v1242_v57, %v1246_v59  ;;  %v5198_v63 = vcombine.low %v1242_v57, %v1246_v59 }
 0x375   :  { %v5201_v39 = vcombine.high %v1243_v19, %v1247_v20  ;;  %v5200_v0 = vcombine.low %v1243_v19, %v1247_v20  ;;  %v1269_v2 = vrot.slane %v5727_v62, %v5685_v16  ;;  %v1277_v3 = vrot.slane %v5727_v62, %v5705_v46 }
 0x376   :  { %4318 = vmatpush1.bf16.msra.mxu0 %v5142_v4  ;;  %v1273_v4 = vrot.slane %v5727_v62, %v5668_v1  ;;  %v4543_v16 = vrot.slane %v5731_v8, %v5705_v46 }
 0x377   :  { %4482 = vmatpush1.bf16.msra.mxu1 %v5144_v22  ;;  %4319 = vmatprep.subr.bf16.mxu0 %v5151_v5  ;;  %v1281_v22 = vrot.slane %v5727_v62, %v5688_v30 }
 0x378   :  { %4483 = vmatprep.subr.bf16.mxu1 %v5153_v9 }
 0x37a   :  { %4320 = vmatpush1.bf16.msra.mxu0 %v5150_v14  ;;  %v4539_v14 = vrot.slane %v5731_v8, %v5668_v1  ;;  %v4547_v1 = vrot.slane %v5731_v8, %v5688_v30 }
 0x37b   :  { %4484 = vmatpush1.bf16.msra.mxu1 %v5152_v15  ;;  %4321 = vmatprep.subr.bf16.mxu0 %v5159_v23 }
 0x37c   :  { %4485 = vmatprep.subr.bf16.mxu1 %v5161_v45 }
 0x37e   :  { %4322 = vmatpush1.bf16.msra.mxu0 %v5158_v28 }
 0x37f   :  { %4486 = vmatpush1.bf16.msra.mxu1 %v5160_v25  ;;  %4323 = vmatprep.subr.bf16.mxu0 %v5167_v29 }
 0x380   :  { %4487 = vmatprep.subr.bf16.mxu1 %v5169_v31 }
 0x382   :  { %4324 = vmatpush1.bf16.msra.mxu0 %v5166_v36 }
 0x383   :  { %4488 = vmatpush1.bf16.msra.mxu1 %v5168_v37  ;;  %4325 = vmatprep.subr.bf16.mxu0 %v5175_v38  ;;  %v5202_v38 = vld [vmem:[#allocation2] ss:$0 sm:$0xff] }
 0x384   :  { %4489 = vmatprep.subr.bf16.mxu1 %v5177_v41 }
 0x386   :  { %4326 = vmatpush1.bf16.msra.mxu0 %v5174_v49 }
 0x387   :  { %4490 = vmatpush1.bf16.msra.mxu1 %v5176_v6  ;;  %4327 = vmatprep.subr.bf16.mxu0 %v5183_v51 }
 0x388   :  { %4491 = vmatprep.subr.bf16.mxu1 %v5185_v21 }
 0x38a   :  { %4328 = vmatpush1.bf16.msra.mxu0 %v5182_v44 }
 0x38b   :  { %4492 = vmatpush1.bf16.msra.mxu1 %v5184_v10  ;;  %4329 = vmatprep.subr.bf16.mxu0 %v5191_v55 }
 0x38c   :  { %4493 = vmatprep.subr.bf16.mxu1 %v5193_v56 }
 0x38e   :  { %4330 = vmatpush1.bf16.msra.mxu0 %v5190_v60 }
 0x38f   :  { %4494 = vmatpush1.bf16.msra.mxu1 %v5192_v50  ;;  %4331 = vmatprep.subr.bf16.mxu0 %v5199_v61 }
 0x390   :  { %4495 = vmatprep.subr.bf16.mxu1 %v5201_v39 }
 0x392   :  { %4332 = vmatpush1.bf16.msra.mxu0 %v5198_v63 }
 0x393   :  { %4496 = vmatpush1.bf16.msra.mxu1 %v5200_v0 }
 0x395   :  { %4334 = vmatmul.mubr.bf16.vlgmr.msra.gmra.mrb[12].mxu0 %v5709_v58 }
 0x396   :  { %4498 = vmatmul.mubr.bf16.vlgmr.msra.gmra.mrb[12].mxu1 %v5709_v58 }
 0x468   :  { %v4335_v5 = vpop.f32.mrb[12].mxu0 }
 0x469   :  { %v5207_v9 = vadd.f32 %v4335_v5, %v1269_v2  ;;  %v4499_v12 = vpop.f32.mrb[12].mxu1  ;;  %v4337_v27 = vpop.f32.mrb[13].mxu0 }
 0x46a   :  { %v5209_v58 = vadd.f32 %v4499_v12, %v1277_v3  ;;  %v5208_v13 = vadd.f32 %v4337_v27, %v1273_v4  ;;  %v4501_v15 = vpop.f32.mrb[13].mxu1  ;;  %v4339_v23 = vpop.f32.mrb[14].mxu0 }
 0x46b   :  { %v4510_v45 = vmax.f32 %v5207_v9, 0.0  ;;  %v5210_v24 = vadd.f32 %v4501_v15, %v1281_v22  ;;  %v4503_v43 = vpop.f32.mrb[14].mxu1  ;;  %v4340_v17 = vpop.f32.mrb[15].mxu0 }
 0x46c   :  { %v4511_v26 = vmax.f32 %v5208_v13, 0.0  ;;  %v4504_v62 = vpop.f32.mrb[15].mxu1  ;;  %v4512_v25 = vmax.f32 %v5209_v58, 0.0 }
 0x46d   :  { %v4560_v28 = vmul.f32 %v4535_v11, %v4510_v45  ;;  %v4513_v32 = vmax.f32 %v5210_v24, 0.0 }
 0x46e   :  { %v4561_v29 = vmul.f32 %v4539_v14, %v4511_v26  ;;  %v4562_v33 = vmul.f32 %v4543_v16, %v4512_v25 }
 0x46f   :  { %v4567_v31 = vadd.f32 %v5747_v7, %v4560_v28  ;;  %v4563_v35 = vmul.f32 %v4547_v1, %v4513_v32 }
 0x471   :  { %v4568_v34 = vadd.f32 %v4567_v31, %v4561_v29 }
 0x473   :  { %v4569_v36 = vadd.f32 %v4568_v34, %v4562_v33 }
 0x475   :  { %v4570_v37 = vadd.f32 %v4569_v36, %v4563_v35 }
 0x477   :  { %4571 = vadd.xlane.f32.xlu0 %v4570_v37 }
 0x504   :  { %v4572_v41 = vpop.xlane.xlu0 %4571 }
 0x505   :  { %v4580_v42 = vadd.f32 %v5202_v38, %v4572_v41 }
 0x507   :  { %4582 = vst.msk [vmem:[#allocation14] sm:$0xff] %vm4581_vm1, %v4580_v42 }
 0x50e   :  { %v4600_v18 = vld [vmem:[#allocation14] sm:$0x3] }
 0x50f   :  { %4601 = vst [vmem:[%s5779_s8] sm:$0x3] %v4600_v18 }
 0x510   :  { %4618 = vsyncpa [#allocation4], 1 }
 0x511   :  { %4619 = vsyncpa [#allocation6], 1 }
 0x512   :  { %4620 = vsyncpa [#allocation9], 1 }
 0x513   :  { %4621 = vsyncpa [#allocation12], 1 }

</bundles_post_ra>
